<compile_context>
chip_gen: v6e
topology: v6e:2x2x1
jax: 0.10.0
libtpu: 0.0.40
codegen_flags: <defaults>
</compile_context>

<pallas_src>
import jax
import jax.numpy as jnp
import numpy as np
from jax import lax
from jax.experimental import pallas as pl
from jax.experimental.pallas import tpu as pltpu

LANE = 128


def _round_up(x, m):
    return (x + m - 1) // m * m


def _tpu_vmem_capacity_bytes(default=64 * 1024 * 1024):
    """Best-effort trace-time VMEM capacity query (v5e/v6e: 128 MiB, v7x: 64 MiB)."""
    try:
        return int(pltpu.get_tpu_info().vmem_capacity_bytes)
    except Exception:
        return default


def _pick_batch_tile(B, rows_per_image, target_rows, min_steps=4):
    """Largest Bt dividing B with Bt*rows <= target_rows, keeping >= min_steps
    grid steps when B allows (>= 2 steps per v7x core) and Bt*rows % 8 == 0."""
    want = max(1, target_rows // max(1, rows_per_image))
    best = 1
    for bt in range(1, B + 1):
        if B % bt:
            continue
        if bt > want:
            continue
        if (bt * rows_per_image) % 8 != 0 and bt != B:
            continue
        if B // bt < min(min_steps, B):
            continue
        best = bt
    return best


def make_bottleneck_kernel(Bt, H, W, Wp, Cin_p, Cmid_p, Cout_p, use_projection):
    M = Bt * H * W

    def kernel(*refs):
        if use_projection:
            (x_ref, w1_ref, s1_ref, b1_ref,
             w2_ref, s2_ref, b2_ref,
             w3_ref, s3_ref, b3_ref,
             ws_ref, ss_ref, bs_ref,
             o_ref, pad_ref) = refs
        else:
            (x_ref, w1_ref, s1_ref, b1_ref,
             w2_ref, s2_ref, b2_ref,
             w3_ref, s3_ref, b3_ref,
             o_ref, pad_ref) = refs

        # Hoist BN scale/bias loads (broadcasts are not CSE'd by JAX).
        s1 = s1_ref[...]; b1 = b1_ref[...]
        s2 = s2_ref[...]; b2 = b2_ref[...]
        s3 = s3_ref[...]; b3 = b3_ref[...]

        x2d = x_ref[...]                       # (M, Cin_p): bf16 (proj) / f32 (identity)
        x_mm = x2d if use_projection else x2d.astype(jnp.bfloat16)

        # ---- conv1 (1x1) + bn1 + relu -----------------------------------------
        h1 = jnp.dot(x_mm, w1_ref[...], preferred_element_type=jnp.float32)
        h1 = jnp.maximum(h1 * s1 + b1, 0.0)    # (M, Cmid_p) f32

        # ---- conv2 (3x3, stride=1, pad=1) + bn2 + relu --------------------------
        # bf16 halo scratch, width padded to Wp (multiple of 8 sublanes).
        # Re-zero only the 1-element halo; the interior is fully overwritten.
        zrow = jnp.zeros((Bt, 1, Wp, Cmid_p), jnp.bfloat16)
        pad_ref[:, 0:1, :, :] = zrow
        pad_ref[:, H + 1:H + 2, :, :] = zrow
        zcol = jnp.zeros((Bt, H, 1, Cmid_p), jnp.bfloat16)
        pad_ref[:, 1:H + 1, 0:1, :] = zcol
        pad_ref[:, 1:H + 1, W + 1:W + 2, :] = zcol
        pad_ref[:, 1:H + 1, 1:W + 1, :] = (
            h1.astype(jnp.bfloat16).reshape(Bt, H, W, Cmid_p))

        # Nine accumulated MXU dots (one per 3x3 tap); no im2col concat.
        # Each K = Cmid_p dot is full MXU width; on v7x the MRB accumulates
        # in place so chaining nine matmuls is cheap.
        h2 = None
        t = 0
        for dy in range(3):
            for dx in range(3):
                tap = pad_ref[:, dy:dy + H, dx:dx + W, :].reshape(M, Cmid_p)
                part = jnp.dot(tap, w2_ref[t],
                               preferred_element_type=jnp.float32)
                h2 = part if h2 is None else h2 + part
                t += 1
        h2 = jnp.maximum(h2 * s2 + b2, 0.0)    # (M, Cmid_p) f32

        # ---- conv3 (1x1) + bn3 ---------------------------------------------------
        h3 = jnp.dot(h2.astype(jnp.bfloat16), w3_ref[...],
                     preferred_element_type=jnp.float32)
        h3 = h3 * s3 + b3                      # (M, Cout_p) f32

        # ---- shortcut (projection 1x1 + bn, or full-precision identity) ----------
        if use_projection:
            sc = jnp.dot(x_mm, ws_ref[...], preferred_element_type=jnp.float32)
            sc = sc * ss_ref[...] + bs_ref[...]
        else:
            sc = x2d                            # f32 residual (Cin_p == Cout_p)

        # Lane-dense store: Cout_p is a multiple of 128 -> unmasked vst.
        o_ref[...] = jnp.maximum(h3 + sc, 0.0)

    return kernel


def bottleneck_forward(x_nhwc, params, *, use_projection=True):
    B, H, W, Cin = x_nhwc.shape
    Cmid = params["w1"].shape[1]
    Cout = params["w3"].shape[1]
    if not use_projection:
        assert Cin == Cout, \
            "identity shortcut requires in_filters == out_filters (stride=1)"
    # TODO(synk): stride > 1 in conv2 / shortcut is not implemented.

    Cin_p = _round_up(Cin, LANE)
    Cmid_p = _round_up(Cmid, LANE)
    Cout_p = _round_up(Cout, LANE)
    Wp = _round_up(W + 2, 8)                    # sublane-aligned halo width

    # Generation-aware row-block size and VMEM budget.
    vmem_cap = _tpu_vmem_capacity_bytes()
    if vmem_cap >= 100 * 1024 * 1024:           # v5e / v6e (128 MiB VMEM)
        target_rows, vmem_limit = 512, 96 * 1024 * 1024
    else:                                        # v7x (64 MiB per TensorCore)
        target_rows, vmem_limit = 256, 40 * 1024 * 1024

    Bt = _pick_batch_tile(B, H * W, target_rows)
    if (Bt * H * W) % 8 != 0:
        Bt = B                                   # block == full array dims
    M = Bt * H * W
    grid = (B // Bt,)

    def pad2(a, r, c):
        return jnp.pad(a, ((0, r - a.shape[0]), (0, c - a.shape[1])))

    # Activations: flatten to (B*H*W, Cin_p), lane-dense.  Projection blocks
    # take bf16 x (both consumers are matmuls); identity blocks take f32 x so
    # the residual add stays full precision.
    x2d = jnp.pad(x_nhwc, ((0, 0), (0, 0), (0, 0), (0, Cin_p - Cin)))
    x2d = x2d.reshape(B * H * W, Cin_p)
    x2d = x2d.astype(jnp.bfloat16) if use_projection else x2d.astype(jnp.float32)

    # Weights channel-padded (bf16).  Folded-BN scale/bias padded with zeros
    # (f32) so padded channels stay exactly zero through ReLU.
    w1 = pad2(params["w1"], Cin_p, Cmid_p).astype(jnp.bfloat16)
    w2 = jnp.pad(params["w2"],
                 ((0, 0), (0, 0), (0, Cmid_p - Cmid), (0, Cmid_p - Cmid)))
    w2 = w2.reshape(9, Cmid_p, Cmid_p).astype(jnp.bfloat16)
    w3 = pad2(params["w3"], Cmid_p, Cout_p).astype(jnp.bfloat16)
    s1 = pad2(params["s1"], 1, Cmid_p); b1 = pad2(params["b1"], 1, Cmid_p)
    s2 = pad2(params["s2"], 1, Cmid_p); b2 = pad2(params["b2"], 1, Cmid_p)
    s3 = pad2(params["s3"], 1, Cout_p); b3 = pad2(params["b3"], 1, Cout_p)

    kernel = make_bottleneck_kernel(Bt, H, W, Wp, Cin_p, Cmid_p, Cout_p,
                                    use_projection)

    def rep_spec(shape):
        n = len(shape)
        return pl.BlockSpec(shape, lambda b, _n=n: (0,) * _n)

    operands = [x2d, w1, s1, b1, w2, s2, b2, w3, s3, b3]
    in_specs = [
        pl.BlockSpec((M, Cin_p), lambda b: (b, 0)),          # x row-block
        rep_spec(w1.shape), rep_spec(s1.shape), rep_spec(b1.shape),
        rep_spec(w2.shape), rep_spec(s2.shape), rep_spec(b2.shape),
        rep_spec(w3.shape), rep_spec(s3.shape), rep_spec(b3.shape),
    ]
    if use_projection:
        ws = pad2(params["ws"], Cin_p, Cout_p).astype(jnp.bfloat16)
        ss = pad2(params["ss"], 1, Cout_p)
        bs = pad2(params["bs"], 1, Cout_p)
        operands += [ws, ss, bs]
        in_specs += [rep_spec(ws.shape), rep_spec(ss.shape), rep_spec(bs.shape)]

    grid_spec = pltpu.PrefetchScalarGridSpec(
        num_scalar_prefetch=0,
        grid=grid,
        in_specs=in_specs,
        out_specs=pl.BlockSpec((M, Cout_p), lambda b: (b, 0)),
        scratch_shapes=[pltpu.VMEM((Bt, H + 2, Wp, Cmid_p), jnp.bfloat16)],
    )

    out2d = pl.pallas_call(
        kernel,
        out_shape=jax.ShapeDtypeStruct((B * H * W, Cout_p), jnp.float32),
        grid_spec=grid_spec,
        compiler_params=pltpu.CompilerParams(
            dimension_semantics=("parallel",),   # >= 2 steps per v7x core
            vmem_limit_bytes=vmem_limit,
        ),
    )(*operands)

    return out2d.reshape(B, H, W, Cout_p)[..., :Cout]


def ref_forward(x_nhwc, params, *, use_projection=True):
    """Pure-JAX reference mirroring the kernel numerics (bf16 matmul operands,
    f32 accumulation, f32 BN/ReLU, f32 identity residual)."""
    def mm(a, w):
        return jnp.einsum("bhwc,cd->bhwd", a.astype(jnp.bfloat16),
                          w.astype(jnp.bfloat16),
                          preferred_element_type=jnp.float32)

    h1 = jax.nn.relu(mm(x_nhwc, params["w1"]) * params["s1"] + params["b1"])
    h2 = lax.conv_general_dilated(
        h1.astype(jnp.bfloat16), params["w2"].astype(jnp.bfloat16),
        window_strides=(1, 1), padding=((1, 1), (1, 1)),
        dimension_numbers=("NHWC", "HWIO", "NHWC"),
        preferred_element_type=jnp.float32)
    h2 = jax.nn.relu(h2 * params["s2"] + params["b2"])
    h3 = mm(h2, params["w3"]) * params["s3"] + params["b3"]
    if use_projection:
        sc = mm(x_nhwc, params["ws"]) * params["ss"] + params["bs"]
    else:
        sc = x_nhwc.astype(jnp.float32)          # full-precision identity residual
    return jax.nn.relu(h3 + sc)


def fold_bn(gamma, beta, mean, var, eps=1e-5):
    scale = gamma / jnp.sqrt(var + eps)
    bias = beta - mean * scale
    return (scale[None, :].astype(jnp.float32),
            bias[None, :].astype(jnp.float32))


def init_params(key, Cin, Cout, squeeze=4):
    Cmid = Cout // squeeze
    ks = jax.random.split(key, 8)

    def w(k, shape):
        return (0.1 * jax.random.normal(k, shape)).astype(jnp.float32)

    def bn_params(k, c):
        k1, k2, k3, k4 = jax.random.split(k, 4)
        gamma = 1.0 + 0.1 * jax.random.normal(k1, (c,))
        beta = 0.1 * jax.random.normal(k2, (c,))
        mean = 0.1 * jax.random.normal(k3, (c,))
        var = jax.random.uniform(k4, (c,), minval=0.5, maxval=1.5)
        return fold_bn(gamma, beta, mean, var)

    s1, b1 = bn_params(ks[1], Cmid)
    s2, b2 = bn_params(ks[3], Cmid)
    s3, b3 = bn_params(ks[5], Cout)
    ss, bs = bn_params(ks[7], Cout)

    return {
        # 1x1 conv weights as [Cin, Cout]; 3x3 conv as HWIO [3, 3, Cmid, Cmid]
        "w1": w(ks[0], (Cin, Cmid)), "s1": s1, "b1": b1,
        "w2": w(ks[2], (3, 3, Cmid, Cmid)), "s2": s2, "b2": b2,
        "w3": w(ks[4], (Cmid, Cout)), "s3": s3, "b3": b3,
        "ws": w(ks[6], (Cin, Cout)), "ss": ss, "bs": bs,
    }


if __name__ == "__main__":
    key = jax.random.PRNGKey(0)
    kx1, kx2, kp1, kp2 = jax.random.split(key, 4)

    # --- projection block: in_filters != out_filters -> 1x1 projection shortcut
    B, Cin, Cout, H, W = 8, 32, 64, 8, 8
    x_nchw = jax.random.normal(kx1, (B, Cin, H, W), dtype=jnp.float32)
    x_nhwc = jnp.transpose(x_nchw, (0, 2, 3, 1))     # kernel works in NHWC
    params = init_params(kp1, Cin, Cout, squeeze=4)

    out_nhwc = jax.block_until_ready(
        bottleneck_forward(x_nhwc, params, use_projection=True))
    ref_nhwc = ref_forward(x_nhwc, params, use_projection=True)
    np.testing.assert_allclose(np.asarray(out_nhwc), np.asarray(ref_nhwc),
                               rtol=5e-3, atol=5e-3)
    out_nchw = jnp.transpose(out_nhwc, (0, 3, 1, 2))  # back to NCHW
    assert out_nchw.shape == (B, Cout, H, W)

    # --- identity block: in_filters == out_filters, stride=1 -----------------
    x2_nchw = jax.random.normal(kx2, (B, Cout, H, W), dtype=jnp.float32)
    x2_nhwc = jnp.transpose(x2_nchw, (0, 2, 3, 1))
    params_id = init_params(kp2, Cout, Cout, squeeze=4)

    out2 = jax.block_until_ready(
        bottleneck_forward(x2_nhwc, params_id, use_projection=False))
    ref2 = ref_forward(x2_nhwc, params_id, use_projection=False)
    np.testing.assert_allclose(np.asarray(out2), np.asarray(ref2),
                               rtol=5e-3, atol=5e-3)

    print("KERNEL_OK")
</pallas_src>

<mosaic_0001>
module attributes {stable_mosaic.version = 11 : i64} {
  func.func @kernel(%arg0: i32, %arg1: memref<128x128xbf16, #tpu.memory_space<vmem>>, %arg2: memref<128x128xbf16, #tpu.memory_space<vmem>>, %arg3: memref<1x128xf32, #tpu.memory_space<vmem>>, %arg4: memref<1x128xf32, #tpu.memory_space<vmem>>, %arg5: memref<9x128x128xbf16, #tpu.memory_space<vmem>>, %arg6: memref<1x128xf32, #tpu.memory_space<vmem>>, %arg7: memref<1x128xf32, #tpu.memory_space<vmem>>, %arg8: memref<128x128xbf16, #tpu.memory_space<vmem>>, %arg9: memref<1x128xf32, #tpu.memory_space<vmem>>, %arg10: memref<1x128xf32, #tpu.memory_space<vmem>>, %arg11: memref<128x128xbf16, #tpu.memory_space<vmem>>, %arg12: memref<1x128xf32, #tpu.memory_space<vmem>>, %arg13: memref<1x128xf32, #tpu.memory_space<vmem>>, %arg14: memref<128x128xf32, #tpu.memory_space<vmem>>, %arg15: memref<2x10x16x128xbf16, #tpu.memory_space<vmem>>) attributes {dimension_semantics = [#tpu.dimension_semantics<parallel>], iteration_bounds = array<i64: 4>, scalar_prefetch = 0 : i64, scratch_operands = 1 : i64, tpu.core_type = #tpu.core_type<tc>, window_params = [{transform_indices = @transform_0, window_bounds = array<i64: 128, 128>}, {pipeline_mode = #tpu.pipeline_mode<synchronous>, transform_indices = @transform_1, window_bounds = array<i64: 128, 128>}, {pipeline_mode = #tpu.pipeline_mode<synchronous>, transform_indices = @transform_2, window_bounds = array<i64: 1, 128>}, {pipeline_mode = #tpu.pipeline_mode<synchronous>, transform_indices = @transform_3, window_bounds = array<i64: 1, 128>}, {pipeline_mode = #tpu.pipeline_mode<synchronous>, transform_indices = @transform_4, window_bounds = array<i64: 9, 128, 128>}, {pipeline_mode = #tpu.pipeline_mode<synchronous>, transform_indices = @transform_5, window_bounds = array<i64: 1, 128>}, {pipeline_mode = #tpu.pipeline_mode<synchronous>, transform_indices = @transform_6, window_bounds = array<i64: 1, 128>}, {pipeline_mode = #tpu.pipeline_mode<synchronous>, transform_indices = @transform_7, window_bounds = array<i64: 128, 128>}, {pipeline_mode = #tpu.pipeline_mode<synchronous>, transform_indices = @transform_8, window_bounds = array<i64: 1, 128>}, {pipeline_mode = #tpu.pipeline_mode<synchronous>, transform_indices = @transform_9, window_bounds = array<i64: 1, 128>}, {pipeline_mode = #tpu.pipeline_mode<synchronous>, transform_indices = @transform_10, window_bounds = array<i64: 128, 128>}, {pipeline_mode = #tpu.pipeline_mode<synchronous>, transform_indices = @transform_11, window_bounds = array<i64: 1, 128>}, {pipeline_mode = #tpu.pipeline_mode<synchronous>, transform_indices = @transform_12, window_bounds = array<i64: 1, 128>}, {transform_indices = @transform_13, window_bounds = array<i64: 128, 128>}]} {
    %c0 = arith.constant 0 : index
    %c0_0 = arith.constant 0 : index
    %0 = vector.load %arg3[%c0, %c0_0] : memref<1x128xf32, #tpu.memory_space<vmem>>, vector<1x128xf32>
    %c0_1 = arith.constant 0 : index
    %c0_2 = arith.constant 0 : index
    %1 = vector.load %arg4[%c0_1, %c0_2] : memref<1x128xf32, #tpu.memory_space<vmem>>, vector<1x128xf32>
    %c0_3 = arith.constant 0 : index
    %c0_4 = arith.constant 0 : index
    %2 = vector.load %arg6[%c0_3, %c0_4] : memref<1x128xf32, #tpu.memory_space<vmem>>, vector<1x128xf32>
    %c0_5 = arith.constant 0 : index
    %c0_6 = arith.constant 0 : index
    %3 = vector.load %arg7[%c0_5, %c0_6] : memref<1x128xf32, #tpu.memory_space<vmem>>, vector<1x128xf32>
    %c0_7 = arith.constant 0 : index
    %c0_8 = arith.constant 0 : index
    %4 = vector.load %arg9[%c0_7, %c0_8] : memref<1x128xf32, #tpu.memory_space<vmem>>, vector<1x128xf32>
    %c0_9 = arith.constant 0 : index
    %c0_10 = arith.constant 0 : index
    %5 = vector.load %arg10[%c0_9, %c0_10] : memref<1x128xf32, #tpu.memory_space<vmem>>, vector<1x128xf32>
    %c0_11 = arith.constant 0 : index
    %c0_12 = arith.constant 0 : index
    %6 = vector.load %arg1[%c0_11, %c0_12] : memref<128x128xbf16, #tpu.memory_space<vmem>>, vector<128x128xbf16>
    %c0_13 = arith.constant 0 : index
    %c0_14 = arith.constant 0 : index
    %7 = vector.load %arg2[%c0_13, %c0_14] : memref<128x128xbf16, #tpu.memory_space<vmem>>, vector<128x128xbf16>
    %cst = arith.constant dense<0.000000e+00> : vector<128x128xf32>
    %8 = tpu.matmul %6, %7, %cst {dimension_numbers = #tpu.dot_dimension_numbers<[1], [0], [0], [1], [0, 0, 1, 1], [], []>} : vector<128x128xbf16>, vector<128x128xbf16>, vector<128x128xf32> -> vector<128x128xf32>
    %9 = vector.broadcast %0 : vector<1x128xf32> to vector<128x128xf32>
    %10 = arith.mulf %8, %9 : vector<128x128xf32>
    %11 = vector.broadcast %1 : vector<1x128xf32> to vector<128x128xf32>
    %12 = arith.addf %10, %11 : vector<128x128xf32>
    %cst_15 = arith.constant 0.000000e+00 : f32
    %13 = vector.broadcast %cst_15 : f32 to vector<128x128xf32>
    %14 = arith.maximumf %12, %13 : vector<128x128xf32>
    %cst_16 = arith.constant 0.000000e+00 : bf16
    %15 = vector.broadcast %cst_16 : bf16 to vector<2x1x16x128xbf16>
    %c0_17 = arith.constant 0 : index
    %c0_18 = arith.constant 0 : index
    %c0_19 = arith.constant 0 : index
    %c0_20 = arith.constant 0 : index
    %16 = vector.load %arg15[%c0_17, %c0_18, %c0_19, %c0_20] : memref<2x10x16x128xbf16, #tpu.memory_space<vmem>>, vector<2x1x16x128xbf16>
    tpu.vector_store %arg15[%c0_17, %c0_18, %c0_19, %c0_20], %15 {strides = array<i32>} : memref<2x10x16x128xbf16, #tpu.memory_space<vmem>>, vector<2x1x16x128xbf16>,
    %c0_21 = arith.constant 0 : index
    %c9 = arith.constant 9 : index
    %c0_22 = arith.constant 0 : index
    %c0_23 = arith.constant 0 : index
    %17 = vector.load %arg15[%c0_21, %c9, %c0_22, %c0_23] : memref<2x10x16x128xbf16, #tpu.memory_space<vmem>>, vector<2x1x16x128xbf16>
    tpu.vector_store %arg15[%c0_21, %c9, %c0_22, %c0_23], %15 {strides = array<i32>} : memref<2x10x16x128xbf16, #tpu.memory_space<vmem>>, vector<2x1x16x128xbf16>,
    %cst_24 = arith.constant 0.000000e+00 : bf16
    %18 = vector.broadcast %cst_24 : bf16 to vector<2x8x1x128xbf16>
    %c0_25 = arith.constant 0 : index
    %c1 = arith.constant 1 : index
    %c0_26 = arith.constant 0 : index
    %c0_27 = arith.constant 0 : index
    %19 = vector.load %arg15[%c0_25, %c1, %c0_26, %c0_27] : memref<2x10x16x128xbf16, #tpu.memory_space<vmem>>, vector<2x8x1x128xbf16>
    tpu.vector_store %arg15[%c0_25, %c1, %c0_26, %c0_27], %18 {strides = array<i32>} : memref<2x10x16x128xbf16, #tpu.memory_space<vmem>>, vector<2x8x1x128xbf16>,
    %c0_28 = arith.constant 0 : index
    %c1_29 = arith.constant 1 : index
    %c9_30 = arith.constant 9 : index
    %c0_31 = arith.constant 0 : index
    %20 = vector.load %arg15[%c0_28, %c1_29, %c9_30, %c0_31] : memref<2x10x16x128xbf16, #tpu.memory_space<vmem>>, vector<2x8x1x128xbf16>
    tpu.vector_store %arg15[%c0_28, %c1_29, %c9_30, %c0_31], %18 {strides = array<i32>} : memref<2x10x16x128xbf16, #tpu.memory_space<vmem>>, vector<2x8x1x128xbf16>,
    %21 = arith.truncf %14 : vector<128x128xf32> to vector<128x128xbf16>
    %22 = vector.shape_cast %21 : vector<128x128xbf16> to vector<2x8x8x128xbf16>
    %c0_32 = arith.constant 0 : index
    %c1_33 = arith.constant 1 : index
    %c1_34 = arith.constant 1 : index
    %c0_35 = arith.constant 0 : index
    %23 = vector.load %arg15[%c0_32, %c1_33, %c1_34, %c0_35] : memref<2x10x16x128xbf16, #tpu.memory_space<vmem>>, vector<2x8x8x128xbf16>
    tpu.vector_store %arg15[%c0_32, %c1_33, %c1_34, %c0_35], %22 {strides = array<i32>} : memref<2x10x16x128xbf16, #tpu.memory_space<vmem>>, vector<2x8x8x128xbf16>,
    %c0_36 = arith.constant 0 : index
    %c0_37 = arith.constant 0 : index
    %c0_38 = arith.constant 0 : index
    %c0_39 = arith.constant 0 : index
    %24 = vector.load %arg15[%c0_36, %c0_37, %c0_38, %c0_39] : memref<2x10x16x128xbf16, #tpu.memory_space<vmem>>, vector<2x8x8x128xbf16>
    %25 = vector.shape_cast %24 : vector<2x8x8x128xbf16> to vector<128x128xbf16>
    %c0_40 = arith.constant 0 : index
    %c0_41 = arith.constant 0 : index
    %c0_42 = arith.constant 0 : index
    %26 = vector.load %arg5[%c0_40, %c0_41, %c0_42] : memref<9x128x128xbf16, #tpu.memory_space<vmem>>, vector<1x128x128xbf16>
    %27 = vector.shape_cast %26 : vector<1x128x128xbf16> to vector<128x128xbf16>
    %cst_43 = arith.constant dense<0.000000e+00> : vector<128x128xf32>
    %28 = tpu.matmul %25, %27, %cst_43 {dimension_numbers = #tpu.dot_dimension_numbers<[1], [0], [0], [1], [0, 0, 1, 1], [], []>} : vector<128x128xbf16>, vector<128x128xbf16>, vector<128x128xf32> -> vector<128x128xf32>
    %c0_44 = arith.constant 0 : index
    %c0_45 = arith.constant 0 : index
    %c1_46 = arith.constant 1 : index
    %c0_47 = arith.constant 0 : index
    %29 = vector.load %arg15[%c0_44, %c0_45, %c1_46, %c0_47] : memref<2x10x16x128xbf16, #tpu.memory_space<vmem>>, vector<2x8x8x128xbf16>
    %30 = vector.shape_cast %29 : vector<2x8x8x128xbf16> to vector<128x128xbf16>
    %c1_48 = arith.constant 1 : index
    %c0_49 = arith.constant 0 : index
    %c0_50 = arith.constant 0 : index
    %31 = vector.load %arg5[%c1_48, %c0_49, %c0_50] : memref<9x128x128xbf16, #tpu.memory_space<vmem>>, vector<1x128x128xbf16>
    %32 = vector.shape_cast %31 : vector<1x128x128xbf16> to vector<128x128xbf16>
    %cst_51 = arith.constant dense<0.000000e+00> : vector<128x128xf32>
    %33 = tpu.matmul %30, %32, %cst_51 {dimension_numbers = #tpu.dot_dimension_numbers<[1], [0], [0], [1], [0, 0, 1, 1], [], []>} : vector<128x128xbf16>, vector<128x128xbf16>, vector<128x128xf32> -> vector<128x128xf32>
    %34 = arith.addf %28, %33 : vector<128x128xf32>
    %c0_52 = arith.constant 0 : index
    %c0_53 = arith.constant 0 : index
    %c2 = arith.constant 2 : index
    %c0_54 = arith.constant 0 : index
    %35 = vector.load %arg15[%c0_52, %c0_53, %c2, %c0_54] : memref<2x10x16x128xbf16, #tpu.memory_space<vmem>>, vector<2x8x8x128xbf16>
    %36 = vector.shape_cast %35 : vector<2x8x8x128xbf16> to vector<128x128xbf16>
    %c2_55 = arith.constant 2 : index
    %c0_56 = arith.constant 0 : index
    %c0_57 = arith.constant 0 : index
    %37 = vector.load %arg5[%c2_55, %c0_56, %c0_57] : memref<9x128x128xbf16, #tpu.memory_space<vmem>>, vector<1x128x128xbf16>
    %38 = vector.shape_cast %37 : vector<1x128x128xbf16> to vector<128x128xbf16>
    %cst_58 = arith.constant dense<0.000000e+00> : vector<128x128xf32>
    %39 = tpu.matmul %36, %38, %cst_58 {dimension_numbers = #tpu.dot_dimension_numbers<[1], [0], [0], [1], [0, 0, 1, 1], [], []>} : vector<128x128xbf16>, vector<128x128xbf16>, vector<128x128xf32> -> vector<128x128xf32>
    %40 = arith.addf %34, %39 : vector<128x128xf32>
    %c0_59 = arith.constant 0 : index
    %c1_60 = arith.constant 1 : index
    %c0_61 = arith.constant 0 : index
    %c0_62 = arith.constant 0 : index
    %41 = vector.load %arg15[%c0_59, %c1_60, %c0_61, %c0_62] : memref<2x10x16x128xbf16, #tpu.memory_space<vmem>>, vector<2x8x8x128xbf16>
    %42 = vector.shape_cast %41 : vector<2x8x8x128xbf16> to vector<128x128xbf16>
    %c3 = arith.constant 3 : index
    %c0_63 = arith.constant 0 : index
    %c0_64 = arith.constant 0 : index
    %43 = vector.load %arg5[%c3, %c0_63, %c0_64] : memref<9x128x128xbf16, #tpu.memory_space<vmem>>, vector<1x128x128xbf16>
    %44 = vector.shape_cast %43 : vector<1x128x128xbf16> to vector<128x128xbf16>
    %cst_65 = arith.constant dense<0.000000e+00> : vector<128x128xf32>
    %45 = tpu.matmul %42, %44, %cst_65 {dimension_numbers = #tpu.dot_dimension_numbers<[1], [0], [0], [1], [0, 0, 1, 1], [], []>} : vector<128x128xbf16>, vector<128x128xbf16>, vector<128x128xf32> -> vector<128x128xf32>
    %46 = arith.addf %40, %45 : vector<128x128xf32>
    %c0_66 = arith.constant 0 : index
    %c1_67 = arith.constant 1 : index
    %c1_68 = arith.constant 1 : index
    %c0_69 = arith.constant 0 : index
    %47 = vector.load %arg15[%c0_66, %c1_67, %c1_68, %c0_69] : memref<2x10x16x128xbf16, #tpu.memory_space<vmem>>, vector<2x8x8x128xbf16>
    %48 = vector.shape_cast %47 : vector<2x8x8x128xbf16> to vector<128x128xbf16>
    %c4 = arith.constant 4 : index
    %c0_70 = arith.constant 0 : index
    %c0_71 = arith.constant 0 : index
    %49 = vector.load %arg5[%c4, %c0_70, %c0_71] : memref<9x128x128xbf16, #tpu.memory_space<vmem>>, vector<1x128x128xbf16>
    %50 = vector.shape_cast %49 : vector<1x128x128xbf16> to vector<128x128xbf16>
    %cst_72 = arith.constant dense<0.000000e+00> : vector<128x128xf32>
    %51 = tpu.matmul %48, %50, %cst_72 {dimension_numbers = #tpu.dot_dimension_numbers<[1], [0], [0], [1], [0, 0, 1, 1], [], []>} : vector<128x128xbf16>, vector<128x128xbf16>, vector<128x128xf32> -> vector<128x128xf32>
    %52 = arith.addf %46, %51 : vector<128x128xf32>
    %c0_73 = arith.constant 0 : index
    %c1_74 = arith.constant 1 : index
    %c2_75 = arith.constant 2 : index
    %c0_76 = arith.constant 0 : index
    %53 = vector.load %arg15[%c0_73, %c1_74, %c2_75, %c0_76] : memref<2x10x16x128xbf16, #tpu.memory_space<vmem>>, vector<2x8x8x128xbf16>
    %54 = vector.shape_cast %53 : vector<2x8x8x128xbf16> to vector<128x128xbf16>
    %c5 = arith.constant 5 : index
    %c0_77 = arith.constant 0 : index
    %c0_78 = arith.constant 0 : index
    %55 = vector.load %arg5[%c5, %c0_77, %c0_78] : memref<9x128x128xbf16, #tpu.memory_space<vmem>>, vector<1x128x128xbf16>
    %56 = vector.shape_cast %55 : vector<1x128x128xbf16> to vector<128x128xbf16>
    %cst_79 = arith.constant dense<0.000000e+00> : vector<128x128xf32>
    %57 = tpu.matmul %54, %56, %cst_79 {dimension_numbers = #tpu.dot_dimension_numbers<[1], [0], [0], [1], [0, 0, 1, 1], [], []>} : vector<128x128xbf16>, vector<128x128xbf16>, vector<128x128xf32> -> vector<128x128xf32>
    %58 = arith.addf %52, %57 : vector<128x128xf32>
    %c0_80 = arith.constant 0 : index
    %c2_81 = arith.constant 2 : index
    %c0_82 = arith.constant 0 : index
    %c0_83 = arith.constant 0 : index
    %59 = vector.load %arg15[%c0_80, %c2_81, %c0_82, %c0_83] : memref<2x10x16x128xbf16, #tpu.memory_space<vmem>>, vector<2x8x8x128xbf16>
    %60 = vector.shape_cast %59 : vector<2x8x8x128xbf16> to vector<128x128xbf16>
    %c6 = arith.constant 6 : index
    %c0_84 = arith.constant 0 : index
    %c0_85 = arith.constant 0 : index
    %61 = vector.load %arg5[%c6, %c0_84, %c0_85] : memref<9x128x128xbf16, #tpu.memory_space<vmem>>, vector<1x128x128xbf16>
    %62 = vector.shape_cast %61 : vector<1x128x128xbf16> to vector<128x128xbf16>
    %cst_86 = arith.constant dense<0.000000e+00> : vector<128x128xf32>
    %63 = tpu.matmul %60, %62, %cst_86 {dimension_numbers = #tpu.dot_dimension_numbers<[1], [0], [0], [1], [0, 0, 1, 1], [], []>} : vector<128x128xbf16>, vector<128x128xbf16>, vector<128x128xf32> -> vector<128x128xf32>
    %64 = arith.addf %58, %63 : vector<128x128xf32>
    %c0_87 = arith.constant 0 : index
    %c2_88 = arith.constant 2 : index
    %c1_89 = arith.constant 1 : index
    %c0_90 = arith.constant 0 : index
    %65 = vector.load %arg15[%c0_87, %c2_88, %c1_89, %c0_90] : memref<2x10x16x128xbf16, #tpu.memory_space<vmem>>, vector<2x8x8x128xbf16>
    %66 = vector.shape_cast %65 : vector<2x8x8x128xbf16> to vector<128x128xbf16>
    %c7 = arith.constant 7 : index
    %c0_91 = arith.constant 0 : index
    %c0_92 = arith.constant 0 : index
    %67 = vector.load %arg5[%c7, %c0_91, %c0_92] : memref<9x128x128xbf16, #tpu.memory_space<vmem>>, vector<1x128x128xbf16>
    %68 = vector.shape_cast %67 : vector<1x128x128xbf16> to vector<128x128xbf16>
    %cst_93 = arith.constant dense<0.000000e+00> : vector<128x128xf32>
    %69 = tpu.matmul %66, %68, %cst_93 {dimension_numbers = #tpu.dot_dimension_numbers<[1], [0], [0], [1], [0, 0, 1, 1], [], []>} : vector<128x128xbf16>, vector<128x128xbf16>, vector<128x128xf32> -> vector<128x128xf32>
    %70 = arith.addf %64, %69 : vector<128x128xf32>
    %c0_94 = arith.constant 0 : index
    %c2_95 = arith.constant 2 : index
    %c2_96 = arith.constant 2 : index
    %c0_97 = arith.constant 0 : index
    %71 = vector.load %arg15[%c0_94, %c2_95, %c2_96, %c0_97] : memref<2x10x16x128xbf16, #tpu.memory_space<vmem>>, vector<2x8x8x128xbf16>
    %72 = vector.shape_cast %71 : vector<2x8x8x128xbf16> to vector<128x128xbf16>
    %c8 = arith.constant 8 : index
    %c0_98 = arith.constant 0 : index
    %c0_99 = arith.constant 0 : index
    %73 = vector.load %arg5[%c8, %c0_98, %c0_99] : memref<9x128x128xbf16, #tpu.memory_space<vmem>>, vector<1x128x128xbf16>
    %74 = vector.shape_cast %73 : vector<1x128x128xbf16> to vector<128x128xbf16>
    %cst_100 = arith.constant dense<0.000000e+00> : vector<128x128xf32>
    %75 = tpu.matmul %72, %74, %cst_100 {dimension_numbers = #tpu.dot_dimension_numbers<[1], [0], [0], [1], [0, 0, 1, 1], [], []>} : vector<128x128xbf16>, vector<128x128xbf16>, vector<128x128xf32> -> vector<128x128xf32>
    %76 = arith.addf %70, %75 : vector<128x128xf32>
    %77 = vector.broadcast %2 : vector<1x128xf32> to vector<128x128xf32>
    %78 = arith.mulf %76, %77 : vector<128x128xf32>
    %79 = vector.broadcast %3 : vector<1x128xf32> to vector<128x128xf32>
    %80 = arith.addf %78, %79 : vector<128x128xf32>
    %cst_101 = arith.constant 0.000000e+00 : f32
    %81 = vector.broadcast %cst_101 : f32 to vector<128x128xf32>
    %82 = arith.maximumf %80, %81 : vector<128x128xf32>
    %83 = arith.truncf %82 : vector<128x128xf32> to vector<128x128xbf16>
    %c0_102 = arith.constant 0 : index
    %c0_103 = arith.constant 0 : index
    %84 = vector.load %arg8[%c0_102, %c0_103] : memref<128x128xbf16, #tpu.memory_space<vmem>>, vector<128x128xbf16>
    %cst_104 = arith.constant dense<0.000000e+00> : vector<128x128xf32>
    %85 = tpu.matmul %83, %84, %cst_104 {dimension_numbers = #tpu.dot_dimension_numbers<[1], [0], [0], [1], [0, 0, 1, 1], [], []>} : vector<128x128xbf16>, vector<128x128xbf16>, vector<128x128xf32> -> vector<128x128xf32>
    %86 = vector.broadcast %4 : vector<1x128xf32> to vector<128x128xf32>
    %87 = arith.mulf %85, %86 : vector<128x128xf32>
    %88 = vector.broadcast %5 : vector<1x128xf32> to vector<128x128xf32>
    %89 = arith.addf %87, %88 : vector<128x128xf32>
    %c0_105 = arith.constant 0 : index
    %c0_106 = arith.constant 0 : index
    %90 = vector.load %arg11[%c0_105, %c0_106] : memref<128x128xbf16, #tpu.memory_space<vmem>>, vector<128x128xbf16>
    %cst_107 = arith.constant dense<0.000000e+00> : vector<128x128xf32>
    %91 = tpu.matmul %6, %90, %cst_107 {dimension_numbers = #tpu.dot_dimension_numbers<[1], [0], [0], [1], [0, 0, 1, 1], [], []>} : vector<128x128xbf16>, vector<128x128xbf16>, vector<128x128xf32> -> vector<128x128xf32>
    %c0_108 = arith.constant 0 : index
    %c0_109 = arith.constant 0 : index
    %92 = vector.load %arg12[%c0_108, %c0_109] : memref<1x128xf32, #tpu.memory_space<vmem>>, vector<1x128xf32>
    %93 = vector.broadcast %92 : vector<1x128xf32> to vector<128x128xf32>
    %94 = arith.mulf %91, %93 : vector<128x128xf32>
    %c0_110 = arith.constant 0 : index
    %c0_111 = arith.constant 0 : index
    %95 = vector.load %arg13[%c0_110, %c0_111] : memref<1x128xf32, #tpu.memory_space<vmem>>, vector<1x128xf32>
    %96 = vector.broadcast %95 : vector<1x128xf32> to vector<128x128xf32>
    %97 = arith.addf %94, %96 : vector<128x128xf32>
    %98 = arith.addf %89, %97 : vector<128x128xf32>
    %cst_112 = arith.constant 0.000000e+00 : f32
    %99 = vector.broadcast %cst_112 : f32 to vector<128x128xf32>
    %100 = arith.maximumf %98, %99 : vector<128x128xf32>
    %c0_113 = arith.constant 0 : index
    %c0_114 = arith.constant 0 : index
    %101 = vector.load %arg14[%c0_113, %c0_114] : memref<128x128xf32, #tpu.memory_space<vmem>>, vector<128x128xf32>
    tpu.vector_store %arg14[%c0_113, %c0_114], %100 {strides = array<i32>} : memref<128x128xf32, #tpu.memory_space<vmem>>, vector<128x128xf32>,
    return
  }
  func.func @transform_0(%arg0: i32) -> (i32, i32) {
    %c0_i32 = arith.constant 0 : i32
    %c0_i32_0 = arith.constant 0 : i32
    return %arg0, %c0_i32 : i32, i32
  }
  func.func @transform_1(%arg0: i32) -> (i32, i32) {
    %c0_i32 = arith.constant 0 : i32
    %c0_i32_0 = arith.constant 0 : i32
    %c0_i32_1 = arith.constant 0 : i32
    return %c0_i32, %c0_i32_0 : i32, i32
  }
  func.func @transform_2(%arg0: i32) -> (i32, i32) {
    %c0_i32 = arith.constant 0 : i32
    %c0_i32_0 = arith.constant 0 : i32
    %c0_i32_1 = arith.constant 0 : i32
    return %c0_i32, %c0_i32_0 : i32, i32
  }
  func.func @transform_3(%arg0: i32) -> (i32, i32) {
    %c0_i32 = arith.constant 0 : i32
    %c0_i32_0 = arith.constant 0 : i32
    %c0_i32_1 = arith.constant 0 : i32
    return %c0_i32, %c0_i32_0 : i32, i32
  }
  func.func @transform_4(%arg0: i32) -> (i32, i32, i32) {
    %c0_i32 = arith.constant 0 : i32
    %c0_i32_0 = arith.constant 0 : i32
    %c0_i32_1 = arith.constant 0 : i32
    %c0_i32_2 = arith.constant 0 : i32
    return %c0_i32, %c0_i32_0, %c0_i32_1 : i32, i32, i32
  }
  func.func @transform_5(%arg0: i32) -> (i32, i32) {
    %c0_i32 = arith.constant 0 : i32
    %c0_i32_0 = arith.constant 0 : i32
    %c0_i32_1 = arith.constant 0 : i32
    return %c0_i32, %c0_i32_0 : i32, i32
  }
  func.func @transform_6(%arg0: i32) -> (i32, i32) {
    %c0_i32 = arith.constant 0 : i32
    %c0_i32_0 = arith.constant 0 : i32
    %c0_i32_1 = arith.constant 0 : i32
    return %c0_i32, %c0_i32_0 : i32, i32
  }
  func.func @transform_7(%arg0: i32) -> (i32, i32) {
    %c0_i32 = arith.constant 0 : i32
    %c0_i32_0 = arith.constant 0 : i32
    %c0_i32_1 = arith.constant 0 : i32
    return %c0_i32, %c0_i32_0 : i32, i32
  }
  func.func @transform_8(%arg0: i32) -> (i32, i32) {
    %c0_i32 = arith.constant 0 : i32
    %c0_i32_0 = arith.constant 0 : i32
    %c0_i32_1 = arith.constant 0 : i32
    return %c0_i32, %c0_i32_0 : i32, i32
  }
  func.func @transform_9(%arg0: i32) -> (i32, i32) {
    %c0_i32 = arith.constant 0 : i32
    %c0_i32_0 = arith.constant 0 : i32
    %c0_i32_1 = arith.constant 0 : i32
    return %c0_i32, %c0_i32_0 : i32, i32
  }
  func.func @transform_10(%arg0: i32) -> (i32, i32) {
    %c0_i32 = arith.constant 0 : i32
    %c0_i32_0 = arith.constant 0 : i32
    %c0_i32_1 = arith.constant 0 : i32
    return %c0_i32, %c0_i32_0 : i32, i32
  }
  func.func @transform_11(%arg0: i32) -> (i32, i32) {
    %c0_i32 = arith.constant 0 : i32
    %c0_i32_0 = arith.constant 0 : i32
    %c0_i32_1 = arith.constant 0 : i32
    return %c0_i32, %c0_i32_0 : i32, i32
  }
  func.func @transform_12(%arg0: i32) -> (i32, i32) {
    %c0_i32 = arith.constant 0 : i32
    %c0_i32_0 = arith.constant 0 : i32
    %c0_i32_1 = arith.constant 0 : i32
    return %c0_i32, %c0_i32_0 : i32, i32
  }
  func.func @transform_13(%arg0: i32) -> (i32, i32) {
    %c0_i32 = arith.constant 0 : i32
    %c0_i32_0 = arith.constant 0 : i32
    return %arg0, %c0_i32 : i32, i32
  }
}

</mosaic_0001>

<bundles_post_ra>
// kernel: tpu_custom_call.1
= control target key start
LH: loop header
LB: loop body
LE: loop exit
PB: predicated region body
PF: predicated region fallthrough
CT: control target
= control target key end

     0   :  { %s7776_s0 = inlined_call_operand.hbm [shape: bf16[512,128], index: 0, kind: input, shape index: {}]   ;;  %s7777_s1 = inlined_call_operand.hbm [shape: bf16[128,128], index: 1, kind: input, shape index: {}]   ;;  %s7778_s2 = inlined_call_operand.vmem [shape: f32[1,128], index: 2, kind: input, shape index: {}]   ;;  %s7779_s3 = inlined_call_operand.vmem [shape: f32[1,128], index: 3, kind: input, shape index: {}]   ;;  %s7780_s4 = inlined_call_operand.hbm [shape: bf16[9,128,128], index: 4, kind: input, shape index: {}]   ;;  %s7781_s5 = inlined_call_operand.vmem [shape: f32[1,128], index: 5, kind: input, shape index: {}]   ;;  %s7782_s6 = inlined_call_operand.vmem [shape: f32[1,128], index: 6, kind: input, shape index: {}]   ;;  %s7783_s7 = inlined_call_operand.hbm [shape: bf16[128,128], index: 7, kind: input, shape index: {}]   ;;  %s7784_s8 = inlined_call_operand.vmem [shape: f32[1,128], index: 8, kind: input, shape index: {}]   ;;  %s7785_s9 = inlined_call_operand.vmem [shape: f32[1,128], index: 9, kind: input, shape index: {}]   ;;  %s7786_s10 = inlined_call_operand.hbm [shape: bf16[128,128], index: 10, kind: input, shape index: {}]   ;;  %s7787_s11 = inlined_call_operand.vmem [shape: f32[1,128], index: 11, kind: input, shape index: {}]   ;;  %s7788_s12 = inlined_call_operand.vmem [shape: f32[1,128], index: 12, kind: input, shape index: {}]   ;;  %s7789_s13 = inlined_call_operand.hbm [shape: f32[512,128], index: 13, kind: output, shape index: {}]  }
   0x1   :  { %7798 = sst [smem:[#allocation40_spill]] %s7777_s1 }
   0x2   :  { %7799 = sst [smem:[#allocation41_spill]] %s7780_s4 }
   0x3   :  { %7800 = sst [smem:[#allocation42_spill]] %s7783_s7 }
   0x4   :  { %7801 = sst [smem:[#allocation43_spill]] %s7786_s10 }
   0x5   :  { %18 = vsyncpa [#allocation4], 0 }
   0x6   :  { %20 = vsyncpa [#allocation4 + $0x1], 0 }
   0x7   :  { %21 = vsyncpa [#allocation7], 0 }
   0x8   :  { %22 = vsyncpa [#allocation10], 0 }
   0x9   :  { %23 = vsyncpa [#allocation5], 0 }
   0xa   :  { %25 = vsyncpa [#allocation5 + $0x1], 0  ;;  %s6308_s25 = smov 0   ;;  %s6310_s26 = smov 0  }
   0xb   :  { %s6312_s27 = smov 0   ;;  %s6314_s28 = smov 0  }
   0xc LB: > { %7802 = sst [smem:[#allocation17_spill]] %s6213_s25  ;;  %s6329_s29 = sadd.s32 4294967295, %s6225_s28   ;;  %s6225_s28 = sphi %s6314_s28, %s7881_s28   ;;  %s6221_s27 = sphi %s6312_s27, %s7880_s27   ;;  %s6217_s26 = sphi %s6310_s26, %s7879_s26   ;;  %s6213_s25 = sphi %s6308_s25, %s7878_s25  }
   0xd   : > { %s4929_s30 = sadd.s32 4294967294, %s6225_s28   ;;  %p51_p0 = scmp.ne.s32.totalorder %s6217_s26, %s6213_s25 }
   0xe   : > { %p7792_p1 = scmp.eq.s32.totalorder %s6329_s29, 0  ;;  %p327_p2 = scmp.eq.s32.totalorder %s6329_s29, 3 }
   0xf   : > { %p333_p3 = scmp.eq.s32.totalorder %s4929_s30, 3  ;;  %p4930_p5 = scmp.ge.s32.totalorder %s6225_s28, 1 }
  0x10   : > { %p6338_p4 = por %p7792_p1, %p51_p0  ;;  %p340_p7 = scmp.lt.s32.totalorder %s6225_s28, 5 }
  0x11   : > { %p6343_p6 = por %p333_p3, %p51_p0  ;;  %s6227_s17 = smov [#allocation6]  }
  0x12   : > { %s7803_s14 = scalar_select %p6338_p4, 1, 0 }
  0x13   : > { %s7804_s15 = scalar_select %p6343_p6, 1, 0 }
  0x14   : > { %p6348_p8 = pnand %p4930_p5, %p340_p7  ;;  %s352_s18 = sshll.u32 %s6227_s17, 4  ;;  %s353_s18 = int_to_ptr.vmem [resolvable:$true] %s352_s18 }
  0x15   : > { %7805 = sst [smem:[#allocation18_spill]] %s7804_s15  ;;  %s6228_s20 = smov [#allocation9]  }
  0x16   : > { %s7806_s16 = scalar_select %p6348_p8, 1, 0 }
  0x17   : > { %p5813_p9 = pneg %p6348_p8  ;;  %s390_s21 = sshll.u32 %s6228_s20, 4  ;;  %s391_s21 = int_to_ptr.vmem [resolvable:$true] %s390_s21 }
  0x18   : > { %s6229_s22 = smov [#allocation8]   ;;  %s6032_s24 = scalar_lea.vmem %s353_s18, 1024 }
  0x19   : > { %p6356_p10 = pnand %p5813_p9, %p7792_p1  ;;  %s371_s23 = sshll.u32 %s6229_s22, 4  ;;  %s372_s23 = int_to_ptr.vmem [resolvable:$true] %s371_s23 }
  0x1a   : > { %p6033_p12 = scmp.ne.s32.totalorder %s353_s18, %s6032_s24  ;;  %p6040_p3 = scmp.lt.s32.totalorder %s353_s18, %s353_s18 }
  0x1b   : > { %p6023_p11 = pneg %p6356_p10  ;;  %p6041_p5 = scmp.lt.s32.totalorder %s6032_s24, %s6032_s24 }
  0x1d   : > { %p6035_p13 = pnand %p6033_p12, %p6023_p11  ;;  %p6042_p7 = por %p6041_p5, %p6040_p3 }
  0x1f   : > { %p6036_p0 = pneg %p6035_p13 }
  0x21   : > { %p6043_p9 = pnand %p6042_p7, %p6036_p0 }
  0x23   : > { %6046 = shalt.err (!%p6043_p9)
}
  0x24   : > { %s7793_s30 = smov 64   ;;  %s7794_s17 = smov 4  }
  0x25   : > { %s7808_s1 = sld [smem:[#allocation40_spill]]  ;;  %s6058_s15 = scalar_lea.vmem %s391_s21, 1024 }
  0x26   : > { %p6059_p12 = scmp.ne.s32.totalorder %s391_s21, %s6058_s15  ;;  %p6066_p0 = scmp.lt.s32.totalorder %s391_s21, %s391_s21 }
  0x27   : > { %p6067_p5 = scmp.lt.s32.totalorder %s6058_s15, %s6058_s15 }
  0x28   : > { %p6061_p13 = pnand %p6059_p12, %p6023_p11 }
  0x29   : > { %p6068_p7 = por %p6067_p5, %p6066_p0 }
  0x2a   : > { %p6062_p3 = pneg %p6061_p13 }
  0x2b   : > { %5816 = dma.hbm_to_vmem [thread:$0]  (!%p6356_p10), %s7808_s1, 1024, %s353_s18, [#allocation7], %s7793_s30, %s7793_s30, %s7794_s17  }
  0x2c   : > { %p6069_p9 = pnand %p6068_p7, %p6062_p3 }
  0x2e   : > { %6072 = shalt.err (!%p6069_p9)
}
  0x2f   : > { %s7809_s7 = sld [smem:[#allocation42_spill]]  ;;  %s6084_s18 = scalar_lea.vmem %s372_s23, 9216 }
  0x30   : > { %p6085_p1 = scmp.ne.s32.totalorder %s372_s23, %s6084_s18  ;;  %p6092_p0 = scmp.lt.s32.totalorder %s372_s23, %s372_s23 }
  0x31   : > { %p6093_p3 = scmp.lt.s32.totalorder %s6084_s18, %s6084_s18 }
  0x32   : > { %p6087_p12 = pnand %p6085_p1, %p6023_p11 }
  0x33   : > { %p6094_p5 = por %p6093_p3, %p6092_p0 }
  0x34   : > { %p6088_p13 = pneg %p6087_p12 }
  0x35   : > { %5822 = dma.hbm_to_vmem [thread:$0]  (!%p6356_p10), %s7809_s7, 1024, %s391_s21, [#allocation10], %s7793_s30, %s7793_s30, %s7794_s17  }
  0x36   : > { %p6095_p7 = pnand %p6094_p5, %p6088_p13 }
  0x38   : > { %6098 = shalt.err (!%p6095_p7)
}
  0x39   : > { %s7810_s4 = sld [smem:[#allocation41_spill]]  ;;  %s6232_s21 = smov [#allocation11]  }
  0x3a   : > { %s409_s20 = sshll.u32 %s6232_s21, 4  ;;  %s410_s20 = int_to_ptr.vmem [resolvable:$true] %s409_s20 }
  0x3b   : > { %s6110_s22 = scalar_lea.vmem %s410_s20, 1024  ;;  %p6118_p13 = scmp.lt.s32.totalorder %s410_s20, %s410_s20 }
  0x3c   : > { %p6111_p1 = scmp.ne.s32.totalorder %s410_s20, %s6110_s22  ;;  %p6119_p0 = scmp.lt.s32.totalorder %s6110_s22, %s6110_s22 }
  0x3e   : > { %p6113_p9 = pnand %p6111_p1, %p6023_p11  ;;  %p6120_p3 = por %p6119_p0, %p6118_p13 }
  0x3f   : > { %5819 = dma.hbm_to_vmem [thread:$0]  (!%p6356_p10), %s7810_s4, 9216, %s372_s23, [#allocation7], %s7793_s30, %s7793_s30, %s7794_s17  }
  0x40   : > { %p6114_p12 = pneg %p6113_p9 }
  0x42   : > { %p6121_p5 = pnand %p6120_p3, %p6114_p12 }
  0x44   : > { %6124 = shalt.err (!%p6121_p5)
}
  0x45   : > { %s7811_s10 = sld [smem:[#allocation43_spill]]  ;;  %s6407_s18 = sadd.s32 1, %s6225_s28  }
  0x46   : > { %s38_s19 = sadd.s32 1, %s6221_s27  ;;  %s35_s25 = ssub.s32 %s6225_s28, %s6407_s18 }
  0x47   : > { %p45_p11 = scmp.ne.s32.totalorder %s6221_s27, %s6217_s26  ;;  %p36_p7 = scmp.eq.s32.totalorder %s35_s25, 0 }
  0x48   : > { %p46_p1 = scmp.eq.s32.totalorder %s6225_s28, 0  ;;  %p5838_p12 = scmp.lt.s32.totalorder %s6225_s28, 4 }
  0x49   : > { %p6417_p9 = por %p327_p2, %p45_p11  ;;  %s429_s22 = sand.u32 1, %s6221_s27  }
  0x4a   : > { %s6423_s21 = scalar_select %p36_p7, %s6221_s27, %s38_s19  }
  0x4b   : > { %5825 = dma.hbm_to_vmem [thread:$0]  (!%p6356_p10), %s7811_s10, 1024, %s410_s20, [#allocation10], %s7793_s30, %s7793_s30, %s7794_s17  }
  0x4c   : > { %s7812_s15 = scalar_select %p6417_p9, 1, 0 }
  0x4d   : > { %7813 = sst [smem:[#allocation19_spill]] %s6423_s21  ;;  %p47_p13 = por %p46_p1, %p45_p11 }
  0x4e   : > { %s4936_s23 = sshll.u32 %s429_s22, 6  ;;  %s5199_s20 = sshll.u32 %s6225_s28, 10 }
  0x4f   : > { %s6430_s17 = scalar_lea.hbm %s7776_s0, %s5199_s20  ;;  %s433_s25 = scalar_lea.vmem [#allocation3], %s4936_s23 }
  0x50   : > { %s440_s1 = sshll.u32 %s433_s25, 4  ;;  %p6434_p2 = pnand %p5838_p12, %p47_p13  ;;  %s6432_s1 = int_to_ptr.vmem [resolvable:$true] %s440_s1 }
  0x51   : > { %s6438_s19 = scalar_lea.sflag [#allocation4], %s429_s22  ;;  %s6125_s7 = scalar_lea.hbm %s6430_s17, 1024 }
  0x52   : > { %p6126_p10 = scmp.ne.s32.totalorder %s6430_s17, %s6125_s7  ;;  %p6127_p0 = pneg %p6434_p2 }
  0x53   : > { %s6130_s23 = scalar_lea.hbm %s7776_s0, 4096  ;;  %p6131_p11 = scmp.lt.s32.totalorder %s6430_s17, %s7776_s0 }
  0x54   : > { %p6128_p3 = pnand %p6127_p0, %p6126_p10  ;;  %p6132_p7 = scmp.lt.s32.totalorder %s6130_s23, %s6125_s7 }
  0x56   : > { %p6129_p5 = pneg %p6128_p3  ;;  %p6133_p1 = por %p6132_p7, %p6131_p11 }
  0x58   : > { %p6134_p12 = pnand %p6133_p1, %p6129_p5 }
  0x5a   : > { %6137 = shalt.err (!%p6134_p12)
}
  0x5b   : > { %s6138_s22 = scalar_lea.vmem %s6432_s1, 1024  ;;  %s6233_s10 = smov [#allocation3]  }
  0x5c   : > { %p6139_p13 = scmp.ne.s32.totalorder %s6432_s1, %s6138_s22  ;;  %s6143_s21 = sshll.u32 %s6233_s10, 4  ;;  %s6144_s21 = int_to_ptr.vmem [resolvable:$false] %s6143_s21 }
  0x5d   : > { %s6145_s30 = scalar_lea.vmem %s6144_s21, 2048  ;;  %p6146_p3 = scmp.lt.s32.totalorder %s6432_s1, %s6144_s21 }
  0x5e   : > { %p6141_p6 = pnand %p6139_p13, %p6127_p0  ;;  %p6147_p9 = scmp.lt.s32.totalorder %s6145_s30, %s6138_s22 }
  0x60   : > { %p6142_p10 = pneg %p6141_p6  ;;  %p6148_p4 = por %p6147_p9, %p6146_p3 }
  0x62   : > { %p6149_p8 = pnand %p6148_p4, %p6142_p10 }
  0x64   : > { %6152 = shalt.err (!%p6149_p8)
}
  0x65   : > { %s7815_s7 = smov 4   ;;  %s7816_s20 = smov 64  }
  0x66   : > { %5829 = dma.hbm_to_vmem [thread:$0]  (!%p6434_p2), %s6430_s17, 1024, %s6432_s1, %s6438_s19, %s7816_s20, %s7816_s20, %s7815_s7  }
  0x67   : > { %p7817_p6 = scmp.ne.s32.totalorder %s7806_s16, 0 }
  0x69   : > { %452 = sbr.rel (%p7817_p6) target bundleno = 1009 (0x3f1), region = 72 }
  0x6e   : > { %s6465_s10 = sand.u32 1, %s6217_s26   ;;  %p7818_p4 = scmp.ne.s32.totalorder %s7803_s14, 0 }
  0x6f   : > { %s4940_s21 = sshll.u32 %s6465_s10, 6  ;;  %s455_s23 = scalar_lea.sflag [#allocation4], %s6465_s10 }
  0x70   : > { %s6469_s24 = scalar_lea.vmem [#allocation3], %s4940_s21 }
  0x71   : > { %6196 = dma.done.wait (%p7818_p4), %s455_s23, 1024  }
  0x72   : > { %6198 = vsyncadd (%p7818_p4), %s455_s23, 4294966272  ;;  %p7819_p8 = scmp.eq.s32.totalorder %s6329_s29, 0 }
  0x74   : > { %6200 = dma.done.wait (%p7819_p8), [#allocation7], 10240   ;;  %p7820_p9 = pmov %p7819_p8 }
  0x75   : > { %p7821_p2 = pmov %p7819_p8 }
  0x76   : > { %6202 = vsyncadd (%p7820_p9), [#allocation7], 4294957056 }
  0x77   : > { %6204 = dma.done.wait (%p7821_p2), [#allocation10], 2048   ;;  %p7822_p0 = pmov %p7821_p2 }
  0x78   : > { %v5885_v0 = vld [vmem:[#allocation6 + $0x38] sm:$0xff]   ;;  %v5886_v1 = vld [vmem:[#allocation6 + $0x30] sm:$0xff]   ;;  %v5887_v2 = vld [vmem:[#allocation6 + $0x28] sm:$0xff]   ;;  %vm821_vm0 = vcmask 1040384   ;;  %vm822_vm1 = vsmask.f32 256 }
  0x79   : > { %6206 = vsyncadd (%p7822_p0), [#allocation10], 4294965248  ;;  %5409 = vmatprep.subr.bf16.mxu0 %v5885_v0  ;;  %v5888_v3 = vld [vmem:[#allocation6 + $0x20] sm:$0xff]   ;;  %v5889_v5 = vld [vmem:[#allocation6 + $0x18] sm:$0xff]   ;;  %vm872_vm2 = vsmask.f32 7938 }
  0x7a   : > { %5410 = vmatpush3.bf16.msra.mxu0 %v5885_v0  ;;  %v5893_v4 = vld [vmem:[%s6469_s24] sm:$0xff]   ;;  %v5890_v6 = vld [vmem:[#allocation6 + $0x10] sm:$0xff]   ;;  %v5891_v7 = vld [vmem:[#allocation6 + $0x8] sm:$0xff]   ;;  %v6234_v0 = vmov 0   ;;  %vm1276_vm5 = vsmask.f32 3328 }
  0x7b   : > { %5411 = vmatprep.subr.bf16.mxu0 %v5886_v1  ;;  %5425 = vmatprep.mubr.bf16.mxu0 %v5893_v4  ;;  %v5892_v8 = vld [vmem:[#allocation6] sm:$0xff]   ;;  %v5894_v9 = vld [vmem:[%s6469_s24 + $0x8] sm:$0xff]   ;;  %v5895_v10 = vld [vmem:[%s6469_s24 + $0x10] sm:$0xff]   ;;  %811 = vst [vmem:[#allocation2] sm:$0xf] %v6234_v0  ;;  %vm1938_vm7 = vcmask 1042432  }
  0x7c   : > { %v5896_v11 = vld [vmem:[%s6469_s24 + $0x18] sm:$0xff]   ;;  %v5897_v12 = vld [vmem:[%s6469_s24 + $0x20] sm:$0xff]   ;;  %v5898_v13 = vld [vmem:[%s6469_s24 + $0x28] sm:$0xff]   ;;  %812 = vst [vmem:[#allocation2 + $0x4] sm:$0xf] %v6234_v0  ;;  %vm1939_vm8 = vcmask 1046532  }
  0x7d   : > { %v5899_v14 = vld [vmem:[%s6469_s24 + $0x30] sm:$0xff]   ;;  %v5900_v15 = vld [vmem:[%s6469_s24 + $0x38] sm:$0xff]   ;;  %vm6491_vm3 = vmand %vm821_vm0, %vm822_vm1  ;;  %813 = vst [vmem:[#allocation2 + $0x50] sm:$0xf] %v6234_v0  ;;  %vm1277_vm6 = vsmask.f32 7440 }
  0x7e   : > { %5412 = vmatpush3.bf16.msra.mxu0 %v5886_v1  ;;  %v5901_v16 = vld [vmem:[#allocation8 + $0x38] sm:$0xff]   ;;  %v5902_v17 = vld [vmem:[#allocation8 + $0x30] sm:$0xff]   ;;  %vm6498_vm4 = vmand %vm821_vm0, %vm872_vm2  ;;  %814 = vst [vmem:[#allocation2 + $0x54] sm:$0xf] %v6234_v0  ;;  %vm1130_vm11 = vcmask 1043456   ;;  %s4945_s14 = sshll.u32 %s6465_s10, 7 }
  0x7f   : > { %5413 = vmatprep.subr.bf16.mxu0 %v5887_v2  ;;  %v830_v19 = vld [vmem:[#allocation2 + $0x18] sm:$0x1]  ;;  %v880_v20 = vld [vmem:[#allocation2 + $0x1c] sm:$0x1]  ;;  %v824_v24 = vld [vmem:[#allocation2 + $0x8] sm:$0x1] }
  0x80   : > { %v831_v21 = vsel %vm6491_vm3, 0, %v830_v19  ;;  %v881_v23 = vsel %vm6498_vm4, 0, %v880_v20  ;;  %v874_v25 = vld [vmem:[#allocation2 + $0xc] sm:$0x1]  ;;  %v825_v26 = vsel %vm6491_vm3, 0, %v824_v24  ;;  %v5903_v31 = vld [vmem:[#allocation8 + $0x78] sm:$0xff]   ;;  %vm6606_vm9 = vmor %vm1276_vm5, %vm1277_vm6 }
  0x81   : > { %832 = vst [vmem:[#allocation2 + $0x18] sm:$0x1] %v831_v21  ;;  %882 = vst [vmem:[#allocation2 + $0x1c] sm:$0x1] %v881_v23  ;;  %v875_v27 = vsel %vm6498_vm4, 0, %v874_v25  ;;  %v5904_v28 = vld [vmem:[#allocation8 + $0x28] sm:$0xff]   ;;  %5441 = vmatprep.subr.bf16.mxu1 %v5903_v31 }
  0x82   : > { %5414 = vmatpush3.bf16.msra.mxu0 %v5887_v2  ;;  %826 = vst [vmem:[#allocation2 + $0x8] sm:$0x1] %v825_v26  ;;  %876 = vst [vmem:[#allocation2 + $0xc] sm:$0x1] %v875_v27  ;;  %v833_v29 = vld [vmem:[#allocation2 + $0x20] sm:$0x1]  ;;  %5442 = vmatpush3.bf16.msra.mxu1 %v5903_v31 }
  0x83   : > { %5415 = vmatprep.subr.bf16.mxu0 %v5888_v3  ;;  %v883_v30 = vld [vmem:[#allocation2 + $0x24] sm:$0x1]  ;;  %v834_v32 = vsel %vm6491_vm3, 0, %v833_v29  ;;  %v827_v34 = vld [vmem:[#allocation2 + $0x10] sm:$0x1]  ;;  %v5908_v48 = vld [vmem:[#allocation8 + $0x18] sm:$0xff]  }
  0x84   : > { %v884_v33 = vsel %vm6498_vm4, 0, %v883_v30  ;;  %835 = vst [vmem:[#allocation2 + $0x20] sm:$0x1] %v834_v32  ;;  %v877_v35 = vld [vmem:[#allocation2 + $0x14] sm:$0x1]  ;;  %v828_v36 = vsel %vm6491_vm3, 0, %v827_v34  ;;  %vm6612_vm10 = vmor %vm1938_vm7, %vm1939_vm8 }
  0x85   : > { %885 = vst [vmem:[#allocation2 + $0x24] sm:$0x1] %v884_v33  ;;  %v878_v37 = vsel %vm6498_vm4, 0, %v877_v35  ;;  %829 = vst [vmem:[#allocation2 + $0x10] sm:$0x1] %v828_v36  ;;  %v5906_v41 = vld [vmem:[#allocation8 + $0x20] sm:$0xff]  }
  0x86   : > { %5416 = vmatpush3.bf16.msra.mxu0 %v5888_v3  ;;  %879 = vst [vmem:[#allocation2 + $0x14] sm:$0x1] %v878_v37  ;;  %v842_v38 = vld [vmem:[#allocation2 + $0x38] sm:$0x1]  ;;  %v892_v40 = vld [vmem:[#allocation2 + $0x3c] sm:$0x1]  ;;  %vm6636_vm12 = vmand %vm1130_vm11, %vm872_vm2 }
  0x87   : > { %5417 = vmatprep.subr.bf16.mxu0 %v5889_v5  ;;  %v843_v39 = vsel %vm6491_vm3, 0, %v842_v38  ;;  %v893_v42 = vsel %vm6498_vm4, 0, %v892_v40  ;;  %v5905_v43 = vld [vmem:[#allocation8 + $0x70] sm:$0xff]   ;;  %v836_v44 = vld [vmem:[#allocation2 + $0x28] sm:$0x1]  ;;  %v5909_v58 = vld [vmem:[#allocation8 + $0x60] sm:$0xff]  }
  0x88   : > { %844 = vst [vmem:[#allocation2 + $0x38] sm:$0x1] %v843_v39  ;;  %894 = vst [vmem:[#allocation2 + $0x3c] sm:$0x1] %v893_v42  ;;  %v886_v45 = vld [vmem:[#allocation2 + $0x2c] sm:$0x1]  ;;  %5443 = vmatprep.subr.bf16.mxu1 %v5905_v43 }
  0x89   : > { %v837_v46 = vsel %vm6491_vm3, 0, %v836_v44  ;;  %v887_v47 = vsel %vm6498_vm4, 0, %v886_v45  ;;  %5444 = vmatpush3.bf16.msra.mxu1 %v5905_v43  ;;  %v845_v49 = vld [vmem:[#allocation2 + $0x40] sm:$0x1]  ;;  %v895_v51 = vld [vmem:[#allocation2 + $0x44] sm:$0x1] }
  0x8a   : > { %5418 = vmatpush3.bf16.msra.mxu0 %v5889_v5  ;;  %838 = vst [vmem:[#allocation2 + $0x28] sm:$0x1] %v837_v46  ;;  %888 = vst [vmem:[#allocation2 + $0x2c] sm:$0x1] %v887_v47  ;;  %v846_v50 = vsel %vm6491_vm3, 0, %v845_v49  ;;  %v5907_v52 = vld [vmem:[#allocation8 + $0x68] sm:$0xff]  }
  0x8b   : > { %5419 = vmatprep.subr.bf16.mxu0 %v5890_v6  ;;  %847 = vst [vmem:[#allocation2 + $0x40] sm:$0x1] %v846_v50  ;;  %v896_v53 = vsel %vm6498_vm4, 0, %v895_v51  ;;  %v839_v54 = vld [vmem:[#allocation2 + $0x30] sm:$0x1]  ;;  %5445 = vmatprep.subr.bf16.mxu1 %v5907_v52  ;;  %v6560_v31 = vld [vmem:[#allocation8 + $0xf8] sm:$0xff]  }
  0x8c   : > { %897 = vst [vmem:[#allocation2 + $0x44] sm:$0x1] %v896_v53  ;;  %v889_v55 = vld [vmem:[#allocation2 + $0x34] sm:$0x1]  ;;  %v840_v56 = vsel %vm6491_vm3, 0, %v839_v54  ;;  %v5916_v32 = vld [vmem:[#allocation8 + $0x48] sm:$0xff]  }
  0x8d   : > { %v890_v57 = vsel %vm6498_vm4, 0, %v889_v55  ;;  %5446 = vmatpush3.bf16.msra.mxu1 %v5907_v52  ;;  %v5910_v59 = vld [vmem:[#allocation8 + $0x10] sm:$0xff]   ;;  %841 = vst [vmem:[#allocation2 + $0x30] sm:$0x1] %v840_v56  ;;  %v854_v60 = vld [vmem:[#allocation2 + $0x68] sm:$0x1] }
  0x8e   : > { %5420 = vmatpush3.bf16.msra.mxu0 %v5890_v6  ;;  %891 = vst [vmem:[#allocation2 + $0x34] sm:$0x1] %v890_v57  ;;  %v855_v61 = vsel %vm6491_vm3, 0, %v854_v60  ;;  %v904_v62 = vld [vmem:[#allocation2 + $0x6c] sm:$0x1]  ;;  %5447 = vmatprep.subr.bf16.mxu1 %v5909_v58  ;;  %v5919_v36 = vld [vmem:[#allocation8 + $0x40] sm:$0xff]  }
  0x8f   : > { %5421 = vmatprep.subr.bf16.mxu0 %v5891_v7  ;;  %856 = vst [vmem:[#allocation2 + $0x68] sm:$0x1] %v855_v61  ;;  %v905_v63 = vsel %vm6498_vm4, 0, %v904_v62  ;;  %816 = vst [vmem:[#allocation2 + $0x48] sm:$0xf] %v6234_v0  ;;  %v6567_v38 = vld [vmem:[#allocation8 + $0xb8] sm:$0xff]  }
  0x90   : > { %817 = vst [vmem:[#allocation2 + $0x4c] sm:$0xf] %v6234_v0  ;;  %818 = vst [vmem:[#allocation2 + $0x98] sm:$0xf] %v6234_v0  ;;  %v848_v1 = vld [vmem:[#allocation2 + $0x58] sm:$0x1] }
  0x91   : > { %819 = vst [vmem:[#allocation2 + $0x9c] sm:$0xf] %v6234_v0  ;;  %906 = vst [vmem:[#allocation2 + $0x6c] sm:$0x1] %v905_v63  ;;  %v898_v2 = vld [vmem:[#allocation2 + $0x5c] sm:$0x1]  ;;  %5448 = vmatpush3.bf16.msra.mxu1 %v5909_v58 }
  0x92   : > { %5422 = vmatpush3.bf16.msra.mxu0 %v5891_v7  ;;  %v849_v3 = vsel %vm6491_vm3, 0, %v848_v1  ;;  %v899_v4 = vsel %vm6498_vm4, 0, %v898_v2  ;;  %v857_v5 = vld [vmem:[#allocation2 + $0x70] sm:$0x1]  ;;  %v907_v6 = vld [vmem:[#allocation2 + $0x74] sm:$0x1] }
  0x93   : > { %5423 = vmatprep.subr.bf16.mxu0 %v5892_v8  ;;  %850 = vst [vmem:[#allocation2 + $0x58] sm:$0x1] %v849_v3  ;;  %900 = vst [vmem:[#allocation2 + $0x5c] sm:$0x1] %v899_v4  ;;  %v858_v7 = vsel %vm6491_vm3, 0, %v857_v5  ;;  %s7660_s16 = scalar_lea.vmem [#allocation12], %s4945_s14 }
  0x94   : > { %859 = vst [vmem:[#allocation2 + $0x70] sm:$0x1] %v858_v7  ;;  %v916_v19 = vld [vmem:[#allocation2 + $0x8c] sm:$0x1]  ;;  %v860_v23 = vld [vmem:[#allocation2 + $0x78] sm:$0x1] }
  0x95   : > { %v917_v21 = vsel %vm6498_vm4, 0, %v916_v19  ;;  %v910_v24 = vld [vmem:[#allocation2 + $0x7c] sm:$0x1]  ;;  %v861_v25 = vsel %vm6491_vm3, 0, %v860_v23  ;;  %v869_v27 = vld [vmem:[#allocation2 + $0x90] sm:$0x1] }
  0x96   : > { %5424 = vmatpush3.bf16.msra.mxu0 %v5892_v8  ;;  %v908_v8 = vsel %vm6498_vm4, 0, %v907_v6  ;;  %918 = vst [vmem:[#allocation2 + $0x8c] sm:$0x1] %v917_v21  ;;  %v911_v26 = vsel %vm6498_vm4, 0, %v910_v24  ;;  %862 = vst [vmem:[#allocation2 + $0x78] sm:$0x1] %v861_v25 }
  0x97   : > { %5473 = vmatprep.subr.bf16.mxu0 %v5901_v16  ;;  %909 = vst [vmem:[#allocation2 + $0x74] sm:$0x1] %v908_v8  ;;  %912 = vst [vmem:[#allocation2 + $0x7c] sm:$0x1] %v911_v26  ;;  %v919_v29 = vld [vmem:[#allocation2 + $0x94] sm:$0x1] }
  0x98   : > { %v920_v30 = vsel %vm6498_vm4, 0, %v919_v29  ;;  %v863_v33 = vld [vmem:[#allocation2 + $0x80] sm:$0x1]  ;;  %v913_v35 = vld [vmem:[#allocation2 + $0x84] sm:$0x1]  ;;  %s5216_s17 = sshll.u32 %s6329_s29, 11 }
  0x99   : > { %5426 = vmatmul.mubr.bf16.vlgmr.msra.gmra.mxu0 %v5894_v9  ;;  %v5912_v9 = vld [vmem:[#allocation8 + $0x8] sm:$0xff]   ;;  %921 = vst [vmem:[#allocation2 + $0x94] sm:$0x1] %v920_v30  ;;  %v864_v34 = vsel %vm6491_vm3, 0, %v863_v33  ;;  %v914_v37 = vsel %vm6498_vm4, 0, %v913_v35  ;;  %s4818_s19 = sshll.u32 %s7660_s16, 4  ;;  %s7730_s30 = scalar_lea.hbm %s7789_s13, %s5216_s17  ;;  %s7732_s19 = int_to_ptr.vmem [resolvable:$true] %s4818_s19 }
  0x9a   : > { %5429 = vmatprep.mubr.bf16.mxu0 %v5895_v10  ;;  %5474 = vmatpush3.bf16.msra.mxu0 %v5901_v16  ;;  %v5911_v10 = vld [vmem:[#allocation8 + $0x58] sm:$0xff]   ;;  %v5913_v16 = vld [vmem:[#allocation8 + $0x50] sm:$0xff]   ;;  %865 = vst [vmem:[#allocation2 + $0x80] sm:$0x1] %v864_v34  ;;  %915 = vst [vmem:[#allocation2 + $0x84] sm:$0x1] %v914_v37 }
  0x9b   : > { %5475 = vmatprep.subr.bf16.mxu0 %v5902_v17  ;;  %5449 = vmatprep.subr.bf16.mxu1 %v5911_v10  ;;  %v6570_v39 = vld [vmem:[#allocation2] sm:$0xf]  ;;  %v6572_v40 = vld [vmem:[#allocation2 + $0x50] sm:$0xf]  ;;  %v1260_v49 = vld [vmem:[#allocation2 + $0x4] sm:$0x1] }
  0x9c   : > { %5450 = vmatpush3.bf16.msra.mxu1 %v5911_v10  ;;  %v1283_v42 = vshll.u32 %v6570_v39, 16  ;;  %v1392_v43 = vshrl.u32 %v6572_v40, 16  ;;  %v1395_v22 = vshll.u32 %v6572_v40, 16  ;;  %v1289_v51 = vshll.u32 %v1260_v49, 16  ;;  %v6586_v52 = vld [vmem:[%s7779_s3] ss:$0 sm:$0xff] }
  0x9d   : > { %5451 = vmatprep.subr.bf16.mxu1 %v5913_v16  ;;  %v6588_v54 = vld [vmem:[#allocation2 + $0x54] sm:$0x1]  ;;  %v1890_v58 = vld [vmem:[#allocation2] sm:$0xe]  ;;  %v1943_v0 = vrot.slane %v1260_v49, 5  ;;  %s4805_s7 = scalar_lea.sflag [#allocation5], %s6465_s10 }
  0x9e   : > { %5476 = vmatpush3.bf16.msra.mxu0 %v5902_v17  ;;  %v866_v17 = vld [vmem:[#allocation2 + $0x88] sm:$0x1]  ;;  %v1285_v45 = vrot.slane %v1283_v42, 5  ;;  %v1394_v46 = vrot.slane %v1392_v43, 4  ;;  %v1397_v47 = vrot.slane %v1395_v22, 5  ;;  %v1401_v57 = vshll.u32 %v6588_v54, 16 }
  0x9f   : > { %5477 = vmatprep.subr.bf16.mxu0 %v5904_v28  ;;  %v867_v20 = vsel %vm6491_vm3, 0, %v866_v17  ;;  %v6596_v63 = vrot.slane %v1289_v51, 5  ;;  %v5012_v3 = vrot.slane %v1890_v58, 9  ;;  %v1975_v29 = vrot.slane %v6588_v54, 5  ;;  %v1147_v37 = vld [vmem:[#allocation2 + $0x1c] sm:$0x1] }
  0xa0   : > { %5452 = vmatpush3.bf16.msra.mxu1 %v5913_v16  ;;  %868 = vst [vmem:[#allocation2 + $0x88] sm:$0x1] %v867_v20  ;;  %v1398_v55 = vor.u32 %v1397_v47, %v1394_v46  ;;  %v6602_v7 = vrot.slane %v1401_v57, 5  ;;  %v1135_v51 = vld [vmem:[#allocation2 + $0xc] sm:$0x1]  ;;  %s6153_s20 = scalar_lea.vmem %s7732_s19, 2048 }
  0xa1   : > { %5430 = vmatmul.mubr.bf16.gmra.mxu0 %v5896_v11  ;;  %v851_v11 = vld [vmem:[#allocation2 + $0x60] sm:$0x1]  ;;  %5453 = vmatprep.subr.bf16.mxu1 %v5916_v32  ;;  %v6624_v19 = vsel %vm6612_vm10, %v5012_v3, %v1943_v0  ;;  %p6154_p5 = scmp.ne.s32.totalorder %s7732_s19, %s6153_s20  ;;  %p7873_p11 = scmp.ne.s32.totalorder %s7812_s15, 0 }
  0xa2   : > { %5433 = vmatprep.mubr.bf16.mxu0 %v5897_v12  ;;  %5478 = vmatpush3.bf16.msra.mxu0 %v5904_v28  ;;  %v901_v12 = vld [vmem:[#allocation2 + $0x64] sm:$0x1]  ;;  %v870_v28 = vsel %vm6491_vm3, 0, %v869_v27  ;;  %v6598_v2 = vrot.slane %v1398_v55, 4  ;;  %s6235_s29 = smov [#allocation12]  }
  0xa3   : > { %5479 = vmatprep.subr.bf16.mxu0 %v5906_v41  ;;  %871 = vst [vmem:[#allocation2 + $0x90] sm:$0x1] %v870_v28  ;;  %p6155_p7 = pnand %p6154_p5, %p7873_p11  ;;  %s6157_s21 = sshll.u32 %s6235_s29, 4  ;;  %s6158_s21 = int_to_ptr.vmem [resolvable:$false] %s6157_s21 }
  0xa4   : > { %5454 = vmatpush3.bf16.msra.mxu1 %v5916_v32  ;;  %v1404_v24 = vsel %vm6606_vm9, %v6598_v2, %v6602_v7  ;;  %s6159_s23 = scalar_lea.vmem %s6158_s21, 4096  ;;  %p6160_p12 = scmp.lt.s32.totalorder %s7732_s19, %s6158_s21 }
  0xa5   : > { %5455 = vmatprep.subr.bf16.mxu1 %v5919_v36  ;;  %p6156_p1 = pneg %p6155_p7  ;;  %p6161_p13 = scmp.lt.s32.totalorder %s6159_s23, %s6153_s20 }
  0xa6   : > { %5480 = vmatpush3.bf16.msra.mxu0 %v5906_v41  ;;  %v1280_v41 = vshrl.u32 %v6570_v39, 16 }
  0xa7   : > { %5481 = vmatprep.subr.bf16.mxu0 %v5908_v48  ;;  %p6162_p10 = por %p6161_p13, %p6160_p12 }
  0xa8   : > { %5456 = vmatpush3.bf16.msra.mxu1 %v5919_v36  ;;  %v1282_v44 = vrot.slane %v1280_v41, 4  ;;  %v1144_v36 = vld [vmem:[#allocation2 + $0x18] sm:$0xf] }
  0xa9   : > { %5434 = vmatmul.mubr.bf16.gmra.mxu0 %v5898_v13  ;;  %v852_v13 = vsel %vm6491_vm3, 0, %v851_v11  ;;  %5505 = vmatprep.subr.bf16.mxu1 %v6567_v38  ;;  %p6163_p3 = pnand %p6162_p10, %p6156_p1 }
  0xaa   : > { %5437 = vmatprep.mubr.bf16.mxu0 %v5899_v14  ;;  %5482 = vmatpush3.bf16.msra.mxu0 %v5908_v48  ;;  %v902_v14 = vsel %vm6498_vm4, 0, %v901_v12  ;;  %853 = vst [vmem:[#allocation2 + $0x60] sm:$0x1] %v852_v13  ;;  %v6581_v48 = vld [vmem:[%s7778_s2] ss:$0 sm:$0xff]  ;;  %v1286_v50 = vor.u32 %v1285_v45, %v1282_v44 }
  0xab   : > { %5483 = vmatprep.subr.bf16.mxu0 %v5910_v59  ;;  %903 = vst [vmem:[#allocation2 + $0x64] sm:$0x1] %v902_v14  ;;  %v5999_v14 = vld [vmem:[#allocation9 + $0x38] sm:$0xff]  }
  0xac   : > { %v6592_v60 = vrot.slane %v1286_v50, 4  ;;  %v1132_v50 = vld [vmem:[#allocation2 + $0x8] sm:$0xf] }
  0xae   : > { %5484 = vmatpush3.bf16.msra.mxu0 %v5910_v59  ;;  %v1292_v17 = vsel %vm6606_vm9, %v6592_v60, %v6596_v63 }
  0xaf   : > { %5485 = vmatprep.subr.bf16.mxu0 %v5912_v9 }
  0xb1   : > { %5438 = vmatmul.mubr.bf16.gmra.mxu0 %v5900_v15  ;;  %v5914_v15 = vld [vmem:[#allocation8] sm:$0xff]  }
  0xb2   : > { %5486 = vmatpush3.bf16.msra.mxu0 %v5912_v9 }
  0xb3   : > { %5487 = vmatprep.subr.bf16.mxu0 %v5914_v15 }
  0xb6   : > { %5488 = vmatpush3.bf16.msra.mxu0 %v5914_v15  ;;  %v6616_v15 = vld [vmem:[#allocation2 + $0x50] sm:$0xe] }
  0xb7   : > { %5537 = vmatprep.subr.bf16.mxu0 %v6560_v31  ;;  %v5020_v28 = vrot.slane %v6616_v15, 9 }
 0x159   : > { %v5427_v53 = vpop.f32.mrf.mxu0 }
 0x15a   : > { %v759_v56 = vmul.f32 %v5427_v53, %v6581_v48 }
 0x15b   : > { %v688_v59 = vpop.f32.mrf.mxu0 }
 0x15c   : > { %v781_v61 = vadd.f32 %v6586_v52, %v759_v56  ;;  %v757_v62 = vmul.f32 %v6581_v48, %v688_v59 }
 0x15d   : > { %v5428_v1 = vpop.f32.mrf.mxu0 }
 0x15e   : > { %v797_v4 = vmax.f32 %v781_v61, 0.0  ;;  %v779_v5 = vadd.f32 %v6586_v52, %v757_v62  ;;  %v760_v6 = vmul.f32 %v5428_v1, %v6581_v48 }
 0x15f   : > { %v691_v8 = vpop.f32.mrf.mxu0 }
 0x160   : > { %v5202_v10 = vpack.c.bf16 %v797_v4, %v797_v4  ;;  %v795_v11 = vmax.f32 %v779_v5, 0.0  ;;  %v782_v12 = vadd.f32 %v6586_v52, %v760_v6  ;;  %v758_v13 = vmul.f32 %v6581_v48, %v691_v8 }
 0x161   : > { %v5431_v16 = vpop.f32.mrf.mxu0 }
 0x162   : > { %v987_v20 = vshrl.u32 %v5202_v10, 16  ;;  %v5200_v21 = vpack.c.bf16 %v795_v11, %v795_v11  ;;  %v798_v23 = vmax.f32 %v782_v12, 0.0  ;;  %v780_v25 = vadd.f32 %v6586_v52, %v758_v13  ;;  %v1150_v11 = vld [vmem:[#allocation2 + $0x20] sm:$0xf]  ;;  %v1153_v12 = vld [vmem:[#allocation2 + $0x24] sm:$0x1] }
 0x163   : > { %v763_v26 = vmul.f32 %v5431_v16, %v6581_v48  ;;  %v704_v27 = vpop.f32.mrf.mxu0  ;;  %v990_v32 = vshll.u32 %v5202_v10, 16 }
 0x164   : > { %v989_v30 = vrot.slane %v987_v20, 7  ;;  %v971_v33 = vshrl.u32 %v5200_v21, 16  ;;  %v5203_v34 = vpack.c.bf16 %v798_v23, %v798_v23  ;;  %v974_v41 = vshll.u32 %v5200_v21, 16 }
 0x165   : > { %v796_v42 = vmax.f32 %v780_v25, 0.0  ;;  %v785_v43 = vadd.f32 %v6586_v52, %v763_v26  ;;  %v761_v22 = vmul.f32 %v6581_v48, %v704_v27  ;;  %v5432_v44 = vpop.f32.mrf.mxu0  ;;  %v1138_v27 = vld [vmem:[#allocation2 + $0x10] sm:$0xf] }
 0x166   : > { %v992_v45 = vor.u32 %v990_v32, %v989_v30  ;;  %v993_v46 = vrot.slane %v989_v30, 4  ;;  %v973_v47 = vrot.slane %v971_v33, 7  ;;  %v995_v49 = vshrl.u32 %v5203_v34, 16  ;;  %v1141_v30 = vld [vmem:[#allocation2 + $0x14] sm:$0x1] }
 0x167   : > { %v998_v53 = vshll.u32 %v5203_v34, 16  ;;  %v5201_v55 = vpack.c.bf16 %v796_v42, %v796_v42  ;;  %v801_v56 = vmax.f32 %v785_v43, 0.0  ;;  %v783_v57 = vadd.f32 %v6586_v52, %v761_v22  ;;  %v707_v58 = vpop.f32.mrf.mxu0 }
 0x168   : > { %v1145_v59 = vsel %vm6636_vm12, %v992_v45, %v1144_v36  ;;  %v1148_v61 = vsel %vm6491_vm3, %v993_v46, %v1147_v37  ;;  %v976_v62 = vor.u32 %v974_v41, %v973_v47  ;;  %v977_v0 = vrot.slane %v973_v47, 4 }
 0x169   : > { %1146 = vst [vmem:[#allocation2 + $0x18] sm:$0xf] %v1145_v59  ;;  %1149 = vst [vmem:[#allocation2 + $0x1c] sm:$0x1] %v1148_v61  ;;  %v997_v1 = vrot.slane %v995_v49, 7  ;;  %v979_v3 = vshrl.u32 %v5201_v55, 16  ;;  %v5206_v5 = vpack.c.bf16 %v801_v56, %v801_v56  ;;  %v5435_v6 = vpop.f32.mrf.mxu0  ;;  %v764_v16 = vmul.f32 %v5432_v44, %v6581_v48 }
 0x16a   : > { %v982_v4 = vshll.u32 %v5201_v55, 16  ;;  %v1133_v8 = vsel %vm6636_vm12, %v976_v62, %v1132_v50  ;;  %v1136_v10 = vsel %vm6491_vm3, %v977_v0, %v1135_v51  ;;  %v799_v13 = vmax.f32 %v783_v57, 0.0  ;;  %v1168_v51 = vld [vmem:[#allocation2 + $0x38] sm:$0xf]  ;;  %v1156_v62 = vld [vmem:[#allocation2 + $0x28] sm:$0xf] }
 0x16b   : > { %1134 = vst [vmem:[#allocation2 + $0x8] sm:$0xf] %v1133_v8  ;;  %1137 = vst [vmem:[#allocation2 + $0xc] sm:$0x1] %v1136_v10  ;;  %v1000_v20 = vor.u32 %v998_v53, %v997_v1  ;;  %v1001_v21 = vrot.slane %v997_v1, 4  ;;  %v981_v23 = vrot.slane %v979_v3, 7  ;;  %v720_v26 = vpop.f32.mrf.mxu0  ;;  %v786_v34 = vadd.f32 %v6586_v52, %v764_v16 }
 0x16c   : > { %v1019_v25 = vshrl.u32 %v5206_v5, 16  ;;  %v1022_v32 = vshll.u32 %v5206_v5, 16  ;;  %v5204_v33 = vpack.c.bf16 %v799_v13, %v799_v13  ;;  %v762_v36 = vmul.f32 %v6581_v48, %v707_v58  ;;  %v1171_v53 = vld [vmem:[#allocation2 + $0x3c] sm:$0x1]  ;;  %v1159_v1 = vld [vmem:[#allocation2 + $0x2c] sm:$0x1] }
 0x16d   : > { %v1151_v37 = vsel %vm6636_vm12, %v1000_v20, %v1150_v11  ;;  %v1154_v41 = vsel %vm6491_vm3, %v1001_v21, %v1153_v12  ;;  %v984_v42 = vor.u32 %v982_v4, %v981_v23  ;;  %v985_v43 = vrot.slane %v981_v23, 4  ;;  %v5436_v22 = vpop.f32.mrf.mxu0 }
 0x16e   : > { %1152 = vst [vmem:[#allocation2 + $0x20] sm:$0xf] %v1151_v37  ;;  %1155 = vst [vmem:[#allocation2 + $0x24] sm:$0x1] %v1154_v41  ;;  %v1021_v44 = vrot.slane %v1019_v25, 7  ;;  %v1003_v45 = vshrl.u32 %v5204_v33, 16  ;;  %v784_v55 = vadd.f32 %v6586_v52, %v762_v36  ;;  %v767_v56 = vmul.f32 %v5435_v6, %v6581_v48 }
 0x16f   : > { %v1006_v46 = vshll.u32 %v5204_v33, 16  ;;  %v802_v47 = vmax.f32 %v786_v34, 0.0  ;;  %v1139_v49 = vsel %vm6636_vm12, %v984_v42, %v1138_v27  ;;  %v1142_v50 = vsel %vm6491_vm3, %v985_v43, %v1141_v30  ;;  %v723_v57 = vpop.f32.mrf.mxu0  ;;  %v1174_v33 = vld [vmem:[#allocation2 + $0x40] sm:$0xf]  ;;  %v1177_v41 = vld [vmem:[#allocation2 + $0x44] sm:$0x1] }
 0x170   : > { %1140 = vst [vmem:[#allocation2 + $0x10] sm:$0xf] %v1139_v49  ;;  %1143 = vst [vmem:[#allocation2 + $0x14] sm:$0x1] %v1142_v50  ;;  %v1024_v58 = vor.u32 %v1022_v32, %v1021_v44  ;;  %v1025_v59 = vrot.slane %v1021_v44, 4  ;;  %v1005_v61 = vrot.slane %v1003_v45, 7  ;;  %v789_v4 = vadd.f32 %v6586_v52, %v767_v56 }
 0x171   : > { %v5207_v0 = vpack.c.bf16 %v802_v47, %v802_v47  ;;  %v800_v3 = vmax.f32 %v784_v55, 0.0  ;;  %v765_v5 = vmul.f32 %v6581_v48, %v720_v26  ;;  %v768_v8 = vmul.f32 %v5436_v22, %v6581_v48  ;;  %v5439_v13 = vpop.f32.mrf.mxu0  ;;  %v1162_v50 = vld [vmem:[#allocation2 + $0x30] sm:$0xf] }
 0x172   : > { %v1169_v10 = vsel %vm6636_vm12, %v1024_v58, %v1168_v51  ;;  %v1172_v6 = vsel %vm6491_vm3, %v1025_v59, %v1171_v53  ;;  %v1008_v11 = vor.u32 %v1006_v46, %v1005_v61  ;;  %v1009_v12 = vrot.slane %v1005_v61, 4  ;;  %v1165_v53 = vld [vmem:[#allocation2 + $0x34] sm:$0x1] }
 0x173   : > { %1170 = vst [vmem:[#allocation2 + $0x38] sm:$0xf] %v1169_v10  ;;  %1173 = vst [vmem:[#allocation2 + $0x3c] sm:$0x1] %v1172_v6  ;;  %v1027_v16 = vshrl.u32 %v5207_v0, 16  ;;  %v1030_v20 = vshll.u32 %v5207_v0, 16  ;;  %v5205_v21 = vpack.c.bf16 %v800_v3, %v800_v3  ;;  %v787_v27 = vadd.f32 %v6586_v52, %v765_v5  ;;  %v736_v45 = vpop.f32.mrf.mxu0 }
 0x174   : > { %v805_v23 = vmax.f32 %v789_v4, 0.0  ;;  %v1157_v25 = vsel %vm6636_vm12, %v1008_v11, %v1156_v62  ;;  %v1160_v26 = vsel %vm6491_vm3, %v1009_v12, %v1159_v1  ;;  %v790_v30 = vadd.f32 %v6586_v52, %v768_v8  ;;  %v1192_v3 = vld [vmem:[#allocation2 + $0x68] sm:$0xf]  ;;  %v1195_v12 = vld [vmem:[#allocation2 + $0x6c] sm:$0x1] }
 0x175   : > { %1158 = vst [vmem:[#allocation2 + $0x28] sm:$0xf] %v1157_v25  ;;  %1161 = vst [vmem:[#allocation2 + $0x2c] sm:$0x1] %v1160_v26  ;;  %v1029_v32 = vrot.slane %v1027_v16, 7  ;;  %v1011_v34 = vshrl.u32 %v5205_v21, 16  ;;  %v766_v22 = vmul.f32 %v6581_v48, %v723_v57  ;;  %v771_v44 = vmul.f32 %v5439_v13, %v6581_v48  ;;  %v5440_v10 = vpop.f32.mrf.mxu0 }
 0x176   : > { %v1014_v36 = vshll.u32 %v5205_v21, 16  ;;  %v5210_v37 = vpack.c.bf16 %v805_v23, %v805_v23  ;;  %v803_v42 = vmax.f32 %v787_v27, 0.0  ;;  %v806_v43 = vmax.f32 %v790_v30, 0.0  ;;  %v1180_v26 = vld [vmem:[#allocation2 + $0x58] sm:$0xf] }
 0x177   : > { %v1032_v46 = vor.u32 %v1030_v20, %v1029_v32  ;;  %v1033_v47 = vrot.slane %v1029_v32, 4  ;;  %v1013_v49 = vrot.slane %v1011_v34, 7  ;;  %v788_v59 = vadd.f32 %v6586_v52, %v766_v22  ;;  %v1183_v27 = vld [vmem:[#allocation2 + $0x5c] sm:$0x1]  ;;  %v1201_v22 = vld [vmem:[#allocation2 + $0x74] sm:$0x1] }
 0x178   : > { %v1051_v51 = vshrl.u32 %v5210_v37, 16  ;;  %v1054_v55 = vshll.u32 %v5210_v37, 16  ;;  %v5208_v56 = vpack.c.bf16 %v803_v42, %v803_v42  ;;  %v5211_v58 = vpack.c.bf16 %v806_v43, %v806_v43  ;;  %v1198_v43 = vld [vmem:[#allocation2 + $0x70] sm:$0xf] }
 0x179   : > { %v1175_v61 = vsel %vm6636_vm12, %v1032_v46, %v1174_v33  ;;  %v1178_v57 = vsel %vm6491_vm3, %v1033_v47, %v1177_v41  ;;  %v1016_v62 = vor.u32 %v1014_v36, %v1013_v49  ;;  %v1017_v0 = vrot.slane %v1013_v49, 4 }
 0x17a   : > { %1176 = vst [vmem:[#allocation2 + $0x40] sm:$0xf] %v1175_v61  ;;  %1179 = vst [vmem:[#allocation2 + $0x44] sm:$0x1] %v1178_v57  ;;  %v1053_v1 = vrot.slane %v1051_v51, 7  ;;  %v1035_v4 = vshrl.u32 %v5208_v56, 16  ;;  %v793_v32 = vadd.f32 %v6586_v52, %v771_v44  ;;  %v769_v33 = vmul.f32 %v6581_v48, %v736_v45  ;;  %v739_v45 = vpop.f32.mrf.mxu0 }
 0x17b   : > { %v1038_v5 = vshll.u32 %v5208_v56, 16  ;;  %v1059_v8 = vshrl.u32 %v5211_v58, 16  ;;  %v1163_v6 = vsel %vm6636_vm12, %v1016_v62, %v1162_v50  ;;  %v1166_v11 = vsel %vm6491_vm3, %v1017_v0, %v1165_v53  ;;  %v6695_v50 = vld [vmem:[#allocation2 + $0x8] sm:$0xf]  ;;  %v1189_v0 = vld [vmem:[#allocation2 + $0x64] sm:$0x1] }
 0x17c   : > { %v1062_v13 = vshll.u32 %v5211_v58, 16  ;;  %v804_v16 = vmax.f32 %v788_v59, 0.0  ;;  %1164 = vst [vmem:[#allocation2 + $0x30] sm:$0xf] %v1163_v6  ;;  %1167 = vst [vmem:[#allocation2 + $0x34] sm:$0x1] %v1166_v11  ;;  %v1056_v20 = vor.u32 %v1054_v55, %v1053_v1  ;;  %v772_v34 = vmul.f32 %v5440_v10, %v6581_v48 }
 0x17d   : > { %v1057_v21 = vrot.slane %v1053_v1, 4  ;;  %v1037_v23 = vrot.slane %v1035_v4, 7  ;;  %v1061_v25 = vrot.slane %v1059_v8, 7  ;;  %v1186_v55 = vld [vmem:[#allocation2 + $0x60] sm:$0xf]  ;;  %v809_v56 = vmax.f32 %v793_v32, 0.0 }
 0x17e   : > { %v5209_v30 = vpack.c.bf16 %v804_v16, %v804_v16  ;;  %v1193_v36 = vsel %vm6636_vm12, %v1056_v20, %v1192_v3  ;;  %v791_v58 = vadd.f32 %v6586_v52, %v769_v33  ;;  %v6702_v59 = vld [vmem:[#allocation2 + $0x10] sm:$0xf]  ;;  %v794_v1 = vadd.f32 %v6586_v52, %v772_v34  ;;  %v6712_v10 = vld [vmem:[#allocation2 + $0x18] sm:$0xf]  ;;  %v6714_v6 = vld [vmem:[#allocation2 + $0x20] sm:$0xf] }
 0x17f   : > { %v1196_v37 = vsel %vm6491_vm3, %v1057_v21, %v1195_v12  ;;  %v1040_v41 = vor.u32 %v1038_v5, %v1037_v23  ;;  %v1041_v42 = vrot.slane %v1037_v23, 4  ;;  %1194 = vst [vmem:[#allocation2 + $0x68] sm:$0xf] %v1193_v36  ;;  %v1064_v46 = vor.u32 %v1062_v13, %v1061_v25  ;;  %v5921_v20 = vld [vmem:[#allocation8 + $0xf0] sm:$0xff]  }
 0x180   : > { %1197 = vst [vmem:[#allocation2 + $0x6c] sm:$0x1] %v1196_v37  ;;  %v1065_v47 = vrot.slane %v1061_v25, 4  ;;  %v1043_v49 = vshrl.u32 %v5209_v30, 16  ;;  %v1046_v44 = vshll.u32 %v5209_v30, 16  ;;  %v5214_v3 = vpack.c.bf16 %v809_v56, %v809_v56 }
 0x181   : > { %v1181_v51 = vsel %vm6636_vm12, %v1040_v41, %v1180_v26  ;;  %v1184_v53 = vsel %vm6491_vm3, %v1041_v42, %v1183_v27  ;;  %v1199_v61 = vsel %vm6636_vm12, %v1064_v46, %v1198_v43  ;;  %v807_v4 = vmax.f32 %v791_v58, 0.0  ;;  %v1216_v27 = vld [vmem:[#allocation2 + $0x88] sm:$0xf]  ;;  %v1219_v30 = vld [vmem:[#allocation2 + $0x8c] sm:$0x1] }
 0x182   : > { %1182 = vst [vmem:[#allocation2 + $0x58] sm:$0xf] %v1181_v51  ;;  %1185 = vst [vmem:[#allocation2 + $0x5c] sm:$0x1] %v1184_v53  ;;  %v1202_v57 = vsel %vm6491_vm3, %v1065_v47, %v1201_v22  ;;  %v1045_v62 = vrot.slane %v1043_v49, 7  ;;  %v4996_v5 = vcombine.low %v6570_v39, %v6695_v50  ;;  %v770_v8 = vmul.f32 %v6581_v48, %v739_v45  ;;  %v5924_v49 = vld [vmem:[#allocation8 + $0xe8] sm:$0xff]  }
 0x183   : > { %1200 = vst [vmem:[#allocation2 + $0x70] sm:$0xf] %v1199_v61  ;;  %1203 = vst [vmem:[#allocation2 + $0x74] sm:$0x1] %v1202_v57  ;;  %v810_v13 = vmax.f32 %v794_v1, 0.0  ;;  %v4997_v16 = vcombine.low %v6702_v59, %v6712_v10  ;;  %v1083_v21 = vshrl.u32 %v5214_v3, 16  ;;  %v5212_v25 = vpack.c.bf16 %v807_v4, %v807_v4 }
 0x184   : > { %v1048_v11 = vor.u32 %v1046_v44, %v1045_v62  ;;  %v1049_v12 = vrot.slane %v1045_v62, 4  ;;  %v1086_v23 = vshll.u32 %v5214_v3, 16  ;;  %5489 = vmatprep.mubr.bf16.mxu0 %v4996_v5  ;;  %v792_v26 = vadd.f32 %v6586_v52, %v770_v8  ;;  %v1233_v52 = vld [vmem:[#allocation2 + $0x28] sm:$0xf]  ;;  %v1204_v42 = vld [vmem:[#allocation2 + $0x78] sm:$0xf] }
 0x185   : > { %v5215_v32 = vpack.c.bf16 %v810_v13, %v810_v13  ;;  %5490 = vmatmul.mubr.bf16.vlgmr.msra.gmra.mxu0 %v4997_v16  ;;  %v1336_v33 = vshrl.u32 %v6714_v6, 16  ;;  %v1085_v34 = vrot.slane %v1083_v21, 7  ;;  %v1067_v36 = vshrl.u32 %v5212_v25, 16  ;;  %v1207_v53 = vld [vmem:[#allocation2 + $0x7c] sm:$0x1]  ;;  %v5927_v16 = vld [vmem:[#allocation8 + $0xe0] sm:$0xff]  }
 0x186   : > { %v1187_v39 = vsel %vm6636_vm12, %v1048_v11, %v1186_v55  ;;  %v1190_v48 = vsel %vm6491_vm3, %v1049_v12, %v1189_v0  ;;  %v1070_v37 = vshll.u32 %v5212_v25, 16  ;;  %v808_v41 = vmax.f32 %v792_v26, 0.0  ;;  %5538 = vmatpush3.bf16.msra.mxu0 %v6560_v31  ;;  %v1222_v55 = vld [vmem:[#allocation2 + $0x90] sm:$0xf]  ;;  %v1225_v61 = vld [vmem:[#allocation2 + $0x94] sm:$0x1] }
 0x187   : > { %1188 = vst [vmem:[#allocation2 + $0x60] sm:$0xf] %v1187_v39  ;;  %1191 = vst [vmem:[#allocation2 + $0x64] sm:$0x1] %v1190_v48  ;;  %v1091_v43 = vshrl.u32 %v5215_v32, 16  ;;  %v1094_v22 = vshll.u32 %v5215_v32, 16  ;;  %5539 = vmatprep.subr.bf16.mxu0 %v5921_v20  ;;  %v1088_v44 = vor.u32 %v1086_v23, %v1085_v34 }
 0x188   : > { %v6725_v46 = vrot.slane %v1336_v33, 4  ;;  %v1339_v47 = vshll.u32 %v6714_v6, 16  ;;  %v1089_v45 = vrot.slane %v1085_v34, 4  ;;  %v1069_v51 = vrot.slane %v1067_v36, 7  ;;  %v6734_v5 = vld [vmem:[#allocation2 + $0xc] sm:$0x1] }
 0x189   : > { %v5213_v56 = vpack.c.bf16 %v808_v41, %v808_v41  ;;  %v1093_v58 = vrot.slane %v1091_v43, 7  ;;  %v1350_v31 = vshrl.u32 %v1233_v52, 16  ;;  %v1353_v62 = vshll.u32 %v1233_v52, 16  ;;  %v1210_v25 = vld [vmem:[#allocation2 + $0x80] sm:$0xf] }
 0x18a   : > { %v6728_v57 = vrot.slane %v1339_v47, 5  ;;  %v1217_v0 = vsel %vm6636_vm12, %v1088_v44, %v1216_v27  ;;  %v1220_v1 = vsel %vm6491_vm3, %v1089_v45, %v1219_v30  ;;  %v1072_v3 = vor.u32 %v1070_v37, %v1069_v51  ;;  %5540 = vmatpush3.bf16.msra.mxu0 %v5921_v20  ;;  %v1234_v20 = vld [vmem:[#allocation2 + $0x30] sm:$0xf]  ;;  %v1213_v32 = vld [vmem:[#allocation2 + $0x84] sm:$0x1]  ;;  %v5930_v45 = vld [vmem:[#allocation8 + $0xd8] sm:$0xff]  }
 0x18b   : > { %v1073_v4 = vrot.slane %v1069_v51, 4  ;;  %1218 = vst [vmem:[#allocation2 + $0x88] sm:$0xf] %v1217_v0  ;;  %1221 = vst [vmem:[#allocation2 + $0x8c] sm:$0x1] %v1220_v1  ;;  %v1096_v8 = vor.u32 %v1094_v22, %v1093_v58  ;;  %v1097_v11 = vrot.slane %v1093_v58, 4  ;;  %5541 = vmatprep.subr.bf16.mxu0 %v5924_v49  ;;  %v4998_v33 = vcombine.low %v6714_v6, %v1233_v52 }
 0x18c   : > { %v1075_v12 = vshrl.u32 %v5213_v56, 16  ;;  %v1078_v13 = vshll.u32 %v5213_v56, 16  ;;  %v1205_v21 = vsel %vm6636_vm12, %v1072_v3, %v1204_v42  ;;  %v6740_v26 = vrot.slane %v1350_v31, 4  ;;  %v1235_v34 = vld [vmem:[#allocation2 + $0x38] sm:$0xf]  ;;  %v5933_v3 = vld [vmem:[#allocation8 + $0xd0] sm:$0xff]  }
 0x18d   : > { %v1208_v23 = vsel %vm6491_vm3, %v1073_v4, %v1207_v53  ;;  %v6742_v39 = vrot.slane %v1353_v62, 5  ;;  %1206 = vst [vmem:[#allocation2 + $0x78] sm:$0xf] %v1205_v21  ;;  %v1223_v48 = vsel %vm6636_vm12, %v1096_v8, %v1222_v55  ;;  %v1226_v27 = vsel %vm6491_vm3, %v1097_v11, %v1225_v61  ;;  %5493 = vmatprep.mubr.bf16.mxu0 %v4998_v33  ;;  %v6753_v55 = vld [vmem:[#allocation2 + $0x14] sm:$0x1] }
 0x18e   : > { %1209 = vst [vmem:[#allocation2 + $0x7c] sm:$0x1] %v1208_v23  ;;  %v1077_v30 = vrot.slane %v1075_v12, 7  ;;  %1224 = vst [vmem:[#allocation2 + $0x90] sm:$0xf] %v1223_v48  ;;  %v1294_v36 = vshrl.u32 %v6695_v50, 16  ;;  %5542 = vmatpush3.bf16.msra.mxu0 %v5924_v49  ;;  %v4999_v1 = vcombine.low %v1234_v20, %v1235_v34 }
 0x18f   : > { %1227 = vst [vmem:[#allocation2 + $0x94] sm:$0x1] %v1226_v27  ;;  %v1297_v37 = vshll.u32 %v6695_v50, 16  ;;  %v1303_v41 = vshll.u32 %v6734_v5, 16  ;;  %v1947_v42 = vrot.slane %v6734_v5, 5  ;;  %v1364_v47 = vshrl.u32 %v1234_v20, 16  ;;  %5543 = vmatprep.subr.bf16.mxu0 %v5927_v16 }
 0x190   : > { %v1080_v43 = vor.u32 %v1078_v13, %v1077_v30  ;;  %v1081_v22 = vrot.slane %v1077_v30, 4  ;;  %v1367_v44 = vshll.u32 %v1234_v20, 16  ;;  %v1296_v6 = vrot.slane %v1294_v36, 4  ;;  %v6763_v61 = vld [vmem:[#allocation2 + $0x1c] sm:$0x1]  ;;  %5494 = vmatmul.mubr.bf16.gmra.mxu0 %v4999_v1  ;;  %v5939_v1 = vld [vmem:[#allocation8 + $0xc0] sm:$0xff]  }
 0x191   : > { %v1299_v52 = vrot.slane %v1297_v37, 5  ;;  %v1305_v51 = vrot.slane %v1303_v41, 5  ;;  %v1378_v53 = vshrl.u32 %v1235_v34, 16  ;;  %v6759_v49 = vrot.slane %v1364_v47, 4  ;;  %v1237_v23 = vld [vmem:[#allocation2 + $0x58] sm:$0xf] }
 0x192   : > { %v1211_v50 = vsel %vm6636_vm12, %v1080_v43, %v1210_v25  ;;  %v1214_v56 = vsel %vm6491_vm3, %v1081_v22, %v1213_v32  ;;  %v6761_v58 = vrot.slane %v1367_v44, 5  ;;  %v1381_v0 = vshll.u32 %v1235_v34, 16  ;;  %5544 = vmatpush3.bf16.msra.mxu0 %v5927_v16  ;;  %v6775_v27 = vld [vmem:[#allocation2 + $0x24] sm:$0x1]  ;;  %v5936_v34 = vld [vmem:[#allocation8 + $0xc8] sm:$0xff]  }
 0x193   : > { %1212 = vst [vmem:[#allocation2 + $0x80] sm:$0xf] %v1211_v50  ;;  %1215 = vst [vmem:[#allocation2 + $0x84] sm:$0x1] %v1214_v56  ;;  %v1300_v31 = vor.u32 %v1299_v52, %v1296_v6  ;;  %v6765_v62 = vrot.slane %v1378_v53, 4  ;;  %v1308_v35 = vshrl.u32 %v6702_v59, 16  ;;  %5545 = vmatprep.subr.bf16.mxu0 %v5930_v45  ;;  %v5000_v44 = vcombine.low %v6572_v40, %v1237_v23 }
 0x194   : > { %v1311_v18 = vshll.u32 %v6702_v59, 16  ;;  %v1317_v4 = vshll.u32 %v6753_v55, 16  ;;  %v1322_v8 = vshrl.u32 %v6712_v10, 16  ;;  %v6771_v12 = vrot.slane %v1381_v0, 5  ;;  %v6786_v43 = vld [vmem:[#allocation2 + $0x2c] sm:$0x1] }
 0x195   : > { %v1301_v11 = vrot.slane %v1300_v31, 4  ;;  %v1325_v13 = vshll.u32 %v6712_v10, 16  ;;  %v1331_v21 = vshll.u32 %v6763_v61, 16  ;;  %v1310_v16 = vrot.slane %v1308_v35, 4  ;;  %v1238_v6 = vld [vmem:[#allocation2 + $0x60] sm:$0xf]  ;;  %5497 = vmatprep.mubr.bf16.mxu0 %v5000_v44 }
 0x196   : > { %v1313_v25 = vrot.slane %v1311_v18, 5  ;;  %v1319_v20 = vrot.slane %v1317_v4, 5  ;;  %v1324_v48 = vrot.slane %v1322_v8, 4  ;;  %v1951_v33 = vrot.slane %v6753_v55, 5  ;;  %5546 = vmatpush3.bf16.msra.mxu0 %v5930_v45  ;;  %v6803_v8 = vld [vmem:[#allocation2 + $0x34] sm:$0x1] }
 0x197   : > { %v1306_v59 = vsel %vm6606_vm9, %v1301_v11, %v1305_v51  ;;  %v1327_v30 = vrot.slane %v1325_v13, 5  ;;  %v1333_v32 = vrot.slane %v1331_v21, 5  ;;  %v1955_v37 = vrot.slane %v6763_v61, 5  ;;  %5547 = vmatprep.subr.bf16.mxu0 %v5933_v3  ;;  %v6863_v7 = vld [vmem:[#allocation2 + $0x8c] sm:$0x1] }
 0x198   : > { %v4980_v10 = vcombine.low %v1292_v17, %v1306_v59  ;;  %v1314_v36 = vor.u32 %v1313_v25, %v1310_v16  ;;  %v1406_v41 = vshrl.u32 %v1237_v23, 16  ;;  %v1409_v47 = vshll.u32 %v1237_v23, 16  ;;  %v1239_v17 = vld [vmem:[#allocation2 + $0x68] sm:$0xf]  ;;  %v6809_v23 = vld [vmem:[#allocation2 + $0x3c] sm:$0x1] }
 0x199   : > { %v1328_v22 = vor.u32 %v1327_v30, %v1324_v48  ;;  %v1342_v45 = vor.u32 %v6728_v57, %v6725_v46  ;;  %v1345_v60 = vshll.u32 %v6775_v27, 16  ;;  %v1356_v63 = vor.u32 %v6742_v39, %v6740_v26  ;;  %v5926_v39 = vld [vmem:[#allocation8 + $0xb0] sm:$0xff]   ;;  %v1241_v30 = vld [vmem:[#allocation2 + $0x78] sm:$0xf] }
 0x19a   : > { %5457 = vmatprep.mubr.bf16.mxu1 %v4980_v10  ;;  %v1315_v52 = vrot.slane %v1314_v36, 4  ;;  %v6791_v51 = vrot.slane %v1406_v41, 4  ;;  %v6796_v50 = vrot.slane %v1409_v47, 5  ;;  %v1359_v40 = vshll.u32 %v6786_v43, 16  ;;  %5548 = vmatpush3.bf16.msra.mxu0 %v5933_v3  ;;  %v1240_v16 = vld [vmem:[#allocation2 + $0x70] sm:$0xf] }
 0x19b   : > { %v1329_v53 = vrot.slane %v1328_v22, 4  ;;  %v1343_v56 = vrot.slane %v1342_v45, 4  ;;  %v1347_v57 = vrot.slane %v1345_v60, 5  ;;  %v1357_v31 = vrot.slane %v1356_v63, 4  ;;  %5549 = vmatprep.subr.bf16.mxu0 %v5936_v34  ;;  %v6822_v22 = vld [vmem:[#allocation8 + $0x178] sm:$0xff]   ;;  %v5929_v47 = vld [vmem:[#allocation8 + $0xa8] sm:$0xff]  }
 0x19c   : > { %v1320_v46 = vsel %vm6606_vm9, %v1315_v52, %v1319_v20  ;;  %v1420_v0 = vshrl.u32 %v1238_v6, 16  ;;  %v1361_v35 = vrot.slane %v1359_v40, 5  ;;  %v1423_v18 = vshll.u32 %v1238_v6, 16  ;;  %v6828_v52 = vld [vmem:[#allocation2 + $0x5c] sm:$0x1] }
 0x19d   : > { %v1334_v26 = vsel %vm6606_vm9, %v1329_v53, %v1333_v32  ;;  %v1434_v4 = vshrl.u32 %v1239_v17, 16  ;;  %v1348_v3 = vsel %vm6606_vm9, %v1343_v56, %v1347_v57  ;;  %v1437_v21 = vshll.u32 %v1239_v17, 16 }
 0x19e   : > { %v4981_v11 = vcombine.low %v1320_v46, %v1334_v26  ;;  %v6807_v13 = vrot.slane %v1420_v0, 4  ;;  %v1362_v25 = vsel %vm6606_vm9, %v1357_v31, %v1361_v35  ;;  %v6813_v20 = vrot.slane %v1423_v18, 5  ;;  %5550 = vmatpush3.bf16.msra.mxu0 %v5936_v34  ;;  %v1243_v46 = vld [vmem:[#allocation2 + $0x88] sm:$0xf] }
 0x19f   : > { %v6815_v48 = vrot.slane %v1434_v4, 4  ;;  %v5001_v59 = vcombine.low %v1238_v6, %v1239_v17  ;;  %v4982_v32 = vcombine.low %v1348_v3, %v1362_v25  ;;  %v6817_v10 = vrot.slane %v1437_v21, 5  ;;  %5551 = vmatprep.subr.bf16.mxu0 %v5939_v1  ;;  %v1242_v17 = vld [vmem:[#allocation2 + $0x80] sm:$0xf]  ;;  %v6838_v4 = vld [vmem:[#allocation2 + $0x6c] sm:$0x1] }
 0x1a0   : > { %5458 = vmatmul.mubr.bf16.vlgmr.msra.gmra.mxu1 %v4981_v11  ;;  %v1370_v36 = vor.u32 %v6761_v58, %v6759_v49  ;;  %v1373_v41 = vshll.u32 %v6803_v8, 16  ;;  %v1384_v44 = vor.u32 %v6771_v12, %v6765_v62  ;;  %v1387_v34 = vshll.u32 %v6809_v23, 16  ;;  %v5932_v11 = vld [vmem:[#allocation8 + $0xa0] sm:$0xff]  }
 0x1a1   : > { %5506 = vmatpush3.bf16.msra.mxu1 %v6567_v38  ;;  %5498 = vmatmul.mubr.bf16.gmra.mxu0 %v5001_v59  ;;  %v1448_v45 = vshrl.u32 %v1240_v16, 16  ;;  %v1451_v6 = vshll.u32 %v1240_v16, 16  ;;  %v1462_v60 = vshrl.u32 %v1241_v30, 16  ;;  %v1465_v63 = vshll.u32 %v1241_v30, 16  ;;  %v6840_v25 = vld [vmem:[#allocation2 + $0x64] sm:$0x1] }
 0x1a2   : > { %5507 = vmatprep.subr.bf16.mxu1 %v5926_v39  ;;  %5461 = vmatprep.mubr.bf16.mxu1 %v4982_v32  ;;  %v1371_v49 = vrot.slane %v1370_v36, 4  ;;  %v1375_v58 = vrot.slane %v1373_v41, 5  ;;  %v1385_v53 = vrot.slane %v1384_v44, 4  ;;  %v1389_v38 = vrot.slane %v1387_v34, 5  ;;  %v6842_v36 = vld [vmem:[#allocation2 + $0x74] sm:$0x1] }
 0x1a3   : > { %v1450_v56 = vrot.slane %v1448_v45, 4  ;;  %v1453_v40 = vrot.slane %v1451_v6, 5  ;;  %5552 = vmatpush3.bf16.msra.mxu0 %v5939_v1  ;;  %v1464_v12 = vrot.slane %v1462_v60, 4  ;;  %v1467_v57 = vrot.slane %v1465_v63, 5  ;;  %v5937_v34 = vld [vmem:[#allocation2 + $0x8] ss:$8 sps:$4 sm:$0xff]  }
 0x1a4   : > { %v1376_v62 = vsel %vm6606_vm9, %v1371_v49, %v1375_v58  ;;  %v5002_v31 = vcombine.low %v1240_v16, %v1241_v30  ;;  %5601 = vmatprep.subr.bf16.mxu0 %v6822_v22  ;;  %v1390_v0 = vsel %vm6606_vm9, %v1385_v53, %v1389_v38  ;;  %v1412_v26 = vor.u32 %v6796_v50, %v6791_v51  ;;  %v6852_v60 = vld [vmem:[#allocation2 + $0x7c] sm:$0x1]  ;;  %v6860_v53 = vld [vmem:[#allocation2 + $0x84] sm:$0x1] }
 0x1a5   : > { %5508 = vmatpush3.bf16.msra.mxu1 %v5926_v39  ;;  %v1415_v35 = vshll.u32 %v6828_v52, 16  ;;  %v1476_v18 = vshrl.u32 %v1242_v17, 16  ;;  %v4983_v1 = vcombine.low %v1376_v62, %v1390_v0  ;;  %v1479_v3 = vshll.u32 %v1242_v17, 16  ;;  %v1891_v62 = vld [vmem:[#allocation2 + $0x8] sm:$0xe] }
 0x1a6   : > { %5509 = vmatprep.subr.bf16.mxu1 %v5929_v47  ;;  %5501 = vmatprep.mubr.bf16.mxu0 %v5002_v31  ;;  %v1490_v21 = vshrl.u32 %v1243_v46, 16  ;;  %v1493_v16 = vshll.u32 %v1243_v46, 16  ;;  %v1413_v39 = vrot.slane %v1412_v26, 4  ;;  %v5003_v32 = vcombine.low %v1242_v17, %v1243_v46  ;;  %v1893_v31 = vld [vmem:[#allocation2 + $0x18] sm:$0xe] }
 0x1a7   : > { %v1417_v59 = vrot.slane %v1415_v35, 5  ;;  %v1478_v30 = vrot.slane %v1476_v18, 4  ;;  %v1481_v51 = vrot.slane %v1479_v3, 5  ;;  %v1426_v44 = vor.u32 %v6813_v20, %v6807_v13  ;;  %v5935_v20 = vld [vmem:[#allocation8 + $0x98] sm:$0xff]   ;;  %v1894_v18 = vld [vmem:[#allocation2 + $0x20] sm:$0xe] }
 0x1a8   : > { %5462 = vmatmul.mubr.bf16.gmra.mxu1 %v4983_v1  ;;  %v1492_v50 = vrot.slane %v1490_v21, 4  ;;  %v1495_v41 = vrot.slane %v1493_v16, 5  ;;  %v1429_v6 = vshll.u32 %v6840_v25, 16  ;;  %v1440_v49 = vor.u32 %v6817_v10, %v6815_v48  ;;  %v5938_v3 = vld [vmem:[#allocation8 + $0x90] sm:$0xff]  }
 0x1a9   : > { %5510 = vmatpush3.bf16.msra.mxu1 %v5929_v47  ;;  %v1418_v45 = vsel %vm6606_vm9, %v1413_v39, %v1417_v59  ;;  %5502 = vmatmul.mubr.bf16.gmra.mxu0 %v5003_v32  ;;  %v1443_v58 = vshll.u32 %v6838_v4, 16  ;;  %v1427_v47 = vrot.slane %v1426_v44, 4  ;;  %v1454_v63 = vor.u32 %v1453_v40, %v1450_v56  ;;  %v5941_v39 = vld [vmem:[#allocation2 + $0x18] ss:$8 sps:$4 sm:$0xff]   ;;  %v1895_v44 = vld [vmem:[#allocation2 + $0x28] sm:$0xe] }
 0x1aa   : > { %5511 = vmatprep.subr.bf16.mxu1 %v5932_v11  ;;  %v4984_v13 = vcombine.low %v1404_v24, %v1418_v45  ;;  %5553 = vmatprep.mubr.bf16.mxu0 %v5937_v34  ;;  %v1457_v17 = vshll.u32 %v6842_v36, 16  ;;  %v1431_v48 = vrot.slane %v1429_v6, 5  ;;  %v1441_v10 = vrot.slane %v1440_v49, 4  ;;  %v5943_v45 = vld [vmem:[#allocation2 + $0x28] ss:$8 sps:$4 sm:$0xff]  }
 0x1ab   : > { %v1445_v38 = vrot.slane %v1443_v58, 5  ;;  %v1468_v46 = vor.u32 %v1467_v57, %v1464_v12  ;;  %v1455_v0 = vrot.slane %v1454_v63, 4  ;;  %v1471_v2 = vshll.u32 %v6852_v60, 16  ;;  %v1892_v57 = vld [vmem:[#allocation2 + $0x10] sm:$0xe] }
 0x1ac   : > { %5465 = vmatprep.mubr.bf16.mxu1 %v4984_v13  ;;  %v1459_v26 = vrot.slane %v1457_v17, 5  ;;  %v1482_v24 = vor.u32 %v1481_v51, %v1478_v30  ;;  %v1432_v56 = vsel %vm6606_vm9, %v1427_v47, %v1431_v48  ;;  %v1485_v12 = vshll.u32 %v6860_v53, 16  ;;  %v5945_v6 = vld [vmem:[#allocation8 + $0x170] sm:$0xff]   ;;  %v5940_v48 = vld [vmem:[#allocation8 + $0x88] sm:$0xff]  }
 0x1ad   : > { %5512 = vmatpush3.bf16.msra.mxu1 %v5932_v11  ;;  %v1446_v40 = vsel %vm6606_vm9, %v1441_v10, %v1445_v38  ;;  %v1469_v35 = vrot.slane %v1468_v46, 4  ;;  %v1473_v16 = vrot.slane %v1471_v2, 5  ;;  %v1496_v30 = vor.u32 %v1495_v41, %v1492_v50  ;;  %v1896_v17 = vld [vmem:[#allocation2 + $0x30] sm:$0xe]  ;;  %v1897_v46 = vld [vmem:[#allocation2 + $0x38] sm:$0xe] }
 0x1ae   : > { %5513 = vmatprep.subr.bf16.mxu1 %v5935_v20  ;;  %v4985_v1 = vcombine.low %v1432_v56, %v1446_v40  ;;  %v1460_v21 = vsel %vm6606_vm9, %v1455_v0, %v1459_v26  ;;  %v1483_v11 = vrot.slane %v1482_v24, 4  ;;  %v1487_v59 = vrot.slane %v1485_v12, 5  ;;  %v1901_v0 = vld [vmem:[#allocation2 + $0x68] sm:$0xe]  ;;  %v6915_v56 = vld [vmem:[#allocation2 + $0x14] sm:$0x1] }
 0x1af   : > { %v1499_v32 = vshll.u32 %v6863_v7, 16  ;;  %v5013_v51 = vrot.slane %v1891_v62, 9  ;;  %v1474_v34 = vsel %vm6606_vm9, %v1469_v35, %v1473_v16  ;;  %v5014_v49 = vrot.slane %v1892_v57, 9  ;;  %v1899_v62 = vld [vmem:[#allocation2 + $0x58] sm:$0xe]  ;;  %v5944_v35 = vld [vmem:[#allocation8 + $0x80] sm:$0xff]  }
 0x1b0   : > { %5466 = vmatmul.mubr.bf16.gmra.mxu1 %v4985_v1  ;;  %v5015_v58 = vrot.slane %v1893_v31, 9  ;;  %v5016_v13 = vrot.slane %v1894_v18, 9  ;;  %v4986_v47 = vcombine.low %v1460_v21, %v1474_v34  ;;  %v1488_v63 = vsel %vm6606_vm9, %v1483_v11, %v1487_v59  ;;  %v2923_v26 = vld [vmem:[#allocation2 + $0x8] sm:$0xe]  ;;  %v2924_v40 = vld [vmem:[#allocation2 + $0x10] sm:$0xe] }
 0x1b1   : > { %5514 = vmatpush3.bf16.msra.mxu1 %v5935_v20  ;;  %5554 = vmatmul.mubr.bf16.vlgmr.msra.gmra.mxu0 %v5941_v39  ;;  %v1497_v50 = vrot.slane %v1496_v30, 4  ;;  %v1501_v41 = vrot.slane %v1499_v32, 5  ;;  %v1948_v10 = vsel %vm6612_vm10, %v5013_v51, %v1947_v42  ;;  %v6885_v20 = vsel %vm6612_vm10, %v5014_v49, %v1951_v33  ;;  %v5948_v33 = vld [vmem:[#allocation8 + $0x168] sm:$0xff]   ;;  %v5946_v12 = vld [vmem:[#allocation2 + $0x38] ss:$8 sps:$4 sm:$0xff]  }
 0x1b2   : > { %5515 = vmatprep.subr.bf16.mxu1 %v5938_v3  ;;  %5557 = vmatprep.mubr.bf16.mxu0 %v5943_v45  ;;  %v1959_v38 = vrot.slane %v6775_v27, 5  ;;  %v6894_v5 = vsel %vm6612_vm10, %v5020_v28, %v1975_v29  ;;  %v5028_v55 = vcombine.low %v6624_v19, %v1948_v10  ;;  %v6904_v54 = vsel %vm6612_vm10, %v5015_v58, %v1955_v37  ;;  %v1900_v27 = vld [vmem:[#allocation2 + $0x60] sm:$0xe]  ;;  %v6911_v19 = vld [vmem:[#allocation2 + $0xc] sm:$0x1] }
 0x1b3   : > { %5469 = vmatprep.mubr.bf16.mxu1 %v4986_v47  ;;  %v1502_v42 = vsel %vm6606_vm9, %v1497_v50, %v1501_v41  ;;  %5602 = vmatpush3.bf16.msra.mxu0 %v6822_v22  ;;  %v5017_v15 = vrot.slane %v1895_v44, 9  ;;  %v1963_v29 = vrot.slane %v6786_v43, 5  ;;  %v5018_v22 = vrot.slane %v1896_v17, 9  ;;  %v1902_v16 = vld [vmem:[#allocation2 + $0x70] sm:$0xe]  ;;  %v5954_v17 = vld [vmem:[#allocation8 + $0x158] sm:$0xff]  }
 0x1b4   : > { %v4987_v31 = vcombine.low %v1488_v63, %v1502_v42  ;;  %5603 = vmatprep.subr.bf16.mxu0 %v5945_v6  ;;  %v6908_v28 = vsel %vm6612_vm10, %v5016_v13, %v1959_v38  ;;  %v1967_v61 = vrot.slane %v6803_v8, 5  ;;  %v5019_v37 = vrot.slane %v1897_v46, 9  ;;  %v6931_v39 = vld [vmem:[#allocation2 + $0x1c] sm:$0x1]  ;;  %v1903_v32 = vld [vmem:[#allocation2 + $0x78] sm:$0xe] }
 0x1b5   : > { %5516 = vmatpush3.bf16.msra.mxu1 %v5938_v3  ;;  %v1971_v2 = vrot.slane %v6809_v23, 5  ;;  %v5021_v24 = vrot.slane %v1899_v62, 9  ;;  %v6919_v43 = vsel %vm6612_vm10, %v5017_v15, %v1963_v29  ;;  %v1979_v57 = vrot.slane %v6828_v52, 5  ;;  %v5951_v52 = vld [vmem:[#allocation8 + $0x160] sm:$0xff]   ;;  %v2925_v44 = vld [vmem:[#allocation2 + $0x18] sm:$0xe] }
 0x1b6   : > { %5517 = vmatprep.subr.bf16.mxu1 %v5940_v48  ;;  %v5022_v18 = vrot.slane %v1900_v27, 9  ;;  %v1983_v1 = vrot.slane %v6840_v25, 5  ;;  %v5029_v8 = vcombine.low %v6885_v20, %v6904_v54  ;;  %v5030_v23 = vcombine.low %v6908_v28, %v6919_v43  ;;  %v6946_v51 = vld [vmem:[#allocation2 + $0x24] sm:$0x1]  ;;  %v5949_v34 = vld [vmem:[#allocation2 + $0x58] ss:$8 sps:$4 sm:$0xff]  }
 0x1b7   : > { %5604 = vmatpush3.bf16.msra.mxu0 %v5945_v6  ;;  %v6929_v3 = vsel %vm6612_vm10, %v5018_v22, %v1967_v61  ;;  %v5023_v21 = vrot.slane %v1901_v0, 9  ;;  %v6935_v25 = vsel %vm6612_vm10, %v5019_v37, %v1971_v2  ;;  %v6939_v11 = vsel %vm6612_vm10, %v5021_v24, %v1979_v57  ;;  %v5947_v13 = vld [vmem:[#allocation8 + $0x138] sm:$0xff]   ;;  %v2926_v41 = vld [vmem:[#allocation2 + $0x20] sm:$0xe]  ;;  %v6962_v42 = vld [vmem:[#allocation8 + $0x130] sm:$0xff]  }
 0x1b8   : > { %5470 = vmatmul.mubr.bf16.gmra.mxu1 %v4987_v31  ;;  %5605 = vmatprep.subr.bf16.mxu0 %v5948_v33  ;;  %v6943_v59 = vsel %vm6612_vm10, %v5022_v18, %v1983_v1  ;;  %v1987_v30 = vrot.slane %v6838_v4, 5  ;;  %v5031_v45 = vcombine.low %v6929_v3, %v6935_v25  ;;  %v5076_v6 = vrot.slane %v2923_v26, 9  ;;  %v1904_v62 = vld [vmem:[#allocation2 + $0x80] sm:$0xe]  ;;  %v1905_v27 = vld [vmem:[#allocation2 + $0x88] sm:$0xe] }
 0x1b9   : > { %5518 = vmatpush3.bf16.msra.mxu1 %v5940_v48  ;;  %5521 = vmatprep.mubr.bf16.mxu1 %v5028_v55  ;;  %v2973_v49 = vrot.slane %v6911_v19, 5  ;;  %v5077_v58 = vrot.slane %v2924_v40, 9  ;;  %v2977_v47 = vrot.slane %v6915_v56, 5  ;;  %v5024_v63 = vrot.slane %v1902_v16, 9  ;;  %v2927_v31 = vld [vmem:[#allocation2 + $0x28] sm:$0xe] }
 0x1ba   : > { %5519 = vmatprep.subr.bf16.mxu1 %v5944_v35  ;;  %5558 = vmatmul.mubr.bf16.gmra.mxu0 %v5946_v12  ;;  %v6953_v4 = vsel %vm6612_vm10, %v5023_v21, %v1987_v30  ;;  %v1991_v50 = vrot.slane %v6842_v36, 5  ;;  %v5032_v48 = vcombine.low %v6894_v5, %v6939_v11  ;;  %v5025_v38 = vrot.slane %v1903_v32, 9  ;;  %v6982_v26 = vld [vmem:[#allocation2 + $0x2c] sm:$0x1]  ;;  %v2928_v61 = vld [vmem:[#allocation2 + $0x30] sm:$0xe] }
 0x1bb   : > { %5561 = vmatprep.mubr.bf16.mxu0 %v5949_v34  ;;  %5606 = vmatpush3.bf16.msra.mxu0 %v5948_v33  ;;  %v5033_v10 = vcombine.low %v6943_v59, %v6953_v4  ;;  %v1995_v46 = vrot.slane %v6852_v60, 5  ;;  %v6966_v36 = vsel %vm6612_vm10, %v5076_v6, %v2973_v49  ;;  %v6970_v55 = vsel %vm6612_vm10, %v5077_v58, %v2977_v47  ;;  %v5952_v37 = vld [vmem:[#allocation2 + $0x68] ss:$8 sps:$4 sm:$0xff]   ;;  %v6989_v12 = vld [vmem:[#allocation2 + $0x34] sm:$0x1] }
 0x1bc   : > { %5607 = vmatprep.subr.bf16.mxu0 %v5951_v52  ;;  %v5078_v33 = vrot.slane %v2925_v44, 9  ;;  %v2981_v15 = vrot.slane %v6931_v39, 5  ;;  %v6975_v60 = vsel %vm6612_vm10, %v5024_v63, %v1991_v50  ;;  %v5079_v22 = vrot.slane %v2926_v41, 9  ;;  %v2457_v57 = vld [vmem:[#allocation2 + $0x8] sm:$0xf]  ;;  %v5957_v1 = vld [vmem:[#allocation8 + $0x150] sm:$0xff]  }
 0x1bd   : > { %5520 = vmatpush3.bf16.msra.mxu1 %v5944_v35  ;;  %v6979_v29 = vsel %vm6612_vm10, %v5025_v38, %v1995_v46  ;;  %v2985_v0 = vrot.slane %v6946_v51, 5  ;;  %v5092_v2 = vcombine.low %v6966_v36, %v6970_v55  ;;  %v5026_v40 = vrot.slane %v1904_v62, 9  ;;  %v5955_v18 = vld [vmem:[#allocation2 + $0x78] ss:$8 sps:$4 sm:$0xff]   ;;  %v2459_v44 = vld [vmem:[#allocation2 + $0x10] sm:$0xf] }
 0x1be   : > { %5569 = vmatprep.subr.bf16.mxu1 %v5947_v13  ;;  %v5034_v24 = vcombine.low %v6975_v60, %v6979_v29  ;;  %v1999_v35 = vrot.slane %v6860_v53, 5  ;;  %v5027_v16 = vrot.slane %v1905_v27, 9  ;;  %v2003_v30 = vrot.slane %v6863_v7, 5  ;;  %v7008_v49 = vld [vmem:[#allocation2 + $0x3c] sm:$0x1]  ;;  %v5953_v20 = vld [vmem:[#allocation8 + $0x128] sm:$0xff]  }
 0x1bf   : > { %5608 = vmatpush3.bf16.msra.mxu0 %v5951_v52  ;;  %v6993_v21 = vsel %vm6612_vm10, %v5079_v22, %v2985_v0  ;;  %v5080_v32 = vrot.slane %v2927_v31, 9  ;;  %v7001_v53 = vsel %vm6612_vm10, %v5078_v33, %v2981_v15  ;;  %v2989_v34 = vrot.slane %v6982_v26, 5  ;;  %v2929_v7 = vld [vmem:[#allocation2 + $0x38] sm:$0xe]  ;;  %v7018_v63 = vld [vmem:[#allocation2 + $0x44] sm:$0x1] }
 0x1c0   : > { %5522 = vmatmul.mubr.bf16.vlgmr.msra.gmra.mxu1 %v5029_v8  ;;  %5609 = vmatprep.subr.bf16.mxu0 %v5954_v17  ;;  %v7005_v52 = vsel %vm6612_vm10, %v5026_v40, %v1999_v35  ;;  %v5081_v6 = vrot.slane %v2928_v61, 9  ;;  %v7015_v54 = vsel %vm6612_vm10, %v5027_v16, %v2003_v30  ;;  %v2993_v8 = vrot.slane %v6989_v12, 5  ;;  %v2930_v50 = vld [vmem:[#allocation2 + $0x40] sm:$0xe]  ;;  %v2461_v33 = vld [vmem:[#allocation2 + $0x18] sm:$0xf] }
 0x1c1   : > { %5570 = vmatpush3.bf16.msra.mxu1 %v5947_v13  ;;  %5525 = vmatprep.mubr.bf16.mxu1 %v5030_v23  ;;  %v2490_v58 = vshrl.u32 %v2457_v57, 16  ;;  %v2493_v47 = vshll.u32 %v2457_v57, 16  ;;  %v5093_v13 = vcombine.low %v7001_v53, %v6993_v21  ;;  %v5035_v28 = vcombine.low %v7005_v52, %v7015_v54  ;;  %v5960_v15 = vld [vmem:[#allocation8 + $0x148] sm:$0xff]   ;;  %v2463_v35 = vld [vmem:[#allocation2 + $0x20] sm:$0xf] }
 0x1c2   : > { %5571 = vmatprep.subr.bf16.mxu1 %v6962_v42  ;;  %5562 = vmatmul.mubr.bf16.gmra.mxu0 %v5952_v37  ;;  %v2499_v43 = vshll.u32 %v6911_v19, 16  ;;  %v2504_v23 = vshrl.u32 %v2459_v44, 16  ;;  %v7028_v41 = vsel %vm6612_vm10, %v5080_v32, %v2989_v34  ;;  %v2507_v62 = vshll.u32 %v2459_v44, 16  ;;  %v5958_v57 = vld [vmem:[#allocation2 + $0x88] ss:$8 sps:$4 sm:$0xff]  }
 0x1c3   : > { %5565 = vmatprep.mubr.bf16.mxu0 %v5955_v18  ;;  %5610 = vmatpush3.bf16.msra.mxu0 %v5954_v17  ;;  %v2492_v38 = vrot.slane %v2490_v58, 4  ;;  %v2495_v46 = vrot.slane %v2493_v47, 5  ;;  %v7032_v27 = vsel %vm6612_vm10, %v5081_v6, %v2993_v8  ;;  %v2513_v22 = vshll.u32 %v6915_v56, 16  ;;  %v5956_v17 = vld [vmem:[#allocation8 + $0x120] sm:$0xff]   ;;  %v7038_v44 = vld [vmem:[#allocation2 + $0x5c] sm:$0x1] }
 0x1c4   : > { %5611 = vmatprep.subr.bf16.mxu0 %v5957_v1  ;;  %v2501_v31 = vrot.slane %v2499_v43, 5  ;;  %v2506_v19 = vrot.slane %v2504_v23, 4  ;;  %v2509_v61 = vrot.slane %v2507_v62, 5  ;;  %v5082_v37 = vrot.slane %v2929_v7, 9  ;;  %v5962_v7 = vld [vmem:[#allocation8 + $0x140] sm:$0xff]   ;;  %v5968_v29 = vld [vmem:[#allocation8 + $0x1e8] sm:$0xff]  }
 0x1c5   : > { %5572 = vmatpush3.bf16.msra.mxu1 %v6962_v42  ;;  %v2496_v0 = vor.u32 %v2495_v46, %v2492_v38  ;;  %v2997_v40 = vrot.slane %v7008_v49, 5  ;;  %v2515_v18 = vrot.slane %v2513_v22, 5  ;;  %v5083_v16 = vrot.slane %v2930_v50, 9  ;;  %v2931_v43 = vld [vmem:[#allocation2 + $0x58] sm:$0xe] }
 0x1c6   : > { %5573 = vmatprep.subr.bf16.mxu1 %v5953_v20  ;;  %v3001_v30 = vrot.slane %v7018_v63, 5  ;;  %v2518_v32 = vshrl.u32 %v2461_v33, 16  ;;  %v5094_v56 = vcombine.low %v7028_v41, %v7032_v27  ;;  %v2510_v34 = vor.u32 %v2509_v61, %v2506_v19  ;;  %v7059_v50 = vld [vmem:[#allocation2 + $0x64] sm:$0x1]  ;;  %v2932_v38 = vld [vmem:[#allocation2 + $0x60] sm:$0xe] }
 0x1c7   : > { %5612 = vmatpush3.bf16.msra.mxu0 %v5957_v1  ;;  %v2497_v42 = vrot.slane %v2496_v0, 4  ;;  %v2521_v6 = vshll.u32 %v2461_v33, 16  ;;  %v2527_v47 = vshll.u32 %v6931_v39, 16  ;;  %v2532_v1 = vshrl.u32 %v2463_v35, 16  ;;  %v5959_v39 = vld [vmem:[#allocation8 + $0x118] sm:$0xff]   ;;  %v5965_v41 = vld [vmem:[#allocation8 + $0x100] sm:$0xff]  }
 0x1c8   : > { %5526 = vmatmul.mubr.bf16.gmra.mxu1 %v5031_v45  ;;  %5613 = vmatprep.subr.bf16.mxu0 %v5960_v15  ;;  %v7047_v8 = vsel %vm6612_vm10, %v5083_v16, %v3001_v30  ;;  %v2520_v58 = vrot.slane %v2518_v32, 4  ;;  %v2511_v25 = vrot.slane %v2510_v34, 4  ;;  %v7057_v45 = vsel %vm6612_vm10, %v5082_v37, %v2997_v40  ;;  %v2465_v46 = vld [vmem:[#allocation2 + $0x28] sm:$0xf]  ;;  %v2467_v22 = vld [vmem:[#allocation2 + $0x30] sm:$0xf] }
 0x1c9   : > { %5574 = vmatpush3.bf16.msra.mxu1 %v5953_v20  ;;  %5529 = vmatprep.mubr.bf16.mxu1 %v5032_v48  ;;  %v2502_v3 = vsel %vm6606_vm9, %v2497_v42, %v2501_v31  ;;  %v2523_v23 = vrot.slane %v2521_v6, 5  ;;  %v5095_v20 = vcombine.low %v7057_v45, %v7047_v8  ;;  %v2534_v5 = vrot.slane %v2532_v1, 4  ;;  %v5964_v0 = vld [vmem:[#allocation8 + $0x1f8] sm:$0xff]   ;;  %v7077_v32 = vld [vmem:[#allocation2 + $0x6c] sm:$0x1]  ;;  %v5966_v34 = vld [vmem:[#allocation8 + $0x1f0] sm:$0xff]  }
 0x1ca   : > { %5575 = vmatprep.subr.bf16.mxu1 %v5956_v17  ;;  %5566 = vmatmul.mubr.bf16.gmra.mxu0 %v5958_v57  ;;  %v2535_v11 = vshll.u32 %v2463_v35, 16  ;;  %v2541_v48 = vshll.u32 %v6946_v51, 16  ;;  %v2516_v62 = vsel %vm6606_vm9, %v2511_v25, %v2515_v18  ;;  %v5084_v31 = vrot.slane %v2931_v43, 9  ;;  %v2933_v42 = vld [vmem:[#allocation2 + $0x68] sm:$0xe] }
 0x1cb   : > { %5614 = vmatpush3.bf16.msra.mxu0 %v5960_v15  ;;  %5617 = vmatprep.mubr.bf16.mxu0 %v5092_v2  ;;  %v2524_v33 = vor.u32 %v2523_v23, %v2520_v58  ;;  %v3005_v19 = vrot.slane %v7038_v44, 5  ;;  %v7070_v61 = vcombine.low %v2502_v3, %v2516_v62  ;;  %v2529_v37 = vrot.slane %v2527_v47, 5  ;;  %v5961_v15 = vld [vmem:[#allocation8 + $0x110] sm:$0xff]   ;;  %v2471_v60 = vld [vmem:[#allocation2 + $0x40] sm:$0xf] }
 0x1cc   : > { %5615 = vmatprep.subr.bf16.mxu0 %v5962_v7  ;;  %v2537_v51 = vrot.slane %v2535_v11, 5  ;;  %v5085_v40 = vrot.slane %v2932_v38, 9  ;;  %v2543_v36 = vrot.slane %v2541_v48, 5  ;;  %v3009_v55 = vrot.slane %v7059_v50, 5  ;;  %v2934_v1 = vld [vmem:[#allocation2 + $0x70] sm:$0xe] }
 0x1cd   : > { %5576 = vmatpush3.bf16.msra.mxu1 %v5956_v17  ;;  %v2525_v35 = vrot.slane %v2524_v33, 4  ;;  %v2546_v2 = vshrl.u32 %v2465_v46, 16  ;;  %v7075_v18 = vsel %vm6612_vm10, %v5084_v31, %v3005_v19  ;;  %v2549_v16 = vshll.u32 %v2465_v46, 16  ;;  %v7091_v23 = vld [vmem:[#allocation2 + $0x74] sm:$0x1] }
 0x1ce   : > { %5577 = vmatprep.subr.bf16.mxu1 %v5959_v39  ;;  %v2538_v57 = vor.u32 %v2537_v51, %v2534_v5  ;;  %v2560_v30 = vshrl.u32 %v2467_v22, 16  ;;  %v7081_v17 = vsel %vm6612_vm10, %v5085_v40, %v3009_v55  ;;  %v2555_v58 = vshll.u32 %v6982_v26, 16  ;;  %v2469_v38 = vld [vmem:[#allocation2 + $0x38] sm:$0xf]  ;;  %v5963_v5 = vld [vmem:[#allocation8 + $0x108] sm:$0xff]  }
 0x1cf   : > { %5616 = vmatpush3.bf16.msra.mxu0 %v5962_v7  ;;  %v2548_v6 = vrot.slane %v2546_v2, 4  ;;  %v2563_v47 = vshll.u32 %v2467_v22, 16  ;;  %v2530_v43 = vsel %vm6606_vm9, %v2525_v35, %v2529_v37  ;;  %v5096_v7 = vcombine.low %v7075_v18, %v7081_v17  ;;  %v7109_v19 = vld [vmem:[#allocation2 + $0x7c] sm:$0x1]  ;;  %v7111_v22 = vld [vmem:[#allocation2 + $0x84] sm:$0x1] }
 0x1d0   : > { %5530 = vmatmul.mubr.bf16.gmra.mxu1 %v5033_v10  ;;  %5665 = vmatprep.subr.bf16.mxu0 %v5964_v0  ;;  %v2539_v3 = vrot.slane %v2538_v57, 4  ;;  %v2551_v25 = vrot.slane %v2549_v16, 5  ;;  %v2562_v26 = vrot.slane %v2560_v30, 4  ;;  %v2569_v4 = vshll.u32 %v6989_v12, 16  ;;  %v2935_v37 = vld [vmem:[#allocation2 + $0x78] sm:$0xe] }
 0x1d1   : > { %5578 = vmatpush3.bf16.msra.mxu1 %v5959_v39  ;;  %5533 = vmatprep.mubr.bf16.mxu1 %v5034_v24  ;;  %v2565_v59 = vrot.slane %v2563_v47, 5  ;;  %v5086_v10 = vrot.slane %v2933_v42, 9  ;;  %v3013_v39 = vrot.slane %v7077_v32, 5  ;;  %v5087_v46 = vrot.slane %v2934_v1, 9  ;;  %v2473_v30 = vld [vmem:[#allocation2 + $0x58] sm:$0xf] }
 0x1d2   : > { %5579 = vmatprep.subr.bf16.mxu1 %v5961_v15  ;;  %5618 = vmatmul.mubr.bf16.vlgmr.msra.gmra.mxu0 %v5093_v13  ;;  %v2544_v11 = vsel %vm6606_vm9, %v2539_v3, %v2543_v36  ;;  %v2552_v48 = vor.u32 %v2551_v25, %v2548_v6  ;;  %v2557_v12 = vrot.slane %v2555_v58, 5  ;;  %v3017_v21 = vrot.slane %v7091_v23, 5  ;;  %v5967_v42 = vld [vmem:[#allocation8 + $0x1b8] sm:$0xff]   ;;  %v5970_v6 = vld [vmem:[#allocation8 + $0x1e0] sm:$0xff]   ;;  %v7135_v52 = vld [vmem:[#allocation2 + $0x8c] sm:$0x1] }
 0x1d3   : > { %5621 = vmatprep.mubr.bf16.mxu0 %v5094_v56  ;;  %5666 = vmatpush3.bf16.msra.mxu0 %v5964_v0  ;;  %v7106_v24 = vcombine.low %v2530_v43, %v2544_v11  ;;  %v2566_v62 = vor.u32 %v2565_v59, %v2562_v26  ;;  %v2571_v13 = vrot.slane %v2569_v4, 5  ;;  %v2574_v33 = vshrl.u32 %v2469_v38, 16  ;;  %v2475_v43 = vld [vmem:[#allocation2 + $0x60] sm:$0xf]  ;;  %v2937_v54 = vld [vmem:[#allocation2 + $0x88] sm:$0xe] }
 0x1d4   : > { %5667 = vmatprep.subr.bf16.mxu0 %v5966_v34  ;;  %v2553_v53 = vrot.slane %v2552_v48, 4  ;;  %v2577_v31 = vshll.u32 %v2469_v38, 16  ;;  %v7115_v56 = vsel %vm6612_vm10, %v5087_v46, %v3017_v21  ;;  %v2583_v0 = vshll.u32 %v7008_v49, 16  ;;  %v7150_v18 = vld [vmem:[#allocation2 + $0x94] sm:$0x1] }
 0x1d5   : > { %5580 = vmatpush3.bf16.msra.mxu1 %v5961_v15  ;;  %v2567_v27 = vrot.slane %v2566_v62, 4  ;;  %v2588_v51 = vshrl.u32 %v2471_v60, 16  ;;  %v7122_v35 = vsel %vm6612_vm10, %v5086_v10, %v3013_v39  ;;  %v2576_v36 = vrot.slane %v2574_v33, 4  ;;  %v2936_v15 = vld [vmem:[#allocation2 + $0x80] sm:$0xe] }
 0x1d6   : > { %5581 = vmatprep.subr.bf16.mxu1 %v5963_v5  ;;  %v2558_v40 = vsel %vm6606_vm9, %v2553_v53, %v2557_v12  ;;  %v2579_v55 = vrot.slane %v2577_v31, 5  ;;  %v5097_v57 = vcombine.low %v7122_v35, %v7115_v56  ;;  %v2591_v16 = vshll.u32 %v2471_v60, 16  ;;  %v2938_v39 = vld [vmem:[#allocation2 + $0x90] sm:$0xe]  ;;  %v2477_v12 = vld [vmem:[#allocation2 + $0x68] sm:$0xf] }
 0x1d7   : > { %5668 = vmatpush3.bf16.msra.mxu0 %v5966_v34  ;;  %v2572_v2 = vsel %vm6606_vm9, %v2567_v27, %v2571_v13  ;;  %v2590_v49 = vrot.slane %v2588_v51, 4  ;;  %v2585_v47 = vrot.slane %v2583_v0, 5  ;;  %v2597_v34 = vshll.u32 %v7018_v63, 16  ;;  %v2479_v27 = vld [vmem:[#allocation2 + $0x70] sm:$0xf] }
 0x1d8   : > { %5534 = vmatmul.mubr.bf16.gmra.mxu1 %v5035_v28  ;;  %5669 = vmatprep.subr.bf16.mxu0 %v5968_v29  ;;  %v2580_v58 = vor.u32 %v2579_v55, %v2576_v36  ;;  %v5088_v1 = vrot.slane %v2935_v37, 9  ;;  %v2593_v3 = vrot.slane %v2591_v16, 5  ;;  %v3021_v25 = vrot.slane %v7109_v19, 5  ;;  %v5972_v28 = vld [vmem:[#allocation8 + $0x1d8] sm:$0xff]   ;;  %v5974_v55 = vld [vmem:[#allocation8 + $0x1d0] sm:$0xff]   ;;  %v5971_v16 = vld [vmem:[#allocation8 + $0x1a8] sm:$0xff]  }
 0x1d9   : > { %5582 = vmatpush3.bf16.msra.mxu1 %v5963_v5  ;;  %5585 = vmatprep.mubr.bf16.mxu1 %v7070_v61  ;;  %v5089_v38 = vrot.slane %v2936_v15, 9  ;;  %v3025_v26 = vrot.slane %v7111_v22, 5  ;;  %v5062_v63 = vcombine.low %v2558_v40, %v2572_v2  ;;  %v2602_v4 = vshrl.u32 %v2473_v30, 16 }
 0x1da   : > { %5583 = vmatprep.subr.bf16.mxu1 %v5965_v41  ;;  %5622 = vmatmul.mubr.bf16.gmra.mxu0 %v5095_v20  ;;  %v2581_v59 = vrot.slane %v2580_v58, 4  ;;  %v2605_v10 = vshll.u32 %v2473_v30, 16  ;;  %v2594_v61 = vor.u32 %v2593_v3, %v2590_v49  ;;  %v2599_v5 = vrot.slane %v2597_v34, 5 }
 0x1db   : > { %5625 = vmatprep.mubr.bf16.mxu0 %v5096_v7  ;;  %5670 = vmatpush3.bf16.msra.mxu0 %v5968_v29  ;;  %v3026_v11 = vsel %vm6612_vm10, %v5089_v38, %v3025_v26  ;;  %v2611_v48 = vshll.u32 %v7038_v44, 16  ;;  %v3022_v45 = vsel %vm6612_vm10, %v5088_v1, %v3021_v25  ;;  %v2604_v20 = vrot.slane %v2602_v4, 4  ;;  %v5969_v44 = vld [vmem:[#allocation8 + $0x1b0] sm:$0xff]   ;;  %v5976_v1 = vld [vmem:[#allocation8 + $0x1c8] sm:$0xff]   ;;  %v3490_v38 = vld [vmem:[#allocation2 + $0x18] sm:$0xf] }
 0x1dc   : > { %5671 = vmatprep.subr.bf16.mxu0 %v5970_v6  ;;  %v2586_v8 = vsel %vm6606_vm9, %v2581_v59, %v2585_v47  ;;  %v2607_v46 = vrot.slane %v2605_v10, 5  ;;  %v2595_v17 = vrot.slane %v2594_v61, 4  ;;  %v5098_v7 = vcombine.low %v3022_v45, %v3026_v11 }
 0x1dd   : > { %5584 = vmatpush3.bf16.msra.mxu1 %v5965_v41  ;;  %v2616_v60 = vshrl.u32 %v2475_v43, 16  ;;  %v2619_v29 = vshll.u32 %v2475_v43, 16  ;;  %v2625_v21 = vshll.u32 %v7059_v50, 16  ;;  %v5090_v53 = vrot.slane %v2937_v54, 9  ;;  %v5973_v54 = vld [vmem:[#allocation8 + $0x1a0] sm:$0xff]  }
 0x1de   : > { %5633 = vmatprep.subr.bf16.mxu1 %v5967_v42  ;;  %v2608_v62 = vor.u32 %v2607_v46, %v2604_v20  ;;  %v3029_v13 = vrot.slane %v7135_v52, 5  ;;  %v2600_v33 = vsel %vm6606_vm9, %v2595_v17, %v2599_v5  ;;  %v5091_v41 = vrot.slane %v2938_v39, 9  ;;  %v7173_v5 = vld [vmem:[#allocation2 + $0x1c] sm:$0x1] }
 0x1df   : > { %5672 = vmatpush3.bf16.msra.mxu0 %v5970_v6  ;;  %v2618_v31 = vrot.slane %v2616_v60, 4  ;;  %v2621_v37 = vrot.slane %v2619_v29, 5  ;;  %v5063_v0 = vcombine.low %v2586_v8, %v2600_v33  ;;  %v2613_v40 = vrot.slane %v2611_v48, 5  ;;  %v2481_v48 = vld [vmem:[#allocation2 + $0x78] sm:$0xf]  ;;  %v5978_v60 = vld [vmem:[#allocation8 + $0x1c0] sm:$0xff]  }
 0x1e0   : > { %5586 = vmatmul.mubr.bf16.vlgmr.msra.gmra.mxu1 %v7106_v24  ;;  %5673 = vmatprep.subr.bf16.mxu0 %v5972_v28  ;;  %v2609_v51 = vrot.slane %v2608_v62, 4  ;;  %v2627_v36 = vrot.slane %v2625_v21, 5  ;;  %v3033_v15 = vrot.slane %v7150_v18, 5  ;;  %v2630_v2 = vshrl.u32 %v2477_v12, 16  ;;  %v2483_v62 = vld [vmem:[#allocation2 + $0x80] sm:$0xf] }
 0x1e1   : > { %5634 = vmatpush3.bf16.msra.mxu1 %v5967_v42  ;;  %5589 = vmatprep.mubr.bf16.mxu1 %v5062_v63  ;;  %v2622_v50 = vor.u32 %v2621_v37, %v2618_v31  ;;  %v2633_v49 = vshll.u32 %v2477_v12, 16  ;;  %v3030_v24 = vsel %vm6612_vm10, %v5090_v53, %v3029_v13  ;;  %v2639_v30 = vshll.u32 %v7077_v32, 16  ;;  %v3488_v42 = vld [vmem:[#allocation2 + $0x10] sm:$0xf]  ;;  %v7168_v32 = vld [vmem:[#allocation2 + $0x14] sm:$0x1] }
 0x1e2   : > { %5635 = vmatprep.subr.bf16.mxu1 %v5969_v44  ;;  %5626 = vmatmul.mubr.bf16.gmra.mxu0 %v5097_v57  ;;  %v2644_v6 = vshrl.u32 %v2479_v27, 16  ;;  %v2647_v58 = vshll.u32 %v2479_v27, 16  ;;  %v3034_v34 = vsel %vm6612_vm10, %v5091_v41, %v3033_v15  ;;  %v2632_v43 = vrot.slane %v2630_v2, 4  ;;  %v5975_v53 = vld [vmem:[#allocation8 + $0x198] sm:$0xff]   ;;  %v3492_v41 = vld [vmem:[#allocation2 + $0x20] sm:$0xf] }
 0x1e3   : > { %5629 = vmatprep.mubr.bf16.mxu0 %v5098_v7  ;;  %5674 = vmatpush3.bf16.msra.mxu0 %v5972_v28  ;;  %v2623_v47 = vrot.slane %v2622_v50, 4  ;;  %v2635_v3 = vrot.slane %v2633_v49, 5  ;;  %v2614_v56 = vsel %vm6606_vm9, %v2609_v51, %v2613_v40  ;;  %v5099_v35 = vcombine.low %v3030_v24, %v3034_v34  ;;  %v7182_v2 = vld [vmem:[#allocation2 + $0x24] sm:$0x1]  ;;  %v5977_v34 = vld [vmem:[#allocation8 + $0x190] sm:$0xff]  }
 0x1e4   : > { %5675 = vmatprep.subr.bf16.mxu0 %v5974_v55  ;;  %v2646_v57 = vrot.slane %v2644_v6, 4  ;;  %v2649_v25 = vrot.slane %v2647_v58, 5  ;;  %v2653_v28 = vshll.u32 %v7091_v23, 16  ;;  %v3521_v59 = vshrl.u32 %v3488_v42, 16 }
 0x1e5   : > { %5636 = vmatpush3.bf16.msra.mxu1 %v5969_v44  ;;  %v2628_v26 = vsel %vm6606_vm9, %v2623_v47, %v2627_v36  ;;  %v2636_v63 = vor.u32 %v2635_v3, %v2632_v43  ;;  %v2641_v10 = vrot.slane %v2639_v30, 5  ;;  %v3524_v11 = vshll.u32 %v3488_v42, 16  ;;  %v3494_v30 = vld [vmem:[#allocation2 + $0x28] sm:$0xf]  ;;  %v7187_v3 = vld [vmem:[#allocation2 + $0x2c] sm:$0x1] }
 0x1e6   : > { %5637 = vmatprep.subr.bf16.mxu1 %v5971_v16  ;;  %v5064_v4 = vcombine.low %v2614_v56, %v2628_v26  ;;  %v2650_v61 = vor.u32 %v2649_v25, %v2646_v57  ;;  %v3523_v8 = vrot.slane %v3521_v59, 4  ;;  %v3530_v45 = vshll.u32 %v7168_v32, 16  ;;  %v2485_v26 = vld [vmem:[#allocation2 + $0x88] sm:$0xf] }
 0x1e7   : > { %5676 = vmatpush3.bf16.msra.mxu0 %v5974_v55  ;;  %v2637_v39 = vrot.slane %v2636_v63, 4  ;;  %v3535_v20 = vshrl.u32 %v3490_v38, 16  ;;  %v2655_v17 = vrot.slane %v2653_v28, 5  ;;  %v3526_v23 = vrot.slane %v3524_v11, 5  ;;  %v5979_v11 = vld [vmem:[#allocation8 + $0x188] sm:$0xff]  }
 0x1e8   : > { %5590 = vmatmul.mubr.bf16.gmra.mxu1 %v5063_v0  ;;  %5677 = vmatprep.subr.bf16.mxu0 %v5976_v1  ;;  %v2651_v46 = vrot.slane %v2650_v61, 4  ;;  %v3538_v7 = vshll.u32 %v3490_v38, 16  ;;  %v3544_v44 = vshll.u32 %v7173_v5, 16  ;;  %v2658_v21 = vshrl.u32 %v2481_v48, 16 }
 0x1e9   : > { %5638 = vmatpush3.bf16.msra.mxu1 %v5971_v16  ;;  %5593 = vmatprep.mubr.bf16.mxu1 %v5064_v4  ;;  %v2642_v29 = vsel %vm6606_vm9, %v2637_v39, %v2641_v10  ;;  %v3537_v12 = vrot.slane %v3535_v20, 4  ;;  %v3527_v33 = vor.u32 %v3526_v23, %v3523_v8  ;;  %v2661_v37 = vshll.u32 %v2481_v48, 16  ;;  %v2487_v4 = vld [vmem:[#allocation2 + $0x90] sm:$0xf] }
 0x1ea   : > { %5639 = vmatprep.subr.bf16.mxu1 %v5973_v54  ;;  %5630 = vmatmul.mubr.bf16.gmra.mxu0 %v5099_v35  ;;  %v2656_v13 = vsel %vm6606_vm9, %v2651_v46, %v2655_v17  ;;  %v3540_v31 = vrot.slane %v3538_v7, 5  ;;  %v3532_v0 = vrot.slane %v3530_v45, 5  ;;  %v2660_v51 = vrot.slane %v2658_v21, 4  ;;  %v3496_v21 = vld [vmem:[#allocation2 + $0x30] sm:$0xf] }
 0x1eb   : > { %v5065_v27 = vcombine.low %v2642_v29, %v2656_v13  ;;  %5678 = vmatpush3.bf16.msra.mxu0 %v5976_v1  ;;  %v2667_v40 = vshll.u32 %v7109_v19, 16  ;;  %v3528_v36 = vrot.slane %v3527_v33, 4  ;;  %v2663_v50 = vrot.slane %v2661_v37, 5 }
 0x1ec   : > { %v3541_v55 = vor.u32 %v3540_v31, %v3537_v12  ;;  %v2672_v15 = vshrl.u32 %v2483_v62, 16  ;;  %5679 = vmatprep.subr.bf16.mxu0 %v5978_v60  ;;  %v3546_v49 = vrot.slane %v3544_v44, 5  ;;  %v2675_v16 = vshll.u32 %v2483_v62, 16 }
 0x1ed   : > { %5640 = vmatpush3.bf16.msra.mxu1 %v5973_v54  ;;  %v2681_v24 = vshll.u32 %v7111_v22, 16  ;;  %v3549_v6 = vshrl.u32 %v3492_v41, 16  ;;  %v3533_v58 = vsel %vm6606_vm9, %v3528_v36, %v3532_v0  ;;  %v2664_v19 = vor.u32 %v2663_v50, %v2660_v51 }
 0x1ee   : > { %5641 = vmatprep.subr.bf16.mxu1 %v5975_v53  ;;  %v3542_v42 = vrot.slane %v3541_v55, 4  ;;  %v2674_v47 = vrot.slane %v2672_v15, 4  ;;  %v2669_v1 = vrot.slane %v2667_v40, 5  ;;  %v2677_v43 = vrot.slane %v2675_v16, 5 }
 0x1ef   : > { %5680 = vmatpush3.bf16.msra.mxu0 %v5978_v60  ;;  %v3551_v56 = vrot.slane %v3549_v6, 4  ;;  %v3552_v35 = vshll.u32 %v3492_v41, 16  ;;  %v2665_v57 = vrot.slane %v2664_v19, 4  ;;  %v3558_v25 = vshll.u32 %v7182_v2, 16  ;;  %v3498_v41 = vld [vmem:[#allocation2 + $0x38] sm:$0xf] }
 0x1f0   : > { %5594 = vmatmul.mubr.bf16.gmra.mxu1 %v5065_v27  ;;  %v3547_v22 = vsel %vm6606_vm9, %v3542_v42, %v3546_v49  ;;  %v3563_v38 = vshrl.u32 %v3494_v30, 16  ;;  %v2678_v63 = vor.u32 %v2677_v43, %v2674_v47  ;;  %v3566_v59 = vshll.u32 %v3494_v30, 16  ;;  %v5981_v27 = vld [vmem:[#allocation8 + $0x180] sm:$0xff]   ;;  %v7206_v30 = vld [vmem:[#allocation2 + $0x3c] sm:$0x1]  ;;  %5729 = vmatprep.subr.bf16.mxu0 %v5999_v14 }
 0x1f1   : > { %5642 = vmatpush3.bf16.msra.mxu1 %v5975_v53  ;;  %v5124_v54 = vcombine.low %v3533_v58, %v3547_v22  ;;  %v3554_v28 = vrot.slane %v3552_v35, 5  ;;  %v2670_v10 = vsel %vm6606_vm9, %v2665_v57, %v2669_v1  ;;  %v2683_v61 = vrot.slane %v2681_v24, 5  ;;  %v7198_v53 = vld [vmem:[#allocation2 + $0x34] sm:$0x1]  ;;  %v3500_v58 = vld [vmem:[#allocation2 + $0x40] sm:$0xf] }
 0x1f2   : > { %5643 = vmatprep.subr.bf16.mxu1 %v5977_v34  ;;  %v3565_v48 = vrot.slane %v3563_v38, 4  ;;  %v3572_v39 = vshll.u32 %v7187_v3, 16  ;;  %v2679_v8 = vrot.slane %v2678_v63, 4  ;;  %v3568_v20 = vrot.slane %v3566_v59, 5  ;;  %v7210_v1 = vld [vmem:[#allocation8 + $0x238] sm:$0xff]  }
 0x1f3   : > { %5681 = vmatprep.mubr.bf16.mxu0 %v5124_v54  ;;  %v3555_v45 = vor.u32 %v3554_v28, %v3551_v56  ;;  %v2686_v46 = vshrl.u32 %v2485_v26, 16  ;;  %v3560_v17 = vrot.slane %v3558_v25, 5  ;;  %v2689_v23 = vshll.u32 %v2485_v26, 16  ;;  %v3502_v57 = vld [vmem:[#allocation2 + $0x48] sm:$0xf] }
 0x1f4   : > { %v2695_v7 = vshll.u32 %v7135_v52, 16  ;;  %v2700_v60 = vshrl.u32 %v2487_v4, 16  ;;  %v2684_v29 = vsel %vm6606_vm9, %v2679_v8, %v2683_v61  ;;  %v3569_v44 = vor.u32 %v3568_v20, %v3565_v48 }
 0x1f5   : > { %5644 = vmatpush3.bf16.msra.mxu1 %v5977_v34  ;;  %v3556_v12 = vrot.slane %v3555_v45, 4  ;;  %v2688_v62 = vrot.slane %v2686_v46, 4  ;;  %v5066_v13 = vcombine.low %v2670_v10, %v2684_v29  ;;  %v3574_v33 = vrot.slane %v3572_v39, 5  ;;  %v7208_v34 = vld [vmem:[#allocation2 + $0x44] sm:$0x1] }
 0x1f6   : > { %5645 = vmatprep.subr.bf16.mxu1 %v5979_v11  ;;  %v2691_v31 = vrot.slane %v2689_v23, 5  ;;  %v2697_v37 = vrot.slane %v2695_v7, 5  ;;  %v3570_v0 = vrot.slane %v3569_v44, 4  ;;  %v2702_v52 = vrot.slane %v2700_v60, 4  ;;  %v3504_v39 = vld [vmem:[#allocation2 + $0x60] sm:$0xf] }
 0x1f7   : > { %v2703_v51 = vshll.u32 %v2487_v4, 16  ;;  %v2709_v40 = vshll.u32 %v7150_v18, 16  ;;  %5597 = vmatprep.mubr.bf16.mxu1 %v5066_v13  ;;  %v3577_v55 = vshrl.u32 %v3496_v21, 16  ;;  %v3580_v50 = vshll.u32 %v3496_v21, 16  ;;  %v7221_v60 = vld [vmem:[#allocation2 + $0x4c] sm:$0x1] }
 0x1f8   : > { %v2692_v36 = vor.u32 %v2691_v31, %v2688_v62  ;;  %v3586_v15 = vshll.u32 %v7198_v53, 16  ;;  %v3561_v49 = vsel %vm6606_vm9, %v3556_v12, %v3560_v17  ;;  %v3575_v16 = vsel %vm6606_vm9, %v3570_v0, %v3574_v33  ;;  %v3506_v17 = vld [vmem:[#allocation2 + $0x68] sm:$0xf]  ;;  %v7223_v44 = vld [vmem:[#allocation2 + $0x64] sm:$0x1] }
 0x1f9   : > { %v2705_v24 = vrot.slane %v2703_v51, 5  ;;  %5646 = vmatpush3.bf16.msra.mxu1 %v5979_v11  ;;  %v3591_v6 = vshrl.u32 %v3498_v41, 16  ;;  %v5125_v42 = vcombine.low %v3561_v49, %v3575_v16  ;;  %v3579_v19 = vrot.slane %v3577_v55, 4  ;;  %v5980_v21 = vld [vmem:[#allocation2 + $0x10] ss:$8 sps:$4 sm:$0xff]  }
 0x1fa   : > { %v2693_v18 = vrot.slane %v2692_v36, 4  ;;  %v3582_v47 = vrot.slane %v3580_v50, 5  ;;  %5647 = vmatprep.subr.bf16.mxu1 %v5981_v27  ;;  %v2711_v56 = vrot.slane %v2709_v40, 5  ;;  %v3594_v22 = vshll.u32 %v3498_v41, 16  ;;  %v3508_v50 = vld [vmem:[#allocation2 + $0x70] sm:$0xf] }
 0x1fb   : > { %v2706_v43 = vor.u32 %v2705_v24, %v2702_v52  ;;  %v3593_v35 = vrot.slane %v3591_v6, 4  ;;  %5682 = vmatmul.mubr.bf16.vlgmr.msra.gmra.mxu0 %v5125_v42  ;;  %v3588_v38 = vrot.slane %v3586_v15, 5  ;;  %v3600_v26 = vshll.u32 %v7206_v30, 16  ;;  %v3510_v6 = vld [vmem:[#allocation2 + $0x78] sm:$0xf] }
 0x1fc   : > { %v3583_v25 = vor.u32 %v3582_v47, %v3579_v19  ;;  %v3605_v54 = vshrl.u32 %v3500_v58, 16  ;;  %v2698_v63 = vsel %vm6606_vm9, %v2693_v18, %v2697_v37  ;;  %v3596_v59 = vrot.slane %v3594_v22, 5  ;;  %5730 = vmatpush3.bf16.msra.mxu0 %v5999_v14 }
 0x1fd   : > { %v2707_v28 = vrot.slane %v2706_v43, 4  ;;  %5648 = vmatpush3.bf16.msra.mxu1 %v5981_v27  ;;  %v3608_v4 = vshll.u32 %v3500_v58, 16  ;;  %v3614_v11 = vshll.u32 %v7208_v34, 16  ;;  %v3619_v48 = vshrl.u32 %v3502_v57, 16  ;;  %v7226_v27 = vld [vmem:[#allocation2 + $0x6c] sm:$0x1] }
 0x1fe   : > { %v3584_v10 = vrot.slane %v3583_v25, 4  ;;  %v3607_v61 = vrot.slane %v3605_v54, 4  ;;  %5697 = vmatprep.subr.bf16.mxu1 %v7210_v1  ;;  %v3597_v45 = vor.u32 %v3596_v59, %v3593_v35  ;;  %v3602_v20 = vrot.slane %v3600_v26, 5  ;;  %v5983_v43 = vld [vmem:[#allocation2 + $0x20] ss:$8 sps:$4 sm:$0xff]   ;;  %v5985_v59 = vld [vmem:[#allocation8 + $0x230] sm:$0xff]  }
 0x1ff   : > { %v2712_v8 = vsel %vm6606_vm9, %v2707_v28, %v2711_v56  ;;  %v3610_v46 = vrot.slane %v3608_v4, 5  ;;  %v3621_v29 = vrot.slane %v3619_v48, 4  ;;  %v3622_v12 = vshll.u32 %v3502_v57, 16  ;;  %v7234_v35 = vld [vmem:[#allocation2 + $0x74] sm:$0x1] }
 0x200   : > { %v5067_v23 = vcombine.low %v2698_v63, %v2712_v8  ;;  %v3589_v7 = vsel %vm6606_vm9, %v3584_v10, %v3588_v38  ;;  %v3598_v62 = vrot.slane %v3597_v45, 4  ;;  %v3628_v33 = vshll.u32 %v7221_v60, 16  ;;  %v7236_v26 = vld [vmem:[#allocation2 + $0x7c] sm:$0x1]  ;;  %v7241_v45 = vld [vmem:[#allocation2 + $0x84] sm:$0x1] }
 0x201   : > { %v3611_v13 = vor.u32 %v3610_v46, %v3607_v61  ;;  %v3633_v31 = vshrl.u32 %v3504_v39, 16  ;;  %v3616_v37 = vrot.slane %v3614_v11, 5  ;;  %v3624_v41 = vrot.slane %v3622_v12, 5  ;;  %v3512_v61 = vld [vmem:[#allocation2 + $0x80] sm:$0xf] }
 0x202   : > { %5598 = vmatmul.mubr.bf16.gmra.mxu1 %v5067_v23  ;;  %v3636_v0 = vshll.u32 %v3504_v39, 16  ;;  %v3647_v52 = vshrl.u32 %v3506_v17, 16  ;;  %v3603_v51 = vsel %vm6606_vm9, %v3598_v62, %v3602_v20  ;;  %v3642_v55 = vshll.u32 %v7223_v44, 16  ;;  %v3514_v20 = vld [vmem:[#allocation2 + $0x88] sm:$0xf] }
 0x203   : > { %5649 = vmatprep.mubr.bf16.mxu1 %v5980_v21  ;;  %v3612_v40 = vrot.slane %v3611_v13, 4  ;;  %v3635_v36 = vrot.slane %v3633_v31, 4  ;;  %v5126_v15 = vcombine.low %v3589_v7, %v3603_v51  ;;  %v3625_v49 = vor.u32 %v3624_v41, %v3621_v29  ;;  %v5984_v46 = vld [vmem:[#allocation2 + $0x30] ss:$8 sps:$4 sm:$0xff]   ;;  %v5986_v31 = vld [vmem:[#allocation8 + $0x228] sm:$0xff]  }
 0x204   : > { %v3630_v16 = vrot.slane %v3628_v33, 5  ;;  %v3638_v24 = vrot.slane %v3636_v0, 5  ;;  %v3649_v42 = vrot.slane %v3647_v52, 4  ;;  %v3650_v18 = vshll.u32 %v3506_v17, 16  ;;  %v3516_v0 = vld [vmem:[#allocation2 + $0x90] sm:$0xf] }
 0x205   : > { %v3617_v58 = vsel %vm6606_vm9, %v3612_v40, %v3616_v37  ;;  %v3656_v19 = vshll.u32 %v7226_v27, 16  ;;  %5685 = vmatprep.mubr.bf16.mxu0 %v5126_v15  ;;  %v3626_v47 = vrot.slane %v3625_v49, 4  ;;  %v3661_v22 = vshrl.u32 %v3508_v50, 16 }
 0x206   : > { %v3639_v56 = vor.u32 %v3638_v24, %v3635_v36  ;;  %v3664_v57 = vshll.u32 %v3508_v50, 16  ;;  %v3644_v25 = vrot.slane %v3642_v55, 5  ;;  %v3652_v38 = vrot.slane %v3650_v18, 5  ;;  %v3518_v55 = vld [vmem:[#allocation2 + $0x98] sm:$0xf] }
 0x207   : > { %v3675_v54 = vshrl.u32 %v3510_v6, 16  ;;  %v3631_v63 = vsel %vm6606_vm9, %v3626_v47, %v3630_v16  ;;  %v3663_v4 = vrot.slane %v3661_v22, 4  ;;  %v3658_v39 = vrot.slane %v3656_v19, 5  ;;  %v7250_v16 = vld [vmem:[#allocation2 + $0x8c] sm:$0x1] }
 0x208   : > { %v3640_v28 = vrot.slane %v3639_v56, 4  ;;  %v3666_v10 = vrot.slane %v3664_v57, 5  ;;  %v5127_v11 = vcombine.low %v3617_v58, %v3631_v63  ;;  %v3653_v48 = vor.u32 %v3652_v38, %v3649_v42  ;;  %v5989_v42 = vld [vmem:[#allocation8 + $0x220] sm:$0xff]   ;;  %v7252_v18 = vld [vmem:[#allocation2 + $0x94] sm:$0x1] }
 0x209   : > { %v3670_v8 = vshll.u32 %v7234_v35, 16  ;;  %v3677_v23 = vrot.slane %v3675_v54, 4  ;;  %v3678_v7 = vshll.u32 %v3510_v6, 16  ;;  %v3684_v29 = vshll.u32 %v7236_v26, 16  ;;  %v5988_v63 = vld [vmem:[#allocation2 + $0x60] ss:$8 sps:$4 sm:$0xff]  }
 0x20a   : > { %5650 = vmatmul.mubr.bf16.vlgmr.msra.gmra.mxu1 %v5983_v43  ;;  %v3667_v17 = vor.u32 %v3666_v10, %v3663_v4  ;;  %5686 = vmatmul.mubr.bf16.gmra.mxu0 %v5127_v11  ;;  %v3645_v12 = vsel %vm6606_vm9, %v3640_v28, %v3644_v25  ;;  %v3654_v62 = vrot.slane %v3653_v48, 4  ;;  %v3689_v21 = vshrl.u32 %v3512_v61, 16  ;;  %v5987_v43 = vld [vmem:[#allocation2 + $0x40] ss:$8 sps:$4 sm:$0xff]  }
 0x20b   : > { %5698 = vmatpush3.bf16.msra.mxu1 %v7210_v1  ;;  %v3692_v13 = vshll.u32 %v3512_v61, 16  ;;  %5653 = vmatprep.mubr.bf16.mxu1 %v5984_v46  ;;  %v3680_v33 = vrot.slane %v3678_v7, 5  ;;  %v3698_v37 = vshll.u32 %v7241_v45, 16  ;;  %v3703_v41 = vshrl.u32 %v3514_v20, 16 }
 0x20c   : > { %5699 = vmatprep.subr.bf16.mxu1 %v5985_v59  ;;  %v3659_v52 = vsel %vm6606_vm9, %v3654_v62, %v3658_v39  ;;  %v3672_v51 = vrot.slane %v3670_v8, 5  ;;  %v3691_v40 = vrot.slane %v3689_v21, 4  ;;  %v3668_v15 = vrot.slane %v3667_v17, 4  ;;  %v7260_v39 = vld [vmem:[#allocation2 + $0x9c] sm:$0x1] }
 0x20d   : > { %v3694_v36 = vrot.slane %v3692_v13, 5  ;;  %v5128_v50 = vcombine.low %v3645_v12, %v3659_v52  ;;  %v3681_v1 = vor.u32 %v3680_v33, %v3677_v23  ;;  %v3686_v49 = vrot.slane %v3684_v29, 5  ;;  %v5990_v23 = vld [vmem:[#allocation8 + $0x218] sm:$0xff]  }
 0x20e   : > { %v3705_v6 = vrot.slane %v3703_v41, 4  ;;  %v3706_v58 = vshll.u32 %v3514_v20, 16  ;;  %v3717_v19 = vshrl.u32 %v3516_v0, 16  ;;  %v3700_v56 = vrot.slane %v3698_v37, 5  ;;  %v3954_v41 = vld [vmem:[#allocation2 + $0x10] sm:$0xe] }
 0x20f   : > { %5700 = vmatpush3.bf16.msra.mxu1 %v5985_v59  ;;  %v3695_v24 = vor.u32 %v3694_v36, %v3691_v40  ;;  %5689 = vmatprep.mubr.bf16.mxu0 %v5128_v50  ;;  %v3682_v47 = vrot.slane %v3681_v1, 4  ;;  %v3720_v22 = vshll.u32 %v3516_v0, 16  ;;  %v3731_v57 = vshrl.u32 %v3518_v55, 16  ;;  %v5991_v52 = vld [vmem:[#allocation2 + $0x70] ss:$8 sps:$4 sm:$0xff]  }
 0x210   : > { %5701 = vmatprep.subr.bf16.mxu1 %v5986_v31  ;;  %v3708_v38 = vrot.slane %v3706_v58, 5  ;;  %v3712_v54 = vshll.u32 %v7250_v16, 16  ;;  %v3719_v28 = vrot.slane %v3717_v19, 4  ;;  %v3673_v59 = vsel %vm6606_vm9, %v3668_v15, %v3672_v51  ;;  %v5993_v51 = vld [vmem:[#allocation8 + $0x210] sm:$0xff]   ;;  %v3955_v50 = vld [vmem:[#allocation2 + $0x18] sm:$0xe] }
 0x211   : > { %v3696_v25 = vrot.slane %v3695_v24, 4  ;;  %v3687_v4 = vsel %vm6606_vm9, %v3682_v47, %v3686_v49  ;;  %v3722_v10 = vrot.slane %v3720_v22, 5  ;;  %v3726_v61 = vshll.u32 %v7252_v18, 16  ;;  %v3957_v47 = vld [vmem:[#allocation2 + $0x28] sm:$0xe] }
 0x212   : > { %5654 = vmatmul.mubr.bf16.gmra.mxu1 %v5987_v43  ;;  %v5129_v11 = vcombine.low %v3673_v59, %v3687_v4  ;;  %v3709_v48 = vor.u32 %v3708_v38, %v3705_v6  ;;  %v3733_v8 = vrot.slane %v3731_v57, 4  ;;  %v3734_v20 = vshll.u32 %v3518_v55, 16  ;;  %v5992_v55 = vld [vmem:[#allocation2 + $0x80] ss:$8 sps:$4 sm:$0xff]   ;;  %v3958_v43 = vld [vmem:[#allocation2 + $0x30] sm:$0xe] }
 0x213   : > { %5702 = vmatpush3.bf16.msra.mxu1 %v5986_v31  ;;  %5657 = vmatprep.mubr.bf16.mxu1 %v5988_v63  ;;  %v3723_v46 = vor.u32 %v3722_v10, %v3719_v28  ;;  %v3740_v17 = vshll.u32 %v7260_v39, 16  ;;  %v3701_v7 = vsel %vm6606_vm9, %v3696_v25, %v3700_v56  ;;  %v3714_v12 = vrot.slane %v3712_v54, 5  ;;  %v5994_v6 = vld [vmem:[#allocation8 + $0x208] sm:$0xff]   ;;  %v5996_v56 = vld [vmem:[#allocation8 + $0x200] sm:$0xff]   ;;  %v3959_v54 = vld [vmem:[#allocation2 + $0x38] sm:$0xe] }
 0x214   : > { %5703 = vmatprep.subr.bf16.mxu1 %v5989_v42  ;;  %5690 = vmatmul.mubr.bf16.gmra.mxu0 %v5129_v11  ;;  %v3710_v29 = vrot.slane %v3709_v48, 4  ;;  %v3736_v62 = vrot.slane %v3734_v20, 5  ;;  %v3728_v33 = vrot.slane %v3726_v61, 5  ;;  %v5140_v15 = vrot.slane %v3954_v41, 9  ;;  %v3956_v22 = vld [vmem:[#allocation2 + $0x20] sm:$0xe] }
 0x215   : > { %v3724_v21 = vrot.slane %v3723_v46, 4  ;;  %v3742_v37 = vrot.slane %v3740_v17, 5  ;;  %v4004_v1 = vrot.slane %v7168_v32, 5  ;;  %v5141_v58 = vrot.slane %v3955_v50, 9  ;;  %v5995_v32 = vld [vmem:[#allocation2 + $0x90] ss:$8 sps:$4 sm:$0xff]  }
 0x216   : > { %v3715_v13 = vsel %vm6606_vm9, %v3710_v29, %v3714_v12  ;;  %v3737_v31 = vor.u32 %v3736_v62, %v3733_v8  ;;  %v5143_v25 = vrot.slane %v3957_v47, 9  ;;  %v4016_v38 = vrot.slane %v7187_v3, 5  ;;  %v3960_v11 = vld [vmem:[#allocation2 + $0x40] sm:$0xe]  ;;  %v3961_v48 = vld [vmem:[#allocation2 + $0x48] sm:$0xe] }
 0x217   : > { %5704 = vmatpush3.bf16.msra.mxu1 %v5989_v42  ;;  %v5130_v0 = vcombine.low %v3701_v7, %v3715_v13  ;;  %v3729_v40 = vsel %vm6606_vm9, %v3724_v21, %v3728_v33  ;;  %v4008_v42 = vrot.slane %v7173_v5, 5  ;;  %v4005_v19 = vsel %vm6612_vm10, %v5140_v15, %v4004_v1  ;;  %v3962_v8 = vld [vmem:[#allocation2 + $0x60] sm:$0xe]  ;;  %v3963_v29 = vld [vmem:[#allocation2 + $0x68] sm:$0xe] }
 0x218   : > { %5705 = vmatprep.subr.bf16.mxu1 %v5990_v23  ;;  %v3738_v36 = vrot.slane %v3737_v31, 4  ;;  %v5144_v5 = vrot.slane %v3958_v43, 9  ;;  %v4020_v63 = vrot.slane %v7198_v53, 5  ;;  %v5142_v28 = vrot.slane %v3956_v22, 9 }
 0x219   : > { %5693 = vmatprep.mubr.bf16.mxu0 %v5130_v0  ;;  %v4009_v9 = vsel %vm6612_vm10, %v5141_v58, %v4008_v42  ;;  %v4012_v59 = vrot.slane %v7182_v2, 5  ;;  %v5145_v4 = vrot.slane %v3959_v54, 9  ;;  %v4024_v10 = vrot.slane %v7206_v30, 5 }
 0x21a   : > { %5658 = vmatmul.mubr.bf16.gmra.mxu1 %v5991_v52  ;;  %v3743_v49 = vsel %vm6606_vm9, %v3738_v36, %v3742_v37  ;;  %v5156_v57 = vcombine.low %v4005_v19, %v4009_v9  ;;  %v4017_v61 = vsel %vm6612_vm10, %v5143_v25, %v4016_v38  ;;  %v4021_v3 = vsel %vm6612_vm10, %v5144_v5, %v4020_v63  ;;  %v3965_v37 = vld [vmem:[#allocation2 + $0x78] sm:$0xe] }
 0x21b   : > { %5706 = vmatpush3.bf16.msra.mxu1 %v5990_v23  ;;  %5661 = vmatprep.mubr.bf16.mxu1 %v5992_v55  ;;  %v5131_v24 = vcombine.low %v3729_v40, %v3743_v49  ;;  %v4013_v53 = vsel %vm6612_vm10, %v5142_v28, %v4012_v59  ;;  %v4025_v2 = vsel %vm6612_vm10, %v5145_v4, %v4024_v10  ;;  %v5146_v46 = vrot.slane %v3960_v11, 9  ;;  %v3967_v40 = vld [vmem:[#allocation2 + $0x88] sm:$0xe]  ;;  %v5998_v4 = vld [vmem:[#allocation11 + $0x30] sm:$0xff]  }
 0x21c   : > { %5707 = vmatprep.subr.bf16.mxu1 %v5993_v51  ;;  %v5157_v20 = vcombine.low %v4013_v53, %v4017_v61  ;;  %v5158_v17 = vcombine.low %v4021_v3, %v4025_v2  ;;  %v4028_v30 = vrot.slane %v7208_v34, 5  ;;  %v5147_v23 = vrot.slane %v3961_v48, 9  ;;  %v6000_v48 = vld [vmem:[#allocation11 + $0x28] sm:$0xff]   ;;  %v6001_v2 = vld [vmem:[#allocation9 + $0x30] sm:$0xff]  }
 0x21d   : > { %5694 = vmatmul.mubr.bf16.gmra.mxu0 %v5131_v24  ;;  %v4032_v7 = vrot.slane %v7221_v60, 5  ;;  %v5148_v12 = vrot.slane %v3962_v8, 9  ;;  %v4036_v62 = vrot.slane %v7223_v44, 5  ;;  %v5149_v21 = vrot.slane %v3963_v29, 9  ;;  %v3966_v60 = vld [vmem:[#allocation2 + $0x80] sm:$0xe]  ;;  %5731 = vmatprep.subr.bf16.mxu0 %v6001_v2 }
 0x21e   : > { %v4040_v13 = vrot.slane %v7226_v27, 5  ;;  %v4029_v33 = vsel %vm6612_vm10, %v5146_v46, %v4028_v30  ;;  %v3964_v44 = vld [vmem:[#allocation2 + $0x70] sm:$0xe]  ;;  %v4048_v27 = vrot.slane %v7236_v26, 5  ;;  %v5152_v36 = vrot.slane %v3966_v60, 9  ;;  %v6002_v46 = vld [vmem:[#allocation11 + $0x20] sm:$0xff]   ;;  %5732 = vmatpush3.bf16.msra.mxu0 %v6001_v2 }
 0x21f   : > { %5708 = vmatpush3.bf16.msra.mxu1 %v5993_v51  ;;  %v4033_v31 = vsel %vm6612_vm10, %v5147_v23, %v4032_v7  ;;  %v4037_v34 = vsel %vm6612_vm10, %v5148_v12, %v4036_v62  ;;  %v5151_v51 = vrot.slane %v3965_v37, 9  ;;  %v4052_v55 = vrot.slane %v7241_v45, 5  ;;  %v3969_v26 = vld [vmem:[#allocation2 + $0x98] sm:$0xe] }
 0x220   : > { %5709 = vmatprep.subr.bf16.mxu1 %v5994_v6  ;;  %v5159_v41 = vcombine.low %v4029_v33, %v4033_v31  ;;  %v4041_v0 = vsel %vm6612_vm10, %v5149_v21, %v4040_v13  ;;  %v5150_v50 = vrot.slane %v3964_v44, 9  ;;  %v4044_v15 = vrot.slane %v7234_v35, 5  ;;  %v6004_v62 = vld [vmem:[#allocation11 + $0x18] sm:$0xff]   ;;  %v6005_v13 = vld [vmem:[#allocation9 + $0x20] sm:$0xff]  }
 0x221   : > { %v5160_v52 = vcombine.low %v4037_v34, %v4041_v0  ;;  %v5153_v1 = vrot.slane %v3967_v40, 9  ;;  %v4056_v49 = vrot.slane %v7250_v16, 5  ;;  %v4049_v24 = vsel %vm6612_vm10, %v5151_v51, %v4048_v27 }
 0x222   : > { %5662 = vmatmul.mubr.bf16.gmra.mxu1 %v5995_v32  ;;  %v4053_v58 = vsel %vm6612_vm10, %v5152_v36, %v4052_v55  ;;  %v4045_v42 = vsel %vm6612_vm10, %v5150_v50, %v4044_v15  ;;  %v4060_v16 = vrot.slane %v7252_v18, 5  ;;  %v5155_v43 = vrot.slane %v3969_v26, 9  ;;  %v6006_v50 = vld [vmem:[#allocation11 + $0x10] sm:$0xff]   ;;  %v6007_v15 = vld [vmem:[#allocation9 + $0x18] sm:$0xff]  }
 0x223   : > { %5710 = vmatpush3.bf16.msra.mxu1 %v5994_v6  ;;  %5713 = vmatprep.mubr.bf16.mxu1 %v5156_v57  ;;  %v3968_v6 = vld [vmem:[#allocation2 + $0x90] sm:$0xe]  ;;  %v5161_v45 = vcombine.low %v4045_v42, %v4049_v24  ;;  %v4057_v19 = vsel %vm6612_vm10, %v5153_v1, %v4056_v49  ;;  %v4064_v32 = vrot.slane %v7260_v39, 5  ;;  %v6013_v57 = vld [vmem:[%s6469_s24] sm:$0xff]   ;;  %v5997_v39 = vld [vmem:[#allocation11 + $0x38] sm:$0xff]  }
 0x224   : > { %5711 = vmatprep.subr.bf16.mxu1 %v5996_v56  ;;  %v5154_v35 = vrot.slane %v3968_v6, 9  ;;  %v5162_v47 = vcombine.low %v4053_v58, %v4057_v19 }
 0x226   : > { %v4061_v9 = vsel %vm6612_vm10, %v5154_v35, %v4060_v16  ;;  %v6008_v35 = vld [vmem:[#allocation11 + $0x8] sm:$0xff]  }
 0x227   : > { %5712 = vmatpush3.bf16.msra.mxu1 %v5996_v56  ;;  %v4065_v56 = vsel %vm6612_vm10, %v5155_v43, %v4064_v32  ;;  %v6010_v32 = vld [vmem:[#allocation11] sm:$0xff]  }
 0x228   : > { %v5163_v22 = vcombine.low %v4061_v9, %v4065_v56  ;;  %5761 = vmatprep.subr.bf16.mxu1 %v5997_v39  ;;  %v6011_v9 = vld [vmem:[#allocation9 + $0x8] sm:$0xff]  }
 0x22a   : > { %5714 = vmatmul.mubr.bf16.vlgmr.msra.gmra.mxu1 %v5157_v20 }
 0x22b   : > { %5717 = vmatprep.mubr.bf16.mxu1 %v5158_v17  ;;  %5762 = vmatpush3.bf16.msra.mxu1 %v5997_v39  ;;  %v6003_v17 = vld [vmem:[#allocation9 + $0x28] sm:$0xff]  }
 0x22c   : > { %5763 = vmatprep.subr.bf16.mxu1 %v5998_v4  ;;  %5733 = vmatprep.subr.bf16.mxu0 %v6003_v17 }
 0x22d   : > { %5734 = vmatpush3.bf16.msra.mxu0 %v6003_v17 }
 0x22e   : > { %5735 = vmatprep.subr.bf16.mxu0 %v6005_v13 }
 0x22f   : > { %5764 = vmatpush3.bf16.msra.mxu1 %v5998_v4 }
 0x230   : > { %5765 = vmatprep.subr.bf16.mxu1 %v6000_v48 }
 0x231   : > { %5736 = vmatpush3.bf16.msra.mxu0 %v6005_v13  ;;  %v6017_v13 = vld [vmem:[%s6469_s24 + $0x20] sm:$0xff]  }
 0x232   : > { %5718 = vmatmul.mubr.bf16.gmra.mxu1 %v5159_v41  ;;  %5737 = vmatprep.subr.bf16.mxu0 %v6007_v15 }
 0x233   : > { %5721 = vmatprep.mubr.bf16.mxu1 %v5160_v52  ;;  %5766 = vmatpush3.bf16.msra.mxu1 %v6000_v48 }
 0x234   : > { %5767 = vmatprep.subr.bf16.mxu1 %v6002_v46 }
 0x235   : > { %5738 = vmatpush3.bf16.msra.mxu0 %v6007_v15 }
 0x237   : > { %5768 = vmatpush3.bf16.msra.mxu1 %v6002_v46 }
 0x238   : > { %5769 = vmatprep.subr.bf16.mxu1 %v6004_v62 }
 0x23a   : > { %5722 = vmatmul.mubr.bf16.gmra.mxu1 %v5161_v45 }
 0x23b   : > { %5725 = vmatprep.mubr.bf16.mxu1 %v5162_v47  ;;  %5770 = vmatpush3.bf16.msra.mxu1 %v6004_v62  ;;  %v6009_v47 = vld [vmem:[#allocation9 + $0x10] sm:$0xff]   ;;  %v6016_v62 = vld [vmem:[%s6469_s24 + $0x18] sm:$0xff]  }
 0x23c   : > { %5771 = vmatprep.subr.bf16.mxu1 %v6006_v50  ;;  %5739 = vmatprep.subr.bf16.mxu0 %v6009_v47 }
 0x23d   : > { %5740 = vmatpush3.bf16.msra.mxu0 %v6009_v47 }
 0x23e   : > { %5741 = vmatprep.subr.bf16.mxu0 %v6011_v9 }
 0x23f   : > { %5772 = vmatpush3.bf16.msra.mxu1 %v6006_v50 }
 0x240   : > { %5773 = vmatprep.subr.bf16.mxu1 %v6008_v35 }
 0x241   : > { %5742 = vmatpush3.bf16.msra.mxu0 %v6011_v9 }
 0x242   : > { %5726 = vmatmul.mubr.bf16.gmra.mxu1 %v5163_v22 }
 0x243   : > { %5777 = vmatprep.mubr.bf16.mxu1 %v6013_v57  ;;  %5774 = vmatpush3.bf16.msra.mxu1 %v6008_v35 }
 0x244   : > { %5775 = vmatprep.subr.bf16.mxu1 %v6010_v32 }
 0x245   : > { %v5491_v25 = vpop.f32.mrf.mxu0 }
 0x247   : > { %v1827_v38 = vpop.f32.mrf.mxu0  ;;  %5776 = vmatpush3.bf16.msra.mxu1 %v6010_v32 }
 0x249   : > { %v5492_v54 = vpop.f32.mrf.mxu0 }
 0x24b   : > { %v1830_v5 = vpop.f32.mrf.mxu0 }
 0x250   : > { %v5495_v18 = vpop.f32.mrf.mxu0 }
 0x252   : > { %v1843_v63 = vpop.f32.mrf.mxu0 }
 0x254   : > { %v5496_v28 = vpop.f32.mrf.mxu0 }
 0x256   : > { %v1846_v59 = vpop.f32.mrf.mxu0 }
 0x260   : > { %v5459_v10 = vpop.f32.mrf.mxu1 }
 0x261   : > { %v7320_v61 = vadd.f32 %v5491_v25, %v5459_v10  ;;  %v5499_v11 = vpop.f32.mrf.mxu0  ;;  %v6014_v10 = vld [vmem:[%s6469_s24 + $0x8] sm:$0xff]  }
 0x262   : > { %v1634_v3 = vpop.f32.mrf.mxu1  ;;  %5778 = vmatmul.mubr.bf16.vlgmr.msra.gmra.mxu1 %v6014_v10 }
 0x263   : > { %v7322_v53 = vadd.f32 %v1827_v38, %v1634_v3  ;;  %v1859_v8 = vpop.f32.mrf.mxu0  ;;  %v6015_v3 = vld [vmem:[%s6469_s24 + $0x10] sm:$0xff]  }
 0x264   : > { %v5460_v20 = vpop.f32.mrf.mxu1  ;;  %5781 = vmatprep.mubr.bf16.mxu1 %v6015_v3 }
 0x265   : > { %v7324_v30 = vadd.f32 %v5492_v54, %v5460_v20  ;;  %v5500_v23 = vpop.f32.mrf.mxu0 }
 0x266   : > { %v1637_v7 = vpop.f32.mrf.mxu1 }
 0x267   : > { %v7326_v29 = vadd.f32 %v1830_v5, %v1637_v7  ;;  %v1862_v12 = vpop.f32.mrf.mxu0 }
 0x268   : > { %v5463_v21 = vpop.f32.mrf.mxu1 }
 0x269   : > { %v7328_v33 = vadd.f32 %v5495_v18, %v5463_v21  ;;  %v5503_v31 = vpop.f32.mrf.mxu0 }
 0x26a   : > { %v1650_v34 = vpop.f32.mrf.mxu1  ;;  %5782 = vmatmul.mubr.bf16.gmra.mxu1 %v6016_v62 }
 0x26b   : > { %v7330_v37 = vadd.f32 %v1843_v63, %v1650_v34  ;;  %v1875_v60 = vpop.f32.mrf.mxu0  ;;  %v6012_v63 = vld [vmem:[#allocation9] sm:$0xff]   ;;  %5785 = vmatprep.mubr.bf16.mxu1 %v6017_v13 }
 0x26c   : > { %v5464_v41 = vpop.f32.mrf.mxu1  ;;  %5743 = vmatprep.subr.bf16.mxu0 %v6012_v63 }
 0x26d   : > { %v7332_v0 = vadd.f32 %v5496_v28, %v5464_v41  ;;  %v5504_v44 = vpop.f32.mrf.mxu0  ;;  %5744 = vmatpush3.bf16.msra.mxu0 %v6012_v63 }
 0x26e   : > { %v1653_v52 = vpop.f32.mrf.mxu1 }
 0x26f   : > { %v7334_v51 = vadd.f32 %v1846_v59, %v1653_v52  ;;  %v1878_v27 = vpop.f32.mrf.mxu0 }
 0x270   : > { %v5467_v40 = vpop.f32.mrf.mxu1 }
 0x271   : > { %v7336_v36 = vadd.f32 %v5499_v11, %v5467_v40  ;;  %v7338_v55 = vpop.f32.mrf.mxu0 }
 0x272   : > { %v1666_v1 = vpop.f32.mrf.mxu1 }
 0x273   : > { %v7340_v49 = vadd.f32 %v1859_v8, %v1666_v1  ;;  %v7342_v24 = vpop.f32.mrf.mxu0  ;;  %v6019_v1 = vld [vmem:[%s6469_s24 + $0x30] sm:$0xff]  }
 0x274   : > { %v5468_v6 = vpop.f32.mrf.mxu1 }
 0x275   : > { %v7344_v58 = vadd.f32 %v5500_v23, %v5468_v6  ;;  %v7346_v26 = vpop.f32.mrf.mxu0 }
 0x276   : > { %v1669_v42 = vpop.f32.mrf.mxu1 }
 0x277   : > { %v7348_v45 = vadd.f32 %v1862_v12, %v1669_v42  ;;  %v7350_v19 = vpop.f32.mrf.mxu0 }
 0x278   : > { %v5471_v16 = vpop.f32.mrf.mxu1 }
 0x279   : > { %v7352_v43 = vadd.f32 %v5503_v31, %v5471_v16 }
 0x27a   : > { %v1682_v56 = vpop.f32.mrf.mxu1  ;;  %v5559_v22 = vpop.f32.mrf.mxu0 }
 0x27b   : > { %v7354_v57 = vadd.f32 %v1875_v60, %v1682_v56 }
 0x27c   : > { %v5472_v25 = vpop.f32.mrf.mxu1  ;;  %v7356_v38 = vpop.f32.mrf.mxu0 }
 0x27d   : > { %v7358_v54 = vadd.f32 %v5504_v44, %v5472_v25 }
 0x27e   : > { %v1685_v5 = vpop.f32.mrf.mxu1  ;;  %v7360_v18 = vpop.f32.mrf.mxu0 }
 0x27f   : > { %v7362_v28 = vadd.f32 %v1878_v27, %v1685_v5 }
 0x280   : > { %v5523_v39 = vpop.f32.mrf.mxu1  ;;  %v7364_v59 = vpop.f32.mrf.mxu0 }
 0x281   : > { %v7367_v4 = vadd.f32 %v5523_v39, %v7320_v61 }
 0x282   : > { %v2136_v14 = vpop.f32.mrf.mxu1  ;;  %v5563_v11 = vpop.f32.mrf.mxu0 }
 0x283   : > { %v7372_v48 = vadd.f32 %v2136_v14, %v7322_v53 }
 0x284   : > { %v5524_v8 = vpop.f32.mrf.mxu1  ;;  %v7374_v20 = vpop.f32.mrf.mxu0 }
 0x285   : > { %v7377_v2 = vadd.f32 %v5524_v8, %v7324_v30 }
 0x286   : > { %v2139_v61 = vpop.f32.mrf.mxu1  ;;  %v7379_v46 = vpop.f32.mrf.mxu0 }
 0x287   : > { %v7382_v17 = vadd.f32 %v2139_v61, %v7326_v29 }
 0x288   : > { %v5527_v23 = vpop.f32.mrf.mxu1  ;;  %v7384_v7 = vpop.f32.mrf.mxu0 }
 0x289   : > { %v2205_v12 = vadd.f32 %v5527_v23, %v7328_v33 }
 0x28a   : > { %v2152_v53 = vpop.f32.mrf.mxu1  ;;  %v5567_v21 = vpop.f32.mrf.mxu0 }
 0x28b   : > { %v7390_v30 = vadd.f32 %v2152_v53, %v7330_v37  ;;  %v2447_v31 = vadd.f32 %v5559_v22, %v2205_v12  ;;  %v6018_v37 = vld [vmem:[%s6469_s24 + $0x28] sm:$0xff]  }
 0x28c   : > { %v5528_v34 = vpop.f32.mrf.mxu1  ;;  %v7392_v29 = vpop.f32.mrf.mxu0  ;;  %5786 = vmatmul.mubr.bf16.gmra.mxu1 %v6018_v37 }
 0x28d   : > { %v7395_v60 = vadd.f32 %v5528_v34, %v7332_v0  ;;  %5789 = vmatprep.mubr.bf16.mxu1 %v6019_v1 }
 0x28e   : > { %v2155_v41 = vpop.f32.mrf.mxu1  ;;  %v7397_v33 = vpop.f32.mrf.mxu0 }
 0x28f   : > { %v7400_v44 = vadd.f32 %v2155_v41, %v7334_v51 }
 0x290   : > { %v5531_v52 = vpop.f32.mrf.mxu1  ;;  %v7402_v27 = vpop.f32.mrf.mxu0 }
 0x291   : > { %v2209_v40 = vadd.f32 %v5531_v52, %v7336_v36 }
 0x292   : > { %v2168_v50 = vpop.f32.mrf.mxu1  ;;  %v7406_v15 = vpop.f32.mrf.mxu0 }
 0x293   : > { %v7410_v0 = vadd.f32 %v2168_v50, %v7340_v49  ;;  %v2451_v6 = vadd.f32 %v5563_v11, %v2209_v40  ;;  %v6020_v49 = vld [vmem:[%s6469_s24 + $0x38] sm:$0xff]  }
 0x294   : > { %v5532_v42 = vpop.f32.mrf.mxu1  ;;  %v7412_v51 = vpop.f32.mrf.mxu0  ;;  %5790 = vmatmul.mubr.bf16.gmra.mxu1 %v6020_v49 }
 0x295   : > { %v7415_v35 = vadd.f32 %v5532_v42, %v7344_v58 }
 0x296   : > { %v2171_v47 = vpop.f32.mrf.mxu1  ;;  %v7417_v36 = vpop.f32.mrf.mxu0 }
 0x297   : > { %v7420_v16 = vadd.f32 %v2171_v47, %v7348_v45 }
 0x298   : > { %v5535_v32 = vpop.f32.mrf.mxu1  ;;  %v7422_v9 = vpop.f32.mrf.mxu0 }
 0x299   : > { %v2213_v56 = vadd.f32 %v5535_v32, %v7352_v43 }
 0x29a   : > { %v2184_v22 = vpop.f32.mrf.mxu1  ;;  %v7426_v25 = vpop.f32.mrf.mxu0 }
 0x29b   : > { %v7429_v5 = vadd.f32 %v2184_v22, %v7354_v57  ;;  %v2455_v58 = vadd.f32 %v5567_v21, %v2213_v56 }
 0x29c   : > { %v5536_v63 = vpop.f32.mrf.mxu1  ;;  %v7434_v10 = vpop.f32.mrf.mxu0 }
 0x29d   : > { %v7432_v39 = vadd.f32 %v5536_v63, %v7358_v54 }
 0x29e   : > { %v2187_v45 = vpop.f32.mrf.mxu1  ;;  %v7439_v3 = vpop.f32.mrf.mxu0 }
 0x29f   : > { %v7437_v14 = vadd.f32 %v2187_v45, %v7362_v28 }
 0x2a0   : > { %v5587_v43 = vpop.f32.mrf.mxu1  ;;  %v7441_v61 = vpop.f32.mrf.mxu0 }
 0x2a1   : > { %7833 = vst [vmem:[#allocation20_spill] sm:$0xff] %v7441_v61 }
 0x2a2   : > { %v2844_v11 = vpop.f32.mrf.mxu1  ;;  %v7445_v62 = vpop.f32.mrf.mxu0 }
 0x2a3   : > { %7834 = vst [vmem:[#allocation21_spill] sm:$0xff] %v7445_v62 }
 0x2a4   : > { %v5588_v8 = vpop.f32.mrf.mxu1  ;;  %v7449_v21 = vpop.f32.mrf.mxu0 }
 0x2a5   : > { %7835 = vst [vmem:[#allocation22_spill] sm:$0xff] %v7449_v21 }
 0x2a6   : > { %v2847_v57 = vpop.f32.mrf.mxu1  ;;  %v7455_v41 = vpop.f32.mrf.mxu0 }
 0x2a7   : > { %7837 = vst [vmem:[#allocation24_spill] sm:$0xff] %v7455_v41 }
 0x2a8   : > { %v5591_v23 = vpop.f32.mrf.mxu1  ;;  %v7457_v52 = vpop.f32.mrf.mxu0 }
 0x2a9   : > { %v7443_v12 = vadd.f32 %v5591_v23, %v2447_v31  ;;  %7838 = vst [vmem:[#allocation25_spill] sm:$0xff] %v7457_v52 }
 0x2aa   : > { %v2860_v54 = vpop.f32.mrf.mxu1  ;;  %v7461_v31 = vpop.f32.mrf.mxu0 }
 0x2ab   : > { %7839 = vst [vmem:[#allocation26_spill] sm:$0xff] %v7461_v31 }
 0x2ac   : > { %v7447_v53 = vpop.f32.mrf.mxu1  ;;  %v7465_v50 = vpop.f32.mrf.mxu0 }
 0x2ad   : > { %7840 = vst [vmem:[#allocation27_spill] sm:$0xff] %v7465_v50 }
 0x2ae   : > { %v7451_v28 = vpop.f32.mrf.mxu1  ;;  %v7469_v42 = vpop.f32.mrf.mxu0 }
 0x2af   : > { %7842 = vst [vmem:[#allocation29_spill] sm:$0xff] %v7469_v42 }
 0x2b0   : > { %v5595_v13 = vpop.f32.mrf.mxu1  ;;  %v7475_v56 = vpop.f32.mrf.mxu0 }
 0x2b1   : > { %v7453_v34 = vadd.f32 %v5595_v13, %v2451_v6  ;;  %7845 = vst [vmem:[#allocation32_spill] sm:$0xff] %v7475_v56 }
 0x2b2   : > { %v7459_v40 = vpop.f32.mrf.mxu1 }
 0x2b3   : > { %7836 = vst [vmem:[#allocation23_spill] sm:$0xff] %v7453_v34  ;;  %v2441_v34 = vadd.f32 %v7342_v24, %v7372_v48 }
 0x2b4   : > { %v7463_v37 = vpop.f32.mrf.mxu1 }
 0x2b6   : > { %v7467_v1 = vpop.f32.mrf.mxu1 }
 0x2b7   : > { %7841 = vst [vmem:[#allocation28_spill] sm:$0xff] %v7467_v1 }
 0x2bb   : > { %v5683_v63 = vpop.f32.mrf.mxu0 }
 0x2bd   : > { %v3875_v13 = vpop.f32.mrf.mxu0 }
 0x2bf   : > { %v5684_v52 = vpop.f32.mrf.mxu0 }
 0x2c1   : > { %v3878_v21 = vpop.f32.mrf.mxu0 }
 0x2c2   : > { %v5599_v47 = vpop.f32.mrf.mxu1 }
 0x2c3   : > { %v7471_v32 = vadd.f32 %v5599_v47, %v2455_v58 }
 0x2c4   : > { %v7473_v6 = vpop.f32.mrf.mxu1 }
 0x2c5   : > { %7843 = vst [vmem:[#allocation30_spill] sm:$0xff] %v7471_v32  ;;  %7844 = vst [vmem:[#allocation31_spill] sm:$0xff] %v7473_v6 }
 0x2c6   : > { %v7477_v49 = vpop.f32.mrf.mxu1 }
 0x2c7   : > { %7846 = vst [vmem:[#allocation33_spill] sm:$0xff] %v7477_v49 }
 0x2c8   : > { %v7479_v22 = vpop.f32.mrf.mxu1 }
 0x2c9   : > { %7847 = vst [vmem:[#allocation34_spill] sm:$0xff] %v7479_v22  ;;  %v2443_v22 = vadd.f32 %v7338_v55, %v7367_v4  ;;  %v2442_v55 = vadd.f32 %v7350_v19, %v7382_v17 }
 0x2ca   : > { %v5651_v45 = vpop.f32.mrf.mxu1  ;;  %v7485_v32 = vpop.f32.mrf.mxu0 }
 0x2cb   : > { %7850 = vst [vmem:[#allocation37_spill] sm:$0xff] %v7485_v32  ;;  %v2909_v62 = vadd.f32 %v5587_v43, %v2443_v22  ;;  %v2444_v32 = vadd.f32 %v7346_v26, %v7377_v2  ;;  %v2908_v22 = vadd.f32 %v2847_v57, %v2442_v55 }
 0x2cc   : > { %v3409_v23 = vpop.f32.mrf.mxu1  ;;  %v7493_v6 = vpop.f32.mrf.mxu0 }
 0x2cd   : > { %v2910_v61 = vadd.f32 %v5588_v8, %v2444_v32  ;;  %v3231_v4 = vadd.f32 %v7406_v15, %v2909_v62  ;;  %v3230_v15 = vadd.f32 %v7422_v9, %v2908_v22  ;;  %v3235_v9 = vadd.f32 %v7426_v25, %v7443_v12 }
 0x2ce   : > { %v5652_v50 = vpop.f32.mrf.mxu1  ;;  %v2450_v25 = vadd.f32 %v7384_v7, %v7420_v16  ;;  %v2453_v12 = vadd.f32 %v7392_v29, %v7429_v5 }
 0x2cf   : > { %v3474_v24 = vadd.f32 %v5651_v45, %v3231_v4  ;;  %v3232_v8 = vadd.f32 %v7417_v36, %v2910_v61  ;;  %v7534_v36 = vld [vmem:[%s7781_s5] ss:$0 sm:$0xff] }
 0x2d0   : > { %v3412_v31 = vpop.f32.mrf.mxu1 }
 0x2d1   : > { %v3475_v17 = vadd.f32 %v5652_v50, %v3232_v8  ;;  %v3940_v57 = vadd.f32 %v5683_v63, %v3474_v24 }
 0x2d2   : > { %v5655_v41 = vpop.f32.mrf.mxu1  ;;  %v7854_v22 = vld [vmem:[#allocation37_spill] sm:$0xff] }
 0x2d3   : > { %v3478_v63 = vadd.f32 %v5655_v41, %v3235_v9  ;;  %v2454_v41 = vadd.f32 %v7402_v27, %v7437_v14 }
 0x2d4   : > { %v3425_v42 = vpop.f32.mrf.mxu1 }
 0x2d5   : > { %v3944_v27 = vadd.f32 %v7854_v22, %v3478_v63 }
 0x2d6   : > { %v7481_v58 = vpop.f32.mrf.mxu1 }
 0x2d7   : > { %7848 = vst [vmem:[#allocation35_spill] sm:$0xff] %v7481_v58 }
 0x2d8   : > { %v7483_v47 = vpop.f32.mrf.mxu1 }
 0x2d9   : > { %7849 = vst [vmem:[#allocation36_spill] sm:$0xff] %v7483_v47  ;;  %v2907_v47 = vadd.f32 %v2844_v11, %v2441_v34  ;;  %v2445_v11 = vadd.f32 %v7356_v38, %v7390_v30  ;;  %v2446_v38 = vadd.f32 %v7364_v59, %v7400_v44  ;;  %v2449_v30 = vadd.f32 %v7374_v20, %v7410_v0 }
 0x2da   : > { %v7487_v56 = vpop.f32.mrf.mxu1  ;;  %v2452_v20 = vadd.f32 %v7379_v46, %v7415_v35  ;;  %v7555_v35 = vld [vmem:[%s7782_s6] ss:$0 sm:$0xff] }
 0x2db   : > { %7851 = vst [vmem:[#allocation38_spill] sm:$0xff] %v7487_v56  ;;  %v7503_v56 = vpop.f32.mrf.mxu0  ;;  %v3229_v48 = vadd.f32 %v7412_v51, %v2907_v47  ;;  %v2911_v32 = vadd.f32 %v2860_v54, %v2445_v11  ;;  %v2448_v51 = vadd.f32 %v7360_v18, %v7395_v60  ;;  %v3473_v54 = vadd.f32 %v3412_v31, %v3230_v15 }
 0x2dc   : > { %v7489_v49 = vpop.f32.mrf.mxu1  ;;  %v2912_v59 = vadd.f32 %v7451_v28, %v2446_v38  ;;  %v3941_v31 = vadd.f32 %v5684_v52, %v3475_v17  ;;  %v2915_v29 = vadd.f32 %v7459_v40, %v2449_v30  ;;  %v7857_v40 = vld [vmem:[#allocation23_spill] sm:$0xff] }
 0x2dd   : > { %7852 = vst [vmem:[#allocation39_spill] sm:$0xff] %v7489_v49  ;;  %v7515_v26 = vpop.f32.mrf.mxu0  ;;  %v3472_v34 = vadd.f32 %v3409_v23, %v3229_v48  ;;  %v2914_v60 = vadd.f32 %v7447_v53, %v2448_v51  ;;  %v3233_v44 = vadd.f32 %v7434_v10, %v2911_v32  ;;  %v2456_v53 = vadd.f32 %v7397_v33, %v7432_v39  ;;  %v7853_v39 = vld [vmem:[#allocation20_spill] sm:$0xff] }
 0x2de   : > { %v7495_v1 = vpop.f32.mrf.mxu1  ;;  %v3939_v52 = vadd.f32 %v3878_v21, %v3473_v54  ;;  %v2918_v33 = vadd.f32 %v7463_v37, %v2452_v20  ;;  %v7855_v24 = vld [vmem:[#allocation35_spill] sm:$0xff]  ;;  %v7859_v51 = vld [vmem:[#allocation28_spill] sm:$0xff]  ;;  %v7861_v54 = vld [vmem:[#allocation22_spill] sm:$0xff] }
 0x2df   : > { %v7529_v62 = vpop.f32.mrf.mxu0  ;;  %v3938_v18 = vadd.f32 %v3875_v13, %v3472_v34  ;;  %v3476_v46 = vadd.f32 %v3425_v42, %v3233_v44  ;;  %v3236_v5 = vadd.f32 %v7439_v3, %v2914_v60  ;;  %v3234_v42 = vadd.f32 %v7853_v39, %v2912_v59  ;;  %v7858_v34 = vld [vmem:[#allocation21_spill] sm:$0xff] }
 0x2e0   : > { %v7499_v58 = vpop.f32.mrf.mxu1  ;;  %v7856_v21 = vld [vmem:[#allocation36_spill] sm:$0xff]  ;;  %v3239_v37 = vadd.f32 %v7858_v34, %v7857_v40  ;;  %v2916_v38 = vadd.f32 %v7859_v51, %v2450_v25  ;;  %v3237_v9 = vadd.f32 %v7861_v54, %v2915_v29  ;;  %v7866_v39 = vld [vmem:[#allocation25_spill] sm:$0xff] }
 0x2e1   : > { %v7550_v28 = vpop.f32.mrf.mxu0  ;;  %v3479_v48 = vadd.f32 %v7855_v24, %v3236_v5  ;;  %v3477_v11 = vadd.f32 %v7856_v21, %v3234_v42  ;;  %v3942_v3 = vadd.f32 %v7493_v6, %v3476_v46  ;;  %v7868_v24 = vld [vmem:[#allocation26_spill] sm:$0xff]  ;;  %v7869_v21 = vld [vmem:[#allocation27_spill] sm:$0xff] }
 0x2e2   : > { %v7505_v49 = vpop.f32.mrf.mxu1  ;;  %v7860_v30 = vld [vmem:[#allocation38_spill] sm:$0xff]  ;;  %v3238_v42 = vadd.f32 %v7866_v39, %v2916_v38 }
 0x2e3   : > { %v5692_v14 = vpop.f32.mrf.mxu0  ;;  %v3943_v46 = vadd.f32 %v7515_v26, %v3477_v11 }
 0x2e4   : > { %v7510_v43 = vpop.f32.mrf.mxu1 }
 0x2e6   : > { %v7517_v2 = vpop.f32.mrf.mxu1 }
 0x2e8   : > { %v7520_v19 = vpop.f32.mrf.mxu1 }
 0x2ea   : > { %v5715_v61 = vpop.f32.mrf.mxu1 }
 0x2eb   : > { %v4262_v50 = vadd.f32 %v5715_v61, %v3940_v57  ;;  %v3482_v61 = vadd.f32 %v7860_v30, %v3239_v37  ;;  %v3481_v37 = vadd.f32 %v7499_v58, %v3238_v42 }
 0x2ec   : > { %v4197_v0 = vpop.f32.mrf.mxu1 }
 0x2ed   : > { %v4284_v45 = vmul.f32 %v7534_v36, %v4262_v50  ;;  %v4260_v23 = vadd.f32 %v4197_v0, %v3938_v18  ;;  %v7862_v50 = vld [vmem:[#allocation24_spill] sm:$0xff]  ;;  %v7863_v0 = vld [vmem:[#allocation31_spill] sm:$0xff] }
 0x2ee   : > { %v5716_v10 = vpop.f32.mrf.mxu1  ;;  %v3240_v18 = vadd.f32 %v7862_v50, %v2918_v33  ;;  %v2919_v63 = vadd.f32 %v7863_v0, %v2453_v12  ;;  %v7865_v33 = vld [vmem:[#allocation33_spill] sm:$0xff] }
 0x2ef   : > { %v4282_v7 = vmul.f32 %v7534_v36, %v4260_v23  ;;  %v4263_v16 = vadd.f32 %v5716_v10, %v3941_v31  ;;  %v4306_v47 = vadd.f32 %v7555_v35, %v4284_v45  ;;  %v3910_v45 = vpop.f32.mrf.mxu0  ;;  %v3945_v31 = vadd.f32 %v7503_v56, %v3479_v48  ;;  %v7864_v10 = vld [vmem:[#allocation39_spill] sm:$0xff] }
 0x2f0   : > { %v4200_v13 = vpop.f32.mrf.mxu1  ;;  %v2922_v5 = vadd.f32 %v7865_v33, %v2456_v53  ;;  %v3948_v56 = vadd.f32 %v7529_v62, %v3482_v61  ;;  %v3241_v11 = vadd.f32 %v7869_v21, %v2919_v63 }
 0x2f1   : > { %v4285_v55 = vmul.f32 %v7534_v36, %v4263_v16  ;;  %v4261_v4 = vadd.f32 %v4200_v13, %v3939_v52  ;;  %v4304_v32 = vadd.f32 %v7555_v35, %v4282_v7  ;;  %v4322_v59 = vmax.f32 %v4306_v47, 0.0  ;;  %v5695_v26 = vpop.f32.mrf.mxu0 }
 0x2f2   : > { %v5719_v8 = vpop.f32.mrf.mxu1  ;;  %v3480_v7 = vadd.f32 %v7864_v10, %v3237_v9  ;;  %v3484_v50 = vadd.f32 %v7510_v43, %v3241_v11 }
 0x2f3   : > { %v4307_v17 = vadd.f32 %v7555_v35, %v4285_v55  ;;  %v4283_v15 = vmul.f32 %v7534_v36, %v4261_v4  ;;  %v4266_v57 = vadd.f32 %v5719_v8, %v3944_v27  ;;  %v4320_v16 = vmax.f32 %v4304_v32, 0.0  ;;  %v7867_v27 = vld [vmem:[#allocation30_spill] sm:$0xff]  ;;  %v3923_v9 = vpop.f32.mrf.mxu0 }
 0x2f4   : > { %v4213_v60 = vpop.f32.mrf.mxu1  ;;  %v3483_v55 = vadd.f32 %v7495_v1, %v3240_v18  ;;  %v3243_v48 = vadd.f32 %v7868_v24, %v7867_v27  ;;  %v3946_v62 = vadd.f32 %v7550_v28, %v3480_v7 }
 0x2f5   : > { %v4323_v20 = vmax.f32 %v4307_v17, 0.0  ;;  %v4305_v6 = vadd.f32 %v7555_v35, %v4283_v15  ;;  %v4264_v44 = vadd.f32 %v4213_v60, %v3942_v3  ;;  %v4288_v23 = vmul.f32 %v7534_v36, %v4266_v57  ;;  %v7870_v3 = vld [vmem:[#allocation34_spill] sm:$0xff]  ;;  %v7871_v17 = vld [vmem:[#allocation29_spill] sm:$0xff]  ;;  %v5696_v10 = vpop.f32.mrf.mxu0 }
 0x2f6   : > { %v5720_v25 = vpop.f32.mrf.mxu1  ;;  %v2920_v32 = vadd.f32 %v7870_v3, %v2454_v41  ;;  %v3244_v15 = vadd.f32 %v7871_v17, %v2922_v5  ;;  %v3486_v30 = vadd.f32 %v7505_v49, %v3243_v48  ;;  %v3949_v54 = vadd.f32 %v5692_v14, %v3483_v55 }
 0x2f7   : > { %v4337_v52 = vpack.c.bf16 %v4323_v20, %v4322_v59  ;;  %v4321_v29 = vmax.f32 %v4305_v6, 0.0  ;;  %v4286_v13 = vmul.f32 %v7534_v36, %v4264_v44  ;;  %v4267_v12 = vadd.f32 %v5720_v25, %v3945_v31  ;;  %v7872_v31 = vld [vmem:[#allocation32_spill] sm:$0xff] }
 0x2f8   : > { %v4216_v47 = vpop.f32.mrf.mxu1  ;;  %v4310_v53 = vadd.f32 %v7555_v35, %v4288_v23  ;;  %v3947_v6 = vadd.f32 %v3910_v45, %v3481_v37  ;;  %v3487_v44 = vadd.f32 %v7517_v2, %v3244_v15  ;;  %v3242_v14 = vadd.f32 %v7872_v31, %v2920_v32 }
 0x2f9   : > { %v4265_v4 = vadd.f32 %v4216_v47, %v3943_v46  ;;  %v4336_v22 = vpack.c.bf16 %v4321_v29, %v4320_v16  ;;  %v4289_v40 = vmul.f32 %v7534_v36, %v4267_v12  ;;  %v4308_v57 = vadd.f32 %v7555_v35, %v4286_v13 }
 0x2fa   : > { %v5723_v34 = vpop.f32.mrf.mxu1  ;;  %v4326_v28 = vmax.f32 %v4310_v53, 0.0  ;;  %v3952_v46 = vadd.f32 %v5695_v26, %v3486_v30  ;;  %v3950_v29 = vadd.f32 %v3923_v9, %v3484_v50  ;;  %v3485_v45 = vadd.f32 %v7520_v19, %v3242_v14 }
 0x2fb   : > { %v4287_v8 = vmul.f32 %v7534_v36, %v4265_v4  ;;  %v4270_v1 = vadd.f32 %v5723_v34, %v3948_v56  ;;  %5745 = vmatprep.mubr.bf16.mxu0 %v4336_v22  ;;  %v4311_v51 = vadd.f32 %v7555_v35, %v4289_v40  ;;  %v4324_v0 = vmax.f32 %v4308_v57, 0.0  ;;  %v3926_v56 = vpop.f32.mrf.mxu0 }
 0x2fc   : > { %v4229_v38 = vpop.f32.mrf.mxu1  ;;  %5746 = vmatmul.mubr.bf16.vlgmr.msra.gmra.mxu0 %v4337_v52  ;;  %v3953_v13 = vadd.f32 %v5696_v10, %v3487_v44  ;;  %v3951_v48 = vadd.f32 %v3926_v56, %v3485_v45  ;;  %v7644_v44 = vld [vmem:[%s7785_s9] ss:$0 sm:$0xff] }
 0x2fd   : > { %v4309_v58 = vadd.f32 %v7555_v35, %v4287_v8  ;;  %v4268_v61 = vadd.f32 %v4229_v38, %v3946_v62  ;;  %v4327_v18 = vmax.f32 %v4311_v51, 0.0  ;;  %v4292_v41 = vmul.f32 %v7534_v36, %v4270_v1 }
 0x2fe   : > { %v5724_v60 = vpop.f32.mrf.mxu1 }
 0x2ff   : > { %v4325_v59 = vmax.f32 %v4309_v58, 0.0  ;;  %v4271_v20 = vadd.f32 %v5724_v60, %v3949_v54  ;;  %v4290_v49 = vmul.f32 %v7534_v36, %v4268_v61  ;;  %v4339_v23 = vpack.c.bf16 %v4327_v18, %v4326_v28  ;;  %v7627_v18 = vld [vmem:[%s7787_s11] ss:$0 sm:$0xff] }
 0x300   : > { %v4232_v63 = vpop.f32.mrf.mxu1  ;;  %v4314_v7 = vadd.f32 %v7555_v35, %v4292_v41  ;;  %v7633_v60 = vld [vmem:[%s7788_s12] ss:$0 sm:$0xff] }
 0x301   : > { %v4293_v25 = vmul.f32 %v7534_v36, %v4271_v20  ;;  %v4269_v43 = vadd.f32 %v4232_v63, %v3947_v6  ;;  %v4338_v52 = vpack.c.bf16 %v4325_v59, %v4324_v0  ;;  %v4312_v39 = vadd.f32 %v7555_v35, %v4290_v49  ;;  %v7638_v59 = vld [vmem:[%s7784_s8] ss:$0 sm:$0xff] }
 0x302   : > { %v5727_v16 = vpop.f32.mrf.mxu1  ;;  %v4330_v22 = vmax.f32 %v4314_v7, 0.0 }
 0x303   : > { %v4315_v2 = vadd.f32 %v7555_v35, %v4293_v25  ;;  %v4291_v33 = vmul.f32 %v7534_v36, %v4269_v43  ;;  %v4274_v5 = vadd.f32 %v5727_v16, %v3952_v46  ;;  %5749 = vmatprep.mubr.bf16.mxu0 %v4338_v52  ;;  %v4328_v21 = vmax.f32 %v4312_v39, 0.0 }
 0x304   : > { %v4245_v42 = vpop.f32.mrf.mxu1  ;;  %5750 = vmatmul.mubr.bf16.gmra.mxu0 %v4339_v23 }
 0x305   : > { %v4331_v12 = vmax.f32 %v4315_v2, 0.0  ;;  %v4313_v47 = vadd.f32 %v7555_v35, %v4291_v33  ;;  %v4296_v55 = vmul.f32 %v7534_v36, %v4274_v5  ;;  %v4272_v4 = vadd.f32 %v4245_v42, %v3950_v29 }
 0x306   : > { %v5728_v19 = vpop.f32.mrf.mxu1 }
 0x307   : > { %v4329_v26 = vmax.f32 %v4313_v47, 0.0  ;;  %v4294_v27 = vmul.f32 %v7534_v36, %v4272_v4  ;;  %v4275_v24 = vadd.f32 %v5728_v19, %v3953_v13  ;;  %v4341_v53 = vpack.c.bf16 %v4331_v12, %v4330_v22 }
 0x308   : > { %v4248_v11 = vpop.f32.mrf.mxu1  ;;  %v4318_v40 = vadd.f32 %v7555_v35, %v4296_v55 }
 0x309   : > { %v4297_v34 = vmul.f32 %v7534_v36, %v4275_v24  ;;  %v4273_v37 = vadd.f32 %v4248_v11, %v3951_v48  ;;  %v4340_v8 = vpack.c.bf16 %v4329_v26, %v4328_v21  ;;  %v4316_v1 = vadd.f32 %v7555_v35, %v4294_v27 }
 0x30a   : > { %v4334_v32 = vmax.f32 %v4318_v40, 0.0 }
 0x30b   : > { %v4319_v62 = vadd.f32 %v7555_v35, %v4297_v34  ;;  %v4295_v3 = vmul.f32 %v7534_v36, %v4273_v37  ;;  %5753 = vmatprep.mubr.bf16.mxu0 %v4340_v8  ;;  %v4332_v57 = vmax.f32 %v4316_v1, 0.0 }
 0x30c   : > { %5754 = vmatmul.mubr.bf16.gmra.mxu0 %v4341_v53 }
 0x30d   : > { %v4335_v17 = vmax.f32 %v4319_v62, 0.0  ;;  %v4317_v15 = vadd.f32 %v7555_v35, %v4295_v3 }
 0x30f   : > { %v4333_v51 = vmax.f32 %v4317_v15, 0.0  ;;  %v4343_v38 = vpack.c.bf16 %v4335_v17, %v4334_v32 }
 0x311   : > { %v4342_v30 = vpack.c.bf16 %v4333_v51, %v4332_v57 }
 0x313   : > { %5757 = vmatprep.mubr.bf16.mxu0 %v4342_v30 }
 0x314   : > { %5758 = vmatmul.mubr.bf16.gmra.mxu0 %v4343_v38 }
 0x322   : > { %v5779_v58 = vpop.f32.mrf.mxu1 }
 0x323   : > { %v4719_v41 = vmul.f32 %v5779_v58, %v7627_v18 }
 0x324   : > { %v4647_v61 = vpop.f32.mrf.mxu1 }
 0x325   : > { %v4717_v6 = vmul.f32 %v7627_v18, %v4647_v61  ;;  %v4742_v49 = vadd.f32 %v7633_v60, %v4719_v41 }
 0x326   : > { %v5780_v54 = vpop.f32.mrf.mxu1 }
 0x327   : > { %v4720_v23 = vmul.f32 %v5780_v54, %v7627_v18  ;;  %v4740_v46 = vadd.f32 %v7633_v60, %v4717_v6 }
 0x328   : > { %v4650_v9 = vpop.f32.mrf.mxu1 }
 0x329   : > { %v4718_v16 = vmul.f32 %v7627_v18, %v4650_v9  ;;  %v4743_v45 = vadd.f32 %v7633_v60, %v4720_v23 }
 0x32a   : > { %v5783_v50 = vpop.f32.mrf.mxu1 }
 0x32b   : > { %v4723_v2 = vmul.f32 %v5783_v50, %v7627_v18  ;;  %v4741_v47 = vadd.f32 %v7633_v60, %v4718_v16 }
 0x32c   : > { %v4663_v28 = vpop.f32.mrf.mxu1 }
 0x32d   : > { %v4746_v19 = vadd.f32 %v7633_v60, %v4723_v2  ;;  %v4721_v26 = vmul.f32 %v7627_v18, %v4663_v28 }
 0x32e   : > { %v5784_v36 = vpop.f32.mrf.mxu1 }
 0x32f   : > { %v4724_v11 = vmul.f32 %v5784_v36, %v7627_v18  ;;  %v4744_v3 = vadd.f32 %v7633_v60, %v4721_v26 }
 0x330   : > { %v4666_v35 = vpop.f32.mrf.mxu1 }
 0x331   : > { %v4722_v8 = vmul.f32 %v7627_v18, %v4666_v35  ;;  %v4747_v51 = vadd.f32 %v7633_v60, %v4724_v11 }
 0x333   : > { %v4745_v9 = vadd.f32 %v7633_v60, %v4722_v8 }
 0x34c   : > { %v5787_v20 = vpop.f32.mrf.mxu1 }
 0x34d   : > { %v4727_v1 = vmul.f32 %v5787_v20, %v7627_v18 }
 0x34e   : > { %v4679_v14 = vpop.f32.mrf.mxu1 }
 0x34f   : > { %v4750_v50 = vadd.f32 %v7633_v60, %v4727_v1  ;;  %v4725_v28 = vmul.f32 %v7627_v18, %v4679_v14 }
 0x350   : > { %v5788_v5 = vpop.f32.mrf.mxu1 }
 0x352   : > { %v4682_v24 = vpop.f32.mrf.mxu1 }
 0x354   : > { %v5791_v57 = vpop.f32.mrf.mxu1 }
 0x3bc   : > { %v5747_v0 = vpop.f32.mrf.mxu0 }
 0x3bd   : > { %v4513_v63 = vmul.f32 %v5747_v0, %v7638_v59  ;;  %v4695_v0 = vpop.f32.mrf.mxu1 }
 0x3be   : > { %v4442_v31 = vpop.f32.mrf.mxu0 }
 0x3bf   : > { %v4535_v25 = vadd.f32 %v7644_v44, %v4513_v63  ;;  %v4511_v43 = vmul.f32 %v7638_v59, %v4442_v31  ;;  %v5792_v2 = vpop.f32.mrf.mxu1 }
 0x3c0   : > { %v5748_v10 = vpop.f32.mrf.mxu0 }
 0x3c1   : > { %v4758_v7 = vadd.f32 %v4742_v49, %v4535_v25  ;;  %v4533_v52 = vadd.f32 %v7644_v44, %v4511_v43  ;;  %v4514_v29 = vmul.f32 %v5748_v10, %v7638_v59  ;;  %v4728_v49 = vmul.f32 %v5788_v5, %v7627_v18 }
 0x3c2   : > { %v4445_v33 = vpop.f32.mrf.mxu0  ;;  %v4748_v43 = vadd.f32 %v7633_v60, %v4725_v28  ;;  %v4731_v10 = vmul.f32 %v5791_v57, %v7627_v18 }
 0x3c3   : > { %v4774_v39 = vmax.f32 %v4758_v7, 0.0  ;;  %v4756_v42 = vadd.f32 %v4740_v46, %v4533_v52  ;;  %v4536_v13 = vadd.f32 %v7644_v44, %v4514_v29  ;;  %v4512_v12 = vmul.f32 %v7638_v59, %v4445_v33 }
 0x3c4   : > { %v5751_v22 = vpop.f32.mrf.mxu0  ;;  %v4726_v46 = vmul.f32 %v7627_v18, %v4682_v24  ;;  %v4751_v33 = vadd.f32 %v7633_v60, %v4728_v49  ;;  %v4698_v24 = vpop.f32.mrf.mxu1 }
 0x3c5   : > { %4790 = vst [vmem:[%s7660_s16 + $0x10] sm:$0xff] %v4774_v39  ;;  %v4772_v55 = vmax.f32 %v4756_v42, 0.0  ;;  %v4759_v4 = vadd.f32 %v4743_v45, %v4536_v13  ;;  %v4534_v56 = vadd.f32 %v7644_v44, %v4512_v12  ;;  %v4517_v27 = vmul.f32 %v5751_v22, %v7638_v59 }
 0x3c6   : > { %v4458_v53 = vpop.f32.mrf.mxu0  ;;  %v4730_v8 = vmul.f32 %v7627_v18, %v4698_v24 }
 0x3c7   : > { %4788 = vst [vmem:[%s7660_s16] sm:$0xff] %v4772_v55  ;;  %v4775_v48 = vmax.f32 %v4759_v4, 0.0  ;;  %v4757_v21 = vadd.f32 %v4741_v47, %v4534_v56  ;;  %v4539_v40 = vadd.f32 %v7644_v44, %v4517_v27  ;;  %v4515_v34 = vmul.f32 %v7638_v59, %v4458_v53 }
 0x3c8   : > { %v5752_v62 = vpop.f32.mrf.mxu0  ;;  %v4749_v47 = vadd.f32 %v7633_v60, %v4726_v46  ;;  %v4754_v55 = vadd.f32 %v7633_v60, %v4731_v10  ;;  %v4729_v4 = vmul.f32 %v7627_v18, %v4695_v0 }
 0x3c9   : > { %4791 = vst [vmem:[%s7660_s16 + $0x18] sm:$0xff] %v4775_v48  ;;  %v4773_v37 = vmax.f32 %v4757_v21, 0.0  ;;  %v4762_v32 = vadd.f32 %v4746_v19, %v4539_v40  ;;  %v4537_v17 = vadd.f32 %v7644_v44, %v4515_v34  ;;  %v4518_v15 = vmul.f32 %v5752_v62, %v7638_v59 }
 0x3ca   : > { %v4461_v38 = vpop.f32.mrf.mxu0  ;;  %v4732_v48 = vmul.f32 %v5792_v2, %v7627_v18 }
 0x3cb   : > { %4789 = vst [vmem:[%s7660_s16 + $0x8] sm:$0xff] %v4773_v37  ;;  %v4778_v30 = vmax.f32 %v4762_v32, 0.0  ;;  %v4760_v58 = vadd.f32 %v4744_v3, %v4537_v17  ;;  %v4540_v61 = vadd.f32 %v7644_v44, %v4518_v15  ;;  %v4516_v54 = vmul.f32 %v7638_v59, %v4461_v38 }
 0x3cc   : > { %v5755_v36 = vpop.f32.mrf.mxu0  ;;  %v4752_v37 = vadd.f32 %v7633_v60, %v4729_v4  ;;  %v4755_v15 = vadd.f32 %v7633_v60, %v4732_v48 }
 0x3cd   : > { %4794 = vst [vmem:[%s7660_s16 + $0x30] sm:$0xff] %v4778_v30  ;;  %v4776_v35 = vmax.f32 %v4760_v58, 0.0  ;;  %v4763_v41 = vadd.f32 %v4747_v51, %v4540_v61  ;;  %v4538_v20 = vadd.f32 %v7644_v44, %v4516_v54  ;;  %v4521_v6 = vmul.f32 %v5755_v36, %v7638_v59 }
 0x3ce   : > { %v4474_v63 = vpop.f32.mrf.mxu0  ;;  %v4753_v58 = vadd.f32 %v7633_v60, %v4730_v8 }
 0x3cf   : > { %4792 = vst [vmem:[%s7660_s16 + $0x20] sm:$0xff] %v4776_v35  ;;  %v4779_v23 = vmax.f32 %v4763_v41, 0.0  ;;  %v4761_v31 = vadd.f32 %v4745_v9, %v4538_v20  ;;  %v4543_v25 = vadd.f32 %v7644_v44, %v4521_v6  ;;  %v4519_v14 = vmul.f32 %v7638_v59, %v4474_v63 }
 0x3d0   : > { %v5756_v7 = vpop.f32.mrf.mxu0 }
 0x3d1   : > { %4795 = vst [vmem:[%s7660_s16 + $0x38] sm:$0xff] %v4779_v23  ;;  %v4777_v16 = vmax.f32 %v4761_v31, 0.0  ;;  %v4766_v52 = vadd.f32 %v4750_v50, %v4543_v25  ;;  %v4541_v29 = vadd.f32 %v7644_v44, %v4519_v14  ;;  %v4522_v45 = vmul.f32 %v5756_v7, %v7638_v59 }
 0x3d2   : > { %v4477_v5 = vpop.f32.mrf.mxu0 }
 0x3d3   : > { %4793 = vst [vmem:[%s7660_s16 + $0x28] sm:$0xff] %v4777_v16  ;;  %v4782_v39 = vmax.f32 %v4766_v52, 0.0  ;;  %v4764_v42 = vadd.f32 %v4748_v43, %v4541_v29  ;;  %v4544_v13 = vadd.f32 %v7644_v44, %v4522_v45  ;;  %v4520_v12 = vmul.f32 %v7638_v59, %v4477_v5 }
 0x3d4   : > { %v5759_v56 = vpop.f32.mrf.mxu0 }
 0x3d5   : > { %4798 = vst [vmem:[%s7660_s16 + $0x50] sm:$0xff] %v4782_v39  ;;  %v4780_v22 = vmax.f32 %v4764_v42, 0.0  ;;  %v4767_v19 = vadd.f32 %v4751_v33, %v4544_v13  ;;  %v4542_v26 = vadd.f32 %v7644_v44, %v4520_v12  ;;  %v4525_v27 = vmul.f32 %v5759_v56, %v7638_v59 }
 0x3d6   : > { %v4490_v21 = vpop.f32.mrf.mxu0 }
 0x3d7   : > { %4796 = vst [vmem:[%s7660_s16 + $0x40] sm:$0xff] %v4780_v22  ;;  %v4783_v11 = vmax.f32 %v4767_v19, 0.0  ;;  %v4765_v53 = vadd.f32 %v4749_v47, %v4542_v26  ;;  %v4547_v40 = vadd.f32 %v7644_v44, %v4525_v27  ;;  %v4523_v34 = vmul.f32 %v7638_v59, %v4490_v21 }
 0x3d8   : > { %v5760_v1 = vpop.f32.mrf.mxu0 }
 0x3d9   : > { %4799 = vst [vmem:[%s7660_s16 + $0x58] sm:$0xff] %v4783_v11  ;;  %v4781_v62 = vmax.f32 %v4765_v53, 0.0  ;;  %v4770_v3 = vadd.f32 %v4754_v55, %v4547_v40  ;;  %v4545_v32 = vadd.f32 %v7644_v44, %v4523_v34  ;;  %v4526_v17 = vmul.f32 %v5760_v1, %v7638_v59 }
 0x3da   : > { %v4493_v57 = vpop.f32.mrf.mxu0 }
 0x3db   : > { %4797 = vst [vmem:[%s7660_s16 + $0x48] sm:$0xff] %v4781_v62  ;;  %v4786_v51 = vmax.f32 %v4770_v3, 0.0  ;;  %v4768_v38 = vadd.f32 %v4752_v37, %v4545_v32  ;;  %v4548_v18 = vadd.f32 %v7644_v44, %v4526_v17  ;;  %v4524_v30 = vmul.f32 %v7638_v59, %v4493_v57 }
 0x3dd   : > { %4802 = vst [vmem:[%s7660_s16 + $0x70] sm:$0xff] %v4786_v51  ;;  %v4784_v61 = vmax.f32 %v4768_v38, 0.0  ;;  %v4771_v54 = vadd.f32 %v4755_v15, %v4548_v18  ;;  %v4546_v9 = vadd.f32 %v7644_v44, %v4524_v30 }
 0x3df   : > { %4800 = vst [vmem:[%s7660_s16 + $0x60] sm:$0xff] %v4784_v61  ;;  %v4787_v50 = vmax.f32 %v4771_v54, 0.0  ;;  %v4769_v28 = vadd.f32 %v4753_v58, %v4546_v9 }
 0x3e1   : > { %4803 = vst [vmem:[%s7660_s16 + $0x78] sm:$0xff] %v4787_v50  ;;  %v4785_v60 = vmax.f32 %v4769_v28, 0.0 }
 0x3e3   : > { %4801 = vst [vmem:[%s7660_s16 + $0x68] sm:$0xff] %v4785_v60 }
 0x3e4   : > { %6166 = shalt.err (!%p6163_p3)
}
 0x3e5   : > { %s6167_s24 = scalar_lea.hbm %s7730_s30, 2048  ;;  %s6171_s14 = scalar_lea.hbm %s7789_s13, 8192 }
 0x3e6   : > { %p6168_p6 = scmp.ne.s32.totalorder %s7730_s30, %s6167_s24  ;;  %p6172_p9 = scmp.lt.s32.totalorder %s7730_s30, %s7789_s13 }
 0x3e7   : > { %p6173_p2 = scmp.lt.s32.totalorder %s6171_s14, %s6167_s24 }
 0x3e8   : > { %p6169_p4 = pnand %p6168_p6, %p7873_p11 }
 0x3e9   : > { %p6174_p0 = por %p6173_p2, %p6172_p9 }
 0x3ea   : > { %p6170_p8 = pneg %p6169_p4 }
 0x3ec   : > { %p6175_p5 = pnand %p6174_p0, %p6170_p8 }
 0x3ee   : > { %6178 = shalt.err (!%p6175_p5)
}
 0x3ef   : > { %s6236_s25 = smov 128   ;;  %s6237_s22 = smov 8  }
 0x3f0   : > { %5811 = dma.vmem_to_hbm [thread:$0]  (%p7873_p11), %s7732_s19, 2048, %s7730_s30, %s4805_s7, %s6236_s25, %s6236_s25, %s6237_s22  }
 0x3f1 PF: > { %s7874_s20 = sld [smem:[#allocation17_spill]]  ;;  %p5843_p7 = scmp.ge.s32.totalorder %s6225_s28, 2 }
 0x3f2   : > { %s7875_s29 = sld [smem:[#allocation18_spill]] }
 0x3f7   : > { %s4833_s21 = sand.u32 1, %s7874_s20  }
 0x3f8   : > { %p7876_p1 = scmp.ne.s32.totalorder %s7875_s29, 0  ;;  %s4834_s23 = scalar_lea.sflag [#allocation5], %s4833_s21 }
 0x3fa   : > { %p5831_p12 = pnand %p5843_p7, %p7876_p1 }
 0x3fc   : > { %p5832_p13 = pneg %p5831_p12 }
 0x3fe   : > { %6208 = dma.done.wait (%p5832_p13), %s4834_s23, 2048  }
 0x3ff   : > { %6210 = vsyncadd (%p5832_p13), %s4834_s23, 4294965248  ;;  %s7877_s24 = sld [smem:[#allocation19_spill]]  ;;  %p28_p10 = scmp.ge.s32.totalorder %s6407_s18, 6  }
 0x400   : > { %s7878_s25 = smov %s6217_s26  ;;  %s7879_s26 = smov %s6221_s27 }
 0x401   : > { %s7881_s28 = smov %s6407_s18  ;;  %30 = sbr.rel (!%p28_p10) target bundleno = 12 (0xc), region = 144 }
 0x405   : > { %s7880_s27 = smov %s7877_s24 }
 0x406   :  { %4839 = vsyncpa [#allocation4], 1 }
 0x407   :  { %4841 = vsyncpa [#allocation4 + $0x1], 1 }
 0x408   :  { %4842 = vsyncpa [#allocation7], 1 }
 0x409   :  { %4843 = vsyncpa [#allocation10], 1 }
 0x40a   :  { %4844 = vsyncpa [#allocation5], 1 }
 0x40b   :  { %4846 = vsyncpa [#allocation5 + $0x1], 1 }

</bundles_post_ra>
